<compile_context>
chip_gen: v7x
topology: tpu7x:2x2x1
jax: 0.10.0
libtpu: 0.0.40
codegen_flags: <defaults>
</compile_context>

<pallas_src>
import numpy as np
import jax
import jax.numpy as jnp
from jax.experimental import pallas as pl
from jax.experimental.pallas import tpu as pltpu


def _cdiv(a, b):
    return -(-a // b)


def _pick_tiles(batch, tp, target_lanes=2048, max_lanes=4096):
    """Batch tile Bt (elements merged into the lane axis) and block count nb."""
    bt = max(1, min(batch, _cdiv(target_lanes, tp), max(1, max_lanes // tp)))
    nb = _cdiv(batch, bt)
    if nb == 1 and batch >= 2:      # keep >= 2 blocks so v7x's two TCs both work
        nb = 2
        bt = _cdiv(batch, 2)
    return bt, nb


@jax.jit
def inception_module(x, wb, w0, w1, w2, wp, gamma, beta):
    """x: (B, C_in, T). Conv weights in PyTorch Conv1d layout (out, in, K)."""
    f32, bf16 = jnp.float32, jnp.bfloat16
    B, C_in, T = x.shape
    U = w0.shape[0]
    K0 = w0.shape[2]                       # largest kernel (40)
    C_out = 4 * U
    left0 = (K0 - 1) // 2                  # PyTorch 'same': left pad of largest k
    right0 = K0 - 1 - left0
    Tp = T + K0 - 1                        # per-element padded segment length

    # TODO(synk): a single element longer than the lane budget (very large T)
    # would need an additional time-axis tiling level not implemented here.
    Bt, nb = _pick_tiles(B, Tp)
    B_pad = nb * Bt
    M0 = Bt * Tp
    M = _cdiv(M0, 128) * 128               # matmul N / lane width (128-dense)
    Mh = M + K0 - 1                        # input block width incl. conv halo
    MV = Bt * T                            # compacted (valid) lane width
    Cp = _cdiv(C_in, 16) * 16              # channels padded to a bf16 sublane tile
    pad_c = Cp - C_in
    R = (K0 + 1) * Cp                      # im2col rows: K0 conv taps + maxpool blk

    # ------------------------------------------------------------------
    # Weight prep: fold the 1x1 bottleneck into the branch conv weights (exact,
    # activation=None between them) and stack all four branches into one (4U,R)
    # matrix matching the im2col row layout.
    # TODO(synk): for C_in > 32 keep the bottleneck un-folded (separate 1x1
    # matmul onto a 32-channel intermediate); folding then inflates the
    # contraction.  Kernel structure stays identical.
    # ------------------------------------------------------------------
    hp = jax.lax.Precision.HIGHEST
    wb2 = wb[:, :, 0].astype(f32)                                   # (32, C_in)

    def fold(w):                                                    # (U,32,K)->(U,Cp,K)
        wf = jnp.einsum("uok,oc->uck", w.astype(f32), wb2, precision=hp)
        return jnp.pad(wf, ((0, 0), (0, pad_c), (0, 0)))

    def place(wf):                                                  # -> (U, K0*Cp)
        K = wf.shape[2]
        off = left0 - (K - 1) // 2                                  # tap offset in K0 window
        blk = jnp.transpose(wf, (0, 2, 1)).reshape(U, K * Cp)       # col = k*Cp + c
        return jnp.pad(blk, ((0, 0), (off * Cp, (K0 - off - K) * Cp)))

    conv_rows = jnp.concatenate([place(fold(w0)), place(fold(w1)),
                                 place(fold(w2))], axis=0)          # (3U, K0*Cp)
    conv_rows = jnp.pad(conv_rows, ((0, 0), (0, Cp)))               # zero maxpool cols
    wp_rows = jnp.pad(wp[:, :, 0].astype(f32), ((0, 0), (0, pad_c)))          # (U, Cp)
    wp_rows = jnp.pad(wp_rows, ((0, 0), (K0 * Cp, 0)))                        # (U, R)
    wstack = jnp.concatenate([conv_rows, wp_rows], axis=0).astype(bf16)       # (4U, R)

    # ------------------------------------------------------------------
    # Input prep (bf16): pad each element's time axis with the conv halo, merge
    # Bt elements into the lane axis, and pre-pad each block with the whole-
    # block halo so the kernel reads the K0 shifted im2col windows directly
    # from the input view (no in-kernel staging copy or zero fills).
    # ------------------------------------------------------------------
    xpad = jnp.pad(x.astype(bf16), ((0, B_pad - B), (0, pad_c), (left0, right0)))
    xw = xpad.reshape(nb, Bt, Cp, Tp).transpose(0, 2, 1, 3).reshape(nb, Cp, M0)
    xw = jnp.pad(xw, ((0, 0), (0, 0), (left0, right0 + (M - M0))))  # (nb, Cp, Mh)

    # Per-block masks (static): row0 = valid output column (excludes time halo,
    # lane padding and padded batch elements), rows1/2 = left/right maxpool
    # neighbour is a real sample.
    masks_np = np.zeros((nb, 3, M), np.float32)
    tpi = np.arange(Tp)
    valid_t = ((tpi >= left0) & (tpi < left0 + T)).astype(np.float32)
    lok_t = (tpi != left0).astype(np.float32)
    rok_t = (tpi != left0 + T - 1).astype(np.float32)
    for i in range(nb):
        for j in range(Bt):
            real = 1.0 if (i * Bt + j) < B else 0.0
            base = j * Tp
            masks_np[i, 0, base:base + Tp] = valid_t * real
            masks_np[i, 1, base:base + Tp] = lok_t
            masks_np[i, 2, base:base + Tp] = rok_t
    masks = jnp.asarray(masks_np)

    # ------------------------------------------------------------------
    # Kernel 1: all four inception branches as ONE bf16 im2col MXU matmul per
    # block, per-block centered BatchNorm partial statistics (f32), and a
    # compacted bf16 (C_out, Bt*T) activation slab.
    # ------------------------------------------------------------------
    def conv_kernel(x_ref, w_ref, m_ref, y_ref, st_ref, col_ref):
        # im2col: K0 shifted windows straight from the pre-padded input view
        for s in range(K0):
            col_ref[s * Cp:(s + 1) * Cp, :] = x_ref[:, s:s + M]
        # maxpool(k=3, s=1, pad=1) on the raw input; missing neighbours at the
        # segment edges are replaced by the centre sample (== -inf padding).
        m = m_ref[...]
        lok = m[1:2, :] > 0.5
        rok = m[2:3, :] > 0.5
        xv = x_ref[:, left0:left0 + M]
        xm1 = x_ref[:, left0 - 1:left0 - 1 + M]
        xp1 = x_ref[:, left0 + 1:left0 + 1 + M]
        nl = jnp.where(lok, xm1, xv)
        nr = jnp.where(rok, xp1, xv)
        col_ref[K0 * Cp:, :] = jnp.maximum(jnp.maximum(nl, xv), nr)
        # one bf16 MXU matmul produces all 4U output channels (f32 accumulate)
        acc = jnp.dot(w_ref[...], col_ref[...],
                      preferred_element_type=jnp.float32)           # (4U, M)
        # BatchNorm partial stats over the valid columns (centered, stable)
        valid = m[0:1, :] > 0.5
        cnt = jnp.sum(m[0:1, :], axis=1, keepdims=True)             # (1, 1)
        ps = jnp.sum(jnp.where(valid, acc, 0.0), axis=1, keepdims=True)
        d = jnp.where(valid, acc - ps / cnt, 0.0)
        st_ref[:, 0:1] = ps
        st_ref[:, 1:2] = jnp.sum(d * d, axis=1, keepdims=True)
        # compact the valid time columns; downcast the intermediate to bf16
        for j in range(Bt):
            y_ref[:, j * T:(j + 1) * T] = \
                acc[:, j * Tp + left0:j * Tp + left0 + T].astype(bf16)

    y_pre, stats = pl.pallas_call(
        conv_kernel,
        out_shape=(jax.ShapeDtypeStruct((nb, C_out, MV), bf16),
                   jax.ShapeDtypeStruct((nb, C_out, 2), f32)),
        grid=(nb,),
        in_specs=[pl.BlockSpec((None, Cp, Mh), lambda i: (i, 0, 0)),
                  pl.BlockSpec((C_out, R), lambda i: (0, 0)),
                  pl.BlockSpec((None, 3, M), lambda i: (i, 0, 0))],
        out_specs=(pl.BlockSpec((None, C_out, MV), lambda i: (i, 0, 0)),
                   pl.BlockSpec((None, C_out, 2), lambda i: (i, 0, 0))),
        scratch_shapes=[pltpu.VMEM((R, M), bf16)],                  # im2col matrix
        compiler_params=pltpu.CompilerParams(
            dimension_semantics=("parallel",)),
    )(xw, wstack, masks)

    # ------------------------------------------------------------------
    # Combine per-block statistics (Chan's parallel-variance formula) and build
    # the affine BatchNorm transform.  Training-mode batch statistics, biased
    # variance, eps=1e-5 (nn.BatchNorm1d defaults).
    # ------------------------------------------------------------------
    cnt_np = np.array([min(Bt, B - i * Bt) * T for i in range(nb)], np.float32)
    cnt_b = jnp.asarray(cnt_np)                                     # real cols / block
    n = float(B * T)
    ps = stats[:, :, 0]                                             # (nb, 4U)
    pm2 = stats[:, :, 1]                                            # (nb, 4U)
    mean = jnp.sum(ps, axis=0) / n                                  # (4U,)
    mean_b = ps / cnt_b[:, None]
    m2 = jnp.sum(pm2, axis=0) + \
        jnp.sum(cnt_b[:, None] * (mean_b - mean[None, :]) ** 2, axis=0)
    var = m2 / n
    inv_std = jax.lax.rsqrt(var + 1e-5)
    g = gamma.astype(f32)
    scale = (g * inv_std).reshape(C_out, 1)
    shift = (beta.astype(f32) - mean * g * inv_std).reshape(C_out, 1)

    # ------------------------------------------------------------------
    # Kernel 2: lane-dense BN-apply + ReLU on the compacted slab.
    # ------------------------------------------------------------------
    def bn_apply_kernel(y_ref, sc_ref, sh_ref, o_ref):
        o_ref[...] = jnp.maximum(
            y_ref[...].astype(f32) * sc_ref[...] + sh_ref[...], 0.0)

    z = pl.pallas_call(
        bn_apply_kernel,
        out_shape=jax.ShapeDtypeStruct((nb, C_out, MV), f32),
        grid=(nb,),
        in_specs=[pl.BlockSpec((None, C_out, MV), lambda i: (i, 0, 0)),
                  pl.BlockSpec((C_out, 1), lambda i: (0, 0)),
                  pl.BlockSpec((C_out, 1), lambda i: (0, 0))],
        out_specs=pl.BlockSpec((None, C_out, MV), lambda i: (i, 0, 0)),
        compiler_params=pltpu.CompilerParams(
            dimension_semantics=("parallel",)),
    )(y_pre, scale, shift)

    # De-interleave the (block, element) lane packing back to (B, 4U, T).
    out = z.reshape(nb, C_out, Bt, T).transpose(0, 2, 1, 3).reshape(B_pad, C_out, T)
    return out[:B] if B_pad != B else out


# ----------------------------------------------------------------------------
# Pure-JAX reference (mirrors PyTorch semantics) for the correctness check.
# ----------------------------------------------------------------------------
def reference(x, wb, w0, w1, w2, wp, gamma, beta):
    def conv_same(inp, w):
        K = w.shape[2]
        left = (K - 1) // 2
        right = K - 1 - left
        return jax.lax.conv_general_dilated(
            inp, w, window_strides=(1,), padding=[(left, right)],
            dimension_numbers=("NCH", "OIH", "NCH"),
            precision=jax.lax.Precision.HIGHEST)

    inc = conv_same(x, wb)
    outs = [conv_same(inc, w0), conv_same(inc, w1), conv_same(inc, w2)]
    xp = jnp.pad(x, ((0, 0), (0, 0), (1, 1)), constant_values=-jnp.inf)
    mp = jnp.maximum(jnp.maximum(xp[:, :, 0:-2], xp[:, :, 1:-1]), xp[:, :, 2:])
    outs.append(conv_same(mp, wp))
    y = jnp.concatenate(outs, axis=1)
    mean = jnp.mean(y, axis=(0, 2), keepdims=True)
    var = jnp.mean((y - mean) ** 2, axis=(0, 2), keepdims=True)
    yn = (y - mean) / jnp.sqrt(var + 1e-5) * gamma.reshape(1, -1, 1) \
        + beta.reshape(1, -1, 1)
    return jnp.maximum(yn, 0.0)


if __name__ == "__main__":
    # Small shapes consistent with the module: in_channels=4, units=32,
    # use_bottleneck=True, max_kernel_size=40 -> output (B, 128, T).
    # B=9 exercises the multi-block grid AND the padded-batch path (Bt=5, nb=2).
    B, C_in, T, U = 9, 4, 64, 32
    key = jax.random.PRNGKey(0)
    ks = jax.random.split(key, 8)

    x = jax.random.normal(ks[0], (B, C_in, T), jnp.float32)
    # PyTorch Conv1d weight layout: (out_channels, in_channels, K), no biases.
    wb = 0.1 * jax.random.normal(ks[1], (32, C_in, 1), jnp.float32)   # bottleneck
    w0 = 0.1 * jax.random.normal(ks[2], (U, 32, 40), jnp.float32)     # kernel 40
    w1 = 0.1 * jax.random.normal(ks[3], (U, 32, 20), jnp.float32)     # kernel 20
    w2 = 0.1 * jax.random.normal(ks[4], (U, 32, 10), jnp.float32)     # kernel 10
    wp = 0.1 * jax.random.normal(ks[5], (U, C_in, 1), jnp.float32)    # after maxpool
    gamma = 1.0 + 0.1 * jax.random.normal(ks[6], (4 * U,), jnp.float32)
    beta = 0.1 * jax.random.normal(ks[7], (4 * U,), jnp.float32)

    out = inception_module(x, wb, w0, w1, w2, wp, gamma, beta)
    out = jax.block_until_ready(out)
    assert out.shape == (B, 4 * U, T)

    ref = reference(x, wb, w0, w1, w2, wp, gamma, beta)
    np.testing.assert_allclose(np.asarray(out), np.asarray(ref),
                               rtol=5e-2, atol=5e-2)
    print("KERNEL_OK")
</pallas_src>

<mosaic_0001>
module attributes {stable_mosaic.version = 11 : i64} {
  func.func @conv_kernel(%arg0: i32, %arg1: memref<1x16x679xbf16, #tpu.memory_space<vmem>>, %arg2: memref<128x656xbf16, #tpu.memory_space<vmem>>, %arg3: memref<1x3x640xf32, #tpu.memory_space<vmem>>, %arg4: memref<1x128x320xbf16, #tpu.memory_space<vmem>>, %arg5: memref<1x128x2xf32, #tpu.memory_space<vmem>>, %arg6: memref<656x640xbf16, #tpu.memory_space<vmem>>) attributes {dimension_semantics = [#tpu.dimension_semantics<parallel>], iteration_bounds = array<i64: 2>, scalar_prefetch = 0 : i64, scratch_operands = 1 : i64, tpu.core_type = #tpu.core_type<tc>, window_params = [{transform_indices = @transform_0, window_bounds = array<i64: 1, 16, 679>}, {pipeline_mode = #tpu.pipeline_mode<synchronous>, transform_indices = @transform_1, window_bounds = array<i64: 128, 656>}, {transform_indices = @transform_2, window_bounds = array<i64: 1, 3, 640>}, {transform_indices = @transform_3, window_bounds = array<i64: 1, 128, 320>}, {transform_indices = @transform_4, window_bounds = array<i64: 1, 128, 2>}]} {
    %c0 = arith.constant 0 : index
    %c0_0 = arith.constant 0 : index
    %c0_1 = arith.constant 0 : index
    %0 = vector.load %arg1[%c0, %c0_0, %c0_1] : memref<1x16x679xbf16, #tpu.memory_space<vmem>>, vector<1x16x640xbf16>
    %1 = vector.shape_cast %0 : vector<1x16x640xbf16> to vector<16x640xbf16>
    %c0_2 = arith.constant 0 : index
    %c0_3 = arith.constant 0 : index
    %2 = vector.load %arg6[%c0_2, %c0_3] : memref<656x640xbf16, #tpu.memory_space<vmem>>, vector<16x640xbf16>
    tpu.vector_store %arg6[%c0_2, %c0_3], %1 {strides = array<i32>} : memref<656x640xbf16, #tpu.memory_space<vmem>>, vector<16x640xbf16>,
    %c0_4 = arith.constant 0 : index
    %c0_5 = arith.constant 0 : index
    %c1 = arith.constant 1 : index
    %3 = vector.load %arg1[%c0_4, %c0_5, %c1] : memref<1x16x679xbf16, #tpu.memory_space<vmem>>, vector<1x16x640xbf16>
    %4 = vector.shape_cast %3 : vector<1x16x640xbf16> to vector<16x640xbf16>
    %c16 = arith.constant 16 : index
    %c0_6 = arith.constant 0 : index
    %5 = vector.load %arg6[%c16, %c0_6] : memref<656x640xbf16, #tpu.memory_space<vmem>>, vector<16x640xbf16>
    tpu.vector_store %arg6[%c16, %c0_6], %4 {strides = array<i32>} : memref<656x640xbf16, #tpu.memory_space<vmem>>, vector<16x640xbf16>,
    %c0_7 = arith.constant 0 : index
    %c0_8 = arith.constant 0 : index
    %c2 = arith.constant 2 : index
    %6 = vector.load %arg1[%c0_7, %c0_8, %c2] : memref<1x16x679xbf16, #tpu.memory_space<vmem>>, vector<1x16x640xbf16>
    %7 = vector.shape_cast %6 : vector<1x16x640xbf16> to vector<16x640xbf16>
    %c32 = arith.constant 32 : index
    %c0_9 = arith.constant 0 : index
    %8 = vector.load %arg6[%c32, %c0_9] : memref<656x640xbf16, #tpu.memory_space<vmem>>, vector<16x640xbf16>
    tpu.vector_store %arg6[%c32, %c0_9], %7 {strides = array<i32>} : memref<656x640xbf16, #tpu.memory_space<vmem>>, vector<16x640xbf16>,
    %c0_10 = arith.constant 0 : index
    %c0_11 = arith.constant 0 : index
    %c3 = arith.constant 3 : index
    %9 = vector.load %arg1[%c0_10, %c0_11, %c3] : memref<1x16x679xbf16, #tpu.memory_space<vmem>>, vector<1x16x640xbf16>
    %10 = vector.shape_cast %9 : vector<1x16x640xbf16> to vector<16x640xbf16>
    %c48 = arith.constant 48 : index
    %c0_12 = arith.constant 0 : index
    %11 = vector.load %arg6[%c48, %c0_12] : memref<656x640xbf16, #tpu.memory_space<vmem>>, vector<16x640xbf16>
    tpu.vector_store %arg6[%c48, %c0_12], %10 {strides = array<i32>} : memref<656x640xbf16, #tpu.memory_space<vmem>>, vector<16x640xbf16>,
    %c0_13 = arith.constant 0 : index
    %c0_14 = arith.constant 0 : index
    %c4 = arith.constant 4 : index
    %12 = vector.load %arg1[%c0_13, %c0_14, %c4] : memref<1x16x679xbf16, #tpu.memory_space<vmem>>, vector<1x16x640xbf16>
    %13 = vector.shape_cast %12 : vector<1x16x640xbf16> to vector<16x640xbf16>
    %c64 = arith.constant 64 : index
    %c0_15 = arith.constant 0 : index
    %14 = vector.load %arg6[%c64, %c0_15] : memref<656x640xbf16, #tpu.memory_space<vmem>>, vector<16x640xbf16>
    tpu.vector_store %arg6[%c64, %c0_15], %13 {strides = array<i32>} : memref<656x640xbf16, #tpu.memory_space<vmem>>, vector<16x640xbf16>,
    %c0_16 = arith.constant 0 : index
    %c0_17 = arith.constant 0 : index
    %c5 = arith.constant 5 : index
    %15 = vector.load %arg1[%c0_16, %c0_17, %c5] : memref<1x16x679xbf16, #tpu.memory_space<vmem>>, vector<1x16x640xbf16>
    %16 = vector.shape_cast %15 : vector<1x16x640xbf16> to vector<16x640xbf16>
    %c80 = arith.constant 80 : index
    %c0_18 = arith.constant 0 : index
    %17 = vector.load %arg6[%c80, %c0_18] : memref<656x640xbf16, #tpu.memory_space<vmem>>, vector<16x640xbf16>
    tpu.vector_store %arg6[%c80, %c0_18], %16 {strides = array<i32>} : memref<656x640xbf16, #tpu.memory_space<vmem>>, vector<16x640xbf16>,
    %c0_19 = arith.constant 0 : index
    %c0_20 = arith.constant 0 : index
    %c6 = arith.constant 6 : index
    %18 = vector.load %arg1[%c0_19, %c0_20, %c6] : memref<1x16x679xbf16, #tpu.memory_space<vmem>>, vector<1x16x640xbf16>
    %19 = vector.shape_cast %18 : vector<1x16x640xbf16> to vector<16x640xbf16>
    %c96 = arith.constant 96 : index
    %c0_21 = arith.constant 0 : index
    %20 = vector.load %arg6[%c96, %c0_21] : memref<656x640xbf16, #tpu.memory_space<vmem>>, vector<16x640xbf16>
    tpu.vector_store %arg6[%c96, %c0_21], %19 {strides = array<i32>} : memref<656x640xbf16, #tpu.memory_space<vmem>>, vector<16x640xbf16>,
    %c0_22 = arith.constant 0 : index
    %c0_23 = arith.constant 0 : index
    %c7 = arith.constant 7 : index
    %21 = vector.load %arg1[%c0_22, %c0_23, %c7] : memref<1x16x679xbf16, #tpu.memory_space<vmem>>, vector<1x16x640xbf16>
    %22 = vector.shape_cast %21 : vector<1x16x640xbf16> to vector<16x640xbf16>
    %c112 = arith.constant 112 : index
    %c0_24 = arith.constant 0 : index
    %23 = vector.load %arg6[%c112, %c0_24] : memref<656x640xbf16, #tpu.memory_space<vmem>>, vector<16x640xbf16>
    tpu.vector_store %arg6[%c112, %c0_24], %22 {strides = array<i32>} : memref<656x640xbf16, #tpu.memory_space<vmem>>, vector<16x640xbf16>,
    %c0_25 = arith.constant 0 : index
    %c0_26 = arith.constant 0 : index
    %c8 = arith.constant 8 : index
    %24 = vector.load %arg1[%c0_25, %c0_26, %c8] : memref<1x16x679xbf16, #tpu.memory_space<vmem>>, vector<1x16x640xbf16>
    %25 = vector.shape_cast %24 : vector<1x16x640xbf16> to vector<16x640xbf16>
    %c128 = arith.constant 128 : index
    %c0_27 = arith.constant 0 : index
    %26 = vector.load %arg6[%c128, %c0_27] : memref<656x640xbf16, #tpu.memory_space<vmem>>, vector<16x640xbf16>
    tpu.vector_store %arg6[%c128, %c0_27], %25 {strides = array<i32>} : memref<656x640xbf16, #tpu.memory_space<vmem>>, vector<16x640xbf16>,
    %c0_28 = arith.constant 0 : index
    %c0_29 = arith.constant 0 : index
    %c9 = arith.constant 9 : index
    %27 = vector.load %arg1[%c0_28, %c0_29, %c9] : memref<1x16x679xbf16, #tpu.memory_space<vmem>>, vector<1x16x640xbf16>
    %28 = vector.shape_cast %27 : vector<1x16x640xbf16> to vector<16x640xbf16>
    %c144 = arith.constant 144 : index
    %c0_30 = arith.constant 0 : index
    %29 = vector.load %arg6[%c144, %c0_30] : memref<656x640xbf16, #tpu.memory_space<vmem>>, vector<16x640xbf16>
    tpu.vector_store %arg6[%c144, %c0_30], %28 {strides = array<i32>} : memref<656x640xbf16, #tpu.memory_space<vmem>>, vector<16x640xbf16>,
    %c0_31 = arith.constant 0 : index
    %c0_32 = arith.constant 0 : index
    %c10 = arith.constant 10 : index
    %30 = vector.load %arg1[%c0_31, %c0_32, %c10] : memref<1x16x679xbf16, #tpu.memory_space<vmem>>, vector<1x16x640xbf16>
    %31 = vector.shape_cast %30 : vector<1x16x640xbf16> to vector<16x640xbf16>
    %c160 = arith.constant 160 : index
    %c0_33 = arith.constant 0 : index
    %32 = vector.load %arg6[%c160, %c0_33] : memref<656x640xbf16, #tpu.memory_space<vmem>>, vector<16x640xbf16>
    tpu.vector_store %arg6[%c160, %c0_33], %31 {strides = array<i32>} : memref<656x640xbf16, #tpu.memory_space<vmem>>, vector<16x640xbf16>,
    %c0_34 = arith.constant 0 : index
    %c0_35 = arith.constant 0 : index
    %c11 = arith.constant 11 : index
    %33 = vector.load %arg1[%c0_34, %c0_35, %c11] : memref<1x16x679xbf16, #tpu.memory_space<vmem>>, vector<1x16x640xbf16>
    %34 = vector.shape_cast %33 : vector<1x16x640xbf16> to vector<16x640xbf16>
    %c176 = arith.constant 176 : index
    %c0_36 = arith.constant 0 : index
    %35 = vector.load %arg6[%c176, %c0_36] : memref<656x640xbf16, #tpu.memory_space<vmem>>, vector<16x640xbf16>
    tpu.vector_store %arg6[%c176, %c0_36], %34 {strides = array<i32>} : memref<656x640xbf16, #tpu.memory_space<vmem>>, vector<16x640xbf16>,
    %c0_37 = arith.constant 0 : index
    %c0_38 = arith.constant 0 : index
    %c12 = arith.constant 12 : index
    %36 = vector.load %arg1[%c0_37, %c0_38, %c12] : memref<1x16x679xbf16, #tpu.memory_space<vmem>>, vector<1x16x640xbf16>
    %37 = vector.shape_cast %36 : vector<1x16x640xbf16> to vector<16x640xbf16>
    %c192 = arith.constant 192 : index
    %c0_39 = arith.constant 0 : index
    %38 = vector.load %arg6[%c192, %c0_39] : memref<656x640xbf16, #tpu.memory_space<vmem>>, vector<16x640xbf16>
    tpu.vector_store %arg6[%c192, %c0_39], %37 {strides = array<i32>} : memref<656x640xbf16, #tpu.memory_space<vmem>>, vector<16x640xbf16>,
    %c0_40 = arith.constant 0 : index
    %c0_41 = arith.constant 0 : index
    %c13 = arith.constant 13 : index
    %39 = vector.load %arg1[%c0_40, %c0_41, %c13] : memref<1x16x679xbf16, #tpu.memory_space<vmem>>, vector<1x16x640xbf16>
    %40 = vector.shape_cast %39 : vector<1x16x640xbf16> to vector<16x640xbf16>
    %c208 = arith.constant 208 : index
    %c0_42 = arith.constant 0 : index
    %41 = vector.load %arg6[%c208, %c0_42] : memref<656x640xbf16, #tpu.memory_space<vmem>>, vector<16x640xbf16>
    tpu.vector_store %arg6[%c208, %c0_42], %40 {strides = array<i32>} : memref<656x640xbf16, #tpu.memory_space<vmem>>, vector<16x640xbf16>,
    %c0_43 = arith.constant 0 : index
    %c0_44 = arith.constant 0 : index
    %c14 = arith.constant 14 : index
    %42 = vector.load %arg1[%c0_43, %c0_44, %c14] : memref<1x16x679xbf16, #tpu.memory_space<vmem>>, vector<1x16x640xbf16>
    %43 = vector.shape_cast %42 : vector<1x16x640xbf16> to vector<16x640xbf16>
    %c224 = arith.constant 224 : index
    %c0_45 = arith.constant 0 : index
    %44 = vector.load %arg6[%c224, %c0_45] : memref<656x640xbf16, #tpu.memory_space<vmem>>, vector<16x640xbf16>
    tpu.vector_store %arg6[%c224, %c0_45], %43 {strides = array<i32>} : memref<656x640xbf16, #tpu.memory_space<vmem>>, vector<16x640xbf16>,
    %c0_46 = arith.constant 0 : index
    %c0_47 = arith.constant 0 : index
    %c15 = arith.constant 15 : index
    %45 = vector.load %arg1[%c0_46, %c0_47, %c15] : memref<1x16x679xbf16, #tpu.memory_space<vmem>>, vector<1x16x640xbf16>
    %46 = vector.shape_cast %45 : vector<1x16x640xbf16> to vector<16x640xbf16>
    %c240 = arith.constant 240 : index
    %c0_48 = arith.constant 0 : index
    %47 = vector.load %arg6[%c240, %c0_48] : memref<656x640xbf16, #tpu.memory_space<vmem>>, vector<16x640xbf16>
    tpu.vector_store %arg6[%c240, %c0_48], %46 {strides = array<i32>} : memref<656x640xbf16, #tpu.memory_space<vmem>>, vector<16x640xbf16>,
    %c0_49 = arith.constant 0 : index
    %c0_50 = arith.constant 0 : index
    %c16_51 = arith.constant 16 : index
    %48 = vector.load %arg1[%c0_49, %c0_50, %c16_51] : memref<1x16x679xbf16, #tpu.memory_space<vmem>>, vector<1x16x640xbf16>
    %49 = vector.shape_cast %48 : vector<1x16x640xbf16> to vector<16x640xbf16>
    %c256 = arith.constant 256 : index
    %c0_52 = arith.constant 0 : index
    %50 = vector.load %arg6[%c256, %c0_52] : memref<656x640xbf16, #tpu.memory_space<vmem>>, vector<16x640xbf16>
    tpu.vector_store %arg6[%c256, %c0_52], %49 {strides = array<i32>} : memref<656x640xbf16, #tpu.memory_space<vmem>>, vector<16x640xbf16>,
    %c0_53 = arith.constant 0 : index
    %c0_54 = arith.constant 0 : index
    %c17 = arith.constant 17 : index
    %51 = vector.load %arg1[%c0_53, %c0_54, %c17] : memref<1x16x679xbf16, #tpu.memory_space<vmem>>, vector<1x16x640xbf16>
    %52 = vector.shape_cast %51 : vector<1x16x640xbf16> to vector<16x640xbf16>
    %c272 = arith.constant 272 : index
    %c0_55 = arith.constant 0 : index
    %53 = vector.load %arg6[%c272, %c0_55] : memref<656x640xbf16, #tpu.memory_space<vmem>>, vector<16x640xbf16>
    tpu.vector_store %arg6[%c272, %c0_55], %52 {strides = array<i32>} : memref<656x640xbf16, #tpu.memory_space<vmem>>, vector<16x640xbf16>,
    %c0_56 = arith.constant 0 : index
    %c0_57 = arith.constant 0 : index
    %c18 = arith.constant 18 : index
    %54 = vector.load %arg1[%c0_56, %c0_57, %c18] : memref<1x16x679xbf16, #tpu.memory_space<vmem>>, vector<1x16x640xbf16>
    %55 = vector.shape_cast %54 : vector<1x16x640xbf16> to vector<16x640xbf16>
    %c288 = arith.constant 288 : index
    %c0_58 = arith.constant 0 : index
    %56 = vector.load %arg6[%c288, %c0_58] : memref<656x640xbf16, #tpu.memory_space<vmem>>, vector<16x640xbf16>
    tpu.vector_store %arg6[%c288, %c0_58], %55 {strides = array<i32>} : memref<656x640xbf16, #tpu.memory_space<vmem>>, vector<16x640xbf16>,
    %c0_59 = arith.constant 0 : index
    %c0_60 = arith.constant 0 : index
    %c19 = arith.constant 19 : index
    %57 = vector.load %arg1[%c0_59, %c0_60, %c19] : memref<1x16x679xbf16, #tpu.memory_space<vmem>>, vector<1x16x640xbf16>
    %58 = vector.shape_cast %57 : vector<1x16x640xbf16> to vector<16x640xbf16>
    %c304 = arith.constant 304 : index
    %c0_61 = arith.constant 0 : index
    %59 = vector.load %arg6[%c304, %c0_61] : memref<656x640xbf16, #tpu.memory_space<vmem>>, vector<16x640xbf16>
    tpu.vector_store %arg6[%c304, %c0_61], %58 {strides = array<i32>} : memref<656x640xbf16, #tpu.memory_space<vmem>>, vector<16x640xbf16>,
    %c0_62 = arith.constant 0 : index
    %c0_63 = arith.constant 0 : index
    %c20 = arith.constant 20 : index
    %60 = vector.load %arg1[%c0_62, %c0_63, %c20] : memref<1x16x679xbf16, #tpu.memory_space<vmem>>, vector<1x16x640xbf16>
    %61 = vector.shape_cast %60 : vector<1x16x640xbf16> to vector<16x640xbf16>
    %c320 = arith.constant 320 : index
    %c0_64 = arith.constant 0 : index
    %62 = vector.load %arg6[%c320, %c0_64] : memref<656x640xbf16, #tpu.memory_space<vmem>>, vector<16x640xbf16>
    tpu.vector_store %arg6[%c320, %c0_64], %61 {strides = array<i32>} : memref<656x640xbf16, #tpu.memory_space<vmem>>, vector<16x640xbf16>,
    %c0_65 = arith.constant 0 : index
    %c0_66 = arith.constant 0 : index
    %c21 = arith.constant 21 : index
    %63 = vector.load %arg1[%c0_65, %c0_66, %c21] : memref<1x16x679xbf16, #tpu.memory_space<vmem>>, vector<1x16x640xbf16>
    %64 = vector.shape_cast %63 : vector<1x16x640xbf16> to vector<16x640xbf16>
    %c336 = arith.constant 336 : index
    %c0_67 = arith.constant 0 : index
    %65 = vector.load %arg6[%c336, %c0_67] : memref<656x640xbf16, #tpu.memory_space<vmem>>, vector<16x640xbf16>
    tpu.vector_store %arg6[%c336, %c0_67], %64 {strides = array<i32>} : memref<656x640xbf16, #tpu.memory_space<vmem>>, vector<16x640xbf16>,
    %c0_68 = arith.constant 0 : index
    %c0_69 = arith.constant 0 : index
    %c22 = arith.constant 22 : index
    %66 = vector.load %arg1[%c0_68, %c0_69, %c22] : memref<1x16x679xbf16, #tpu.memory_space<vmem>>, vector<1x16x640xbf16>
    %67 = vector.shape_cast %66 : vector<1x16x640xbf16> to vector<16x640xbf16>
    %c352 = arith.constant 352 : index
    %c0_70 = arith.constant 0 : index
    %68 = vector.load %arg6[%c352, %c0_70] : memref<656x640xbf16, #tpu.memory_space<vmem>>, vector<16x640xbf16>
    tpu.vector_store %arg6[%c352, %c0_70], %67 {strides = array<i32>} : memref<656x640xbf16, #tpu.memory_space<vmem>>, vector<16x640xbf16>,
    %c0_71 = arith.constant 0 : index
    %c0_72 = arith.constant 0 : index
    %c23 = arith.constant 23 : index
    %69 = vector.load %arg1[%c0_71, %c0_72, %c23] : memref<1x16x679xbf16, #tpu.memory_space<vmem>>, vector<1x16x640xbf16>
    %70 = vector.shape_cast %69 : vector<1x16x640xbf16> to vector<16x640xbf16>
    %c368 = arith.constant 368 : index
    %c0_73 = arith.constant 0 : index
    %71 = vector.load %arg6[%c368, %c0_73] : memref<656x640xbf16, #tpu.memory_space<vmem>>, vector<16x640xbf16>
    tpu.vector_store %arg6[%c368, %c0_73], %70 {strides = array<i32>} : memref<656x640xbf16, #tpu.memory_space<vmem>>, vector<16x640xbf16>,
    %c0_74 = arith.constant 0 : index
    %c0_75 = arith.constant 0 : index
    %c24 = arith.constant 24 : index
    %72 = vector.load %arg1[%c0_74, %c0_75, %c24] : memref<1x16x679xbf16, #tpu.memory_space<vmem>>, vector<1x16x640xbf16>
    %73 = vector.shape_cast %72 : vector<1x16x640xbf16> to vector<16x640xbf16>
    %c384 = arith.constant 384 : index
    %c0_76 = arith.constant 0 : index
    %74 = vector.load %arg6[%c384, %c0_76] : memref<656x640xbf16, #tpu.memory_space<vmem>>, vector<16x640xbf16>
    tpu.vector_store %arg6[%c384, %c0_76], %73 {strides = array<i32>} : memref<656x640xbf16, #tpu.memory_space<vmem>>, vector<16x640xbf16>,
    %c0_77 = arith.constant 0 : index
    %c0_78 = arith.constant 0 : index
    %c25 = arith.constant 25 : index
    %75 = vector.load %arg1[%c0_77, %c0_78, %c25] : memref<1x16x679xbf16, #tpu.memory_space<vmem>>, vector<1x16x640xbf16>
    %76 = vector.shape_cast %75 : vector<1x16x640xbf16> to vector<16x640xbf16>
    %c400 = arith.constant 400 : index
    %c0_79 = arith.constant 0 : index
    %77 = vector.load %arg6[%c400, %c0_79] : memref<656x640xbf16, #tpu.memory_space<vmem>>, vector<16x640xbf16>
    tpu.vector_store %arg6[%c400, %c0_79], %76 {strides = array<i32>} : memref<656x640xbf16, #tpu.memory_space<vmem>>, vector<16x640xbf16>,
    %c0_80 = arith.constant 0 : index
    %c0_81 = arith.constant 0 : index
    %c26 = arith.constant 26 : index
    %78 = vector.load %arg1[%c0_80, %c0_81, %c26] : memref<1x16x679xbf16, #tpu.memory_space<vmem>>, vector<1x16x640xbf16>
    %79 = vector.shape_cast %78 : vector<1x16x640xbf16> to vector<16x640xbf16>
    %c416 = arith.constant 416 : index
    %c0_82 = arith.constant 0 : index
    %80 = vector.load %arg6[%c416, %c0_82] : memref<656x640xbf16, #tpu.memory_space<vmem>>, vector<16x640xbf16>
    tpu.vector_store %arg6[%c416, %c0_82], %79 {strides = array<i32>} : memref<656x640xbf16, #tpu.memory_space<vmem>>, vector<16x640xbf16>,
    %c0_83 = arith.constant 0 : index
    %c0_84 = arith.constant 0 : index
    %c27 = arith.constant 27 : index
    %81 = vector.load %arg1[%c0_83, %c0_84, %c27] : memref<1x16x679xbf16, #tpu.memory_space<vmem>>, vector<1x16x640xbf16>
    %82 = vector.shape_cast %81 : vector<1x16x640xbf16> to vector<16x640xbf16>
    %c432 = arith.constant 432 : index
    %c0_85 = arith.constant 0 : index
    %83 = vector.load %arg6[%c432, %c0_85] : memref<656x640xbf16, #tpu.memory_space<vmem>>, vector<16x640xbf16>
    tpu.vector_store %arg6[%c432, %c0_85], %82 {strides = array<i32>} : memref<656x640xbf16, #tpu.memory_space<vmem>>, vector<16x640xbf16>,
    %c0_86 = arith.constant 0 : index
    %c0_87 = arith.constant 0 : index
    %c28 = arith.constant 28 : index
    %84 = vector.load %arg1[%c0_86, %c0_87, %c28] : memref<1x16x679xbf16, #tpu.memory_space<vmem>>, vector<1x16x640xbf16>
    %85 = vector.shape_cast %84 : vector<1x16x640xbf16> to vector<16x640xbf16>
    %c448 = arith.constant 448 : index
    %c0_88 = arith.constant 0 : index
    %86 = vector.load %arg6[%c448, %c0_88] : memref<656x640xbf16, #tpu.memory_space<vmem>>, vector<16x640xbf16>
    tpu.vector_store %arg6[%c448, %c0_88], %85 {strides = array<i32>} : memref<656x640xbf16, #tpu.memory_space<vmem>>, vector<16x640xbf16>,
    %c0_89 = arith.constant 0 : index
    %c0_90 = arith.constant 0 : index
    %c29 = arith.constant 29 : index
    %87 = vector.load %arg1[%c0_89, %c0_90, %c29] : memref<1x16x679xbf16, #tpu.memory_space<vmem>>, vector<1x16x640xbf16>
    %88 = vector.shape_cast %87 : vector<1x16x640xbf16> to vector<16x640xbf16>
    %c464 = arith.constant 464 : index
    %c0_91 = arith.constant 0 : index
    %89 = vector.load %arg6[%c464, %c0_91] : memref<656x640xbf16, #tpu.memory_space<vmem>>, vector<16x640xbf16>
    tpu.vector_store %arg6[%c464, %c0_91], %88 {strides = array<i32>} : memref<656x640xbf16, #tpu.memory_space<vmem>>, vector<16x640xbf16>,
    %c0_92 = arith.constant 0 : index
    %c0_93 = arith.constant 0 : index
    %c30 = arith.constant 30 : index
    %90 = vector.load %arg1[%c0_92, %c0_93, %c30] : memref<1x16x679xbf16, #tpu.memory_space<vmem>>, vector<1x16x640xbf16>
    %91 = vector.shape_cast %90 : vector<1x16x640xbf16> to vector<16x640xbf16>
    %c480 = arith.constant 480 : index
    %c0_94 = arith.constant 0 : index
    %92 = vector.load %arg6[%c480, %c0_94] : memref<656x640xbf16, #tpu.memory_space<vmem>>, vector<16x640xbf16>
    tpu.vector_store %arg6[%c480, %c0_94], %91 {strides = array<i32>} : memref<656x640xbf16, #tpu.memory_space<vmem>>, vector<16x640xbf16>,
    %c0_95 = arith.constant 0 : index
    %c0_96 = arith.constant 0 : index
    %c31 = arith.constant 31 : index
    %93 = vector.load %arg1[%c0_95, %c0_96, %c31] : memref<1x16x679xbf16, #tpu.memory_space<vmem>>, vector<1x16x640xbf16>
    %94 = vector.shape_cast %93 : vector<1x16x640xbf16> to vector<16x640xbf16>
    %c496 = arith.constant 496 : index
    %c0_97 = arith.constant 0 : index
    %95 = vector.load %arg6[%c496, %c0_97] : memref<656x640xbf16, #tpu.memory_space<vmem>>, vector<16x640xbf16>
    tpu.vector_store %arg6[%c496, %c0_97], %94 {strides = array<i32>} : memref<656x640xbf16, #tpu.memory_space<vmem>>, vector<16x640xbf16>,
    %c0_98 = arith.constant 0 : index
    %c0_99 = arith.constant 0 : index
    %c32_100 = arith.constant 32 : index
    %96 = vector.load %arg1[%c0_98, %c0_99, %c32_100] : memref<1x16x679xbf16, #tpu.memory_space<vmem>>, vector<1x16x640xbf16>
    %97 = vector.shape_cast %96 : vector<1x16x640xbf16> to vector<16x640xbf16>
    %c512 = arith.constant 512 : index
    %c0_101 = arith.constant 0 : index
    %98 = vector.load %arg6[%c512, %c0_101] : memref<656x640xbf16, #tpu.memory_space<vmem>>, vector<16x640xbf16>
    tpu.vector_store %arg6[%c512, %c0_101], %97 {strides = array<i32>} : memref<656x640xbf16, #tpu.memory_space<vmem>>, vector<16x640xbf16>,
    %c0_102 = arith.constant 0 : index
    %c0_103 = arith.constant 0 : index
    %c33 = arith.constant 33 : index
    %99 = vector.load %arg1[%c0_102, %c0_103, %c33] : memref<1x16x679xbf16, #tpu.memory_space<vmem>>, vector<1x16x640xbf16>
    %100 = vector.shape_cast %99 : vector<1x16x640xbf16> to vector<16x640xbf16>
    %c528 = arith.constant 528 : index
    %c0_104 = arith.constant 0 : index
    %101 = vector.load %arg6[%c528, %c0_104] : memref<656x640xbf16, #tpu.memory_space<vmem>>, vector<16x640xbf16>
    tpu.vector_store %arg6[%c528, %c0_104], %100 {strides = array<i32>} : memref<656x640xbf16, #tpu.memory_space<vmem>>, vector<16x640xbf16>,
    %c0_105 = arith.constant 0 : index
    %c0_106 = arith.constant 0 : index
    %c34 = arith.constant 34 : index
    %102 = vector.load %arg1[%c0_105, %c0_106, %c34] : memref<1x16x679xbf16, #tpu.memory_space<vmem>>, vector<1x16x640xbf16>
    %103 = vector.shape_cast %102 : vector<1x16x640xbf16> to vector<16x640xbf16>
    %c544 = arith.constant 544 : index
    %c0_107 = arith.constant 0 : index
    %104 = vector.load %arg6[%c544, %c0_107] : memref<656x640xbf16, #tpu.memory_space<vmem>>, vector<16x640xbf16>
    tpu.vector_store %arg6[%c544, %c0_107], %103 {strides = array<i32>} : memref<656x640xbf16, #tpu.memory_space<vmem>>, vector<16x640xbf16>,
    %c0_108 = arith.constant 0 : index
    %c0_109 = arith.constant 0 : index
    %c35 = arith.constant 35 : index
    %105 = vector.load %arg1[%c0_108, %c0_109, %c35] : memref<1x16x679xbf16, #tpu.memory_space<vmem>>, vector<1x16x640xbf16>
    %106 = vector.shape_cast %105 : vector<1x16x640xbf16> to vector<16x640xbf16>
    %c560 = arith.constant 560 : index
    %c0_110 = arith.constant 0 : index
    %107 = vector.load %arg6[%c560, %c0_110] : memref<656x640xbf16, #tpu.memory_space<vmem>>, vector<16x640xbf16>
    tpu.vector_store %arg6[%c560, %c0_110], %106 {strides = array<i32>} : memref<656x640xbf16, #tpu.memory_space<vmem>>, vector<16x640xbf16>,
    %c0_111 = arith.constant 0 : index
    %c0_112 = arith.constant 0 : index
    %c36 = arith.constant 36 : index
    %108 = vector.load %arg1[%c0_111, %c0_112, %c36] : memref<1x16x679xbf16, #tpu.memory_space<vmem>>, vector<1x16x640xbf16>
    %109 = vector.shape_cast %108 : vector<1x16x640xbf16> to vector<16x640xbf16>
    %c576 = arith.constant 576 : index
    %c0_113 = arith.constant 0 : index
    %110 = vector.load %arg6[%c576, %c0_113] : memref<656x640xbf16, #tpu.memory_space<vmem>>, vector<16x640xbf16>
    tpu.vector_store %arg6[%c576, %c0_113], %109 {strides = array<i32>} : memref<656x640xbf16, #tpu.memory_space<vmem>>, vector<16x640xbf16>,
    %c0_114 = arith.constant 0 : index
    %c0_115 = arith.constant 0 : index
    %c37 = arith.constant 37 : index
    %111 = vector.load %arg1[%c0_114, %c0_115, %c37] : memref<1x16x679xbf16, #tpu.memory_space<vmem>>, vector<1x16x640xbf16>
    %112 = vector.shape_cast %111 : vector<1x16x640xbf16> to vector<16x640xbf16>
    %c592 = arith.constant 592 : index
    %c0_116 = arith.constant 0 : index
    %113 = vector.load %arg6[%c592, %c0_116] : memref<656x640xbf16, #tpu.memory_space<vmem>>, vector<16x640xbf16>
    tpu.vector_store %arg6[%c592, %c0_116], %112 {strides = array<i32>} : memref<656x640xbf16, #tpu.memory_space<vmem>>, vector<16x640xbf16>,
    %c0_117 = arith.constant 0 : index
    %c0_118 = arith.constant 0 : index
    %c38 = arith.constant 38 : index
    %114 = vector.load %arg1[%c0_117, %c0_118, %c38] : memref<1x16x679xbf16, #tpu.memory_space<vmem>>, vector<1x16x640xbf16>
    %115 = vector.shape_cast %114 : vector<1x16x640xbf16> to vector<16x640xbf16>
    %c608 = arith.constant 608 : index
    %c0_119 = arith.constant 0 : index
    %116 = vector.load %arg6[%c608, %c0_119] : memref<656x640xbf16, #tpu.memory_space<vmem>>, vector<16x640xbf16>
    tpu.vector_store %arg6[%c608, %c0_119], %115 {strides = array<i32>} : memref<656x640xbf16, #tpu.memory_space<vmem>>, vector<16x640xbf16>,
    %c0_120 = arith.constant 0 : index
    %c0_121 = arith.constant 0 : index
    %c39 = arith.constant 39 : index
    %117 = vector.load %arg1[%c0_120, %c0_121, %c39] : memref<1x16x679xbf16, #tpu.memory_space<vmem>>, vector<1x16x640xbf16>
    %118 = vector.shape_cast %117 : vector<1x16x640xbf16> to vector<16x640xbf16>
    %c624 = arith.constant 624 : index
    %c0_122 = arith.constant 0 : index
    %119 = vector.load %arg6[%c624, %c0_122] : memref<656x640xbf16, #tpu.memory_space<vmem>>, vector<16x640xbf16>
    tpu.vector_store %arg6[%c624, %c0_122], %118 {strides = array<i32>} : memref<656x640xbf16, #tpu.memory_space<vmem>>, vector<16x640xbf16>,
    %c0_123 = arith.constant 0 : index
    %c0_124 = arith.constant 0 : index
    %c0_125 = arith.constant 0 : index
    %120 = vector.load %arg3[%c0_123, %c0_124, %c0_125] : memref<1x3x640xf32, #tpu.memory_space<vmem>>, vector<1x3x640xf32>
    %121 = vector.shape_cast %120 : vector<1x3x640xf32> to vector<3x640xf32>
    %122 = vector.extract_strided_slice %121 {offsets = [1, 0], sizes = [1, 640], strides = [1, 1]} : vector<3x640xf32> to vector<1x640xf32>
    %cst = arith.constant 5.000000e-01 : f32
    %123 = vector.broadcast %cst : f32 to vector<1x640xf32>
    %124 = arith.cmpf ogt, %122, %123 : vector<1x640xf32>
    %125 = vector.extract_strided_slice %121 {offsets = [2, 0], sizes = [1, 640], strides = [1, 1]} : vector<3x640xf32> to vector<1x640xf32>
    %cst_126 = arith.constant 5.000000e-01 : f32
    %126 = vector.broadcast %cst_126 : f32 to vector<1x640xf32>
    %127 = arith.cmpf ogt, %125, %126 : vector<1x640xf32>
    %c0_127 = arith.constant 0 : index
    %c0_128 = arith.constant 0 : index
    %c19_129 = arith.constant 19 : index
    %128 = vector.load %arg1[%c0_127, %c0_128, %c19_129] : memref<1x16x679xbf16, #tpu.memory_space<vmem>>, vector<1x16x640xbf16>
    %129 = vector.shape_cast %128 : vector<1x16x640xbf16> to vector<16x640xbf16>
    %c0_130 = arith.constant 0 : index
    %c0_131 = arith.constant 0 : index
    %c18_132 = arith.constant 18 : index
    %130 = vector.load %arg1[%c0_130, %c0_131, %c18_132] : memref<1x16x679xbf16, #tpu.memory_space<vmem>>, vector<1x16x640xbf16>
    %131 = vector.shape_cast %130 : vector<1x16x640xbf16> to vector<16x640xbf16>
    %c0_133 = arith.constant 0 : index
    %c0_134 = arith.constant 0 : index
    %c20_135 = arith.constant 20 : index
    %132 = vector.load %arg1[%c0_133, %c0_134, %c20_135] : memref<1x16x679xbf16, #tpu.memory_space<vmem>>, vector<1x16x640xbf16>
    %133 = vector.shape_cast %132 : vector<1x16x640xbf16> to vector<16x640xbf16>
    %134 = vector.shape_cast %124 : vector<1x640xi1> to vector<1x640xi1>
    %135 = vector.broadcast %134 : vector<1x640xi1> to vector<16x640xi1>
    %136 = arith.select %135, %131, %129 : vector<16x640xi1>, vector<16x640xbf16>
    %137 = vector.shape_cast %127 : vector<1x640xi1> to vector<1x640xi1>
    %138 = vector.broadcast %137 : vector<1x640xi1> to vector<16x640xi1>
    %139 = arith.select %138, %133, %129 : vector<16x640xi1>, vector<16x640xbf16>
    %140 = arith.maximumf %136, %129 : vector<16x640xbf16>
    %141 = arith.maximumf %140, %139 : vector<16x640xbf16>
    %c640 = arith.constant 640 : index
    %c0_136 = arith.constant 0 : index
    %142 = vector.load %arg6[%c640, %c0_136] : memref<656x640xbf16, #tpu.memory_space<vmem>>, vector<16x640xbf16>
    tpu.vector_store %arg6[%c640, %c0_136], %141 {strides = array<i32>} : memref<656x640xbf16, #tpu.memory_space<vmem>>, vector<16x640xbf16>,
    %c0_137 = arith.constant 0 : index
    %c0_138 = arith.constant 0 : index
    %143 = vector.load %arg2[%c0_137, %c0_138] : memref<128x656xbf16, #tpu.memory_space<vmem>>, vector<128x656xbf16>
    %c0_139 = arith.constant 0 : index
    %c0_140 = arith.constant 0 : index
    %144 = vector.load %arg6[%c0_139, %c0_140] : memref<656x640xbf16, #tpu.memory_space<vmem>>, vector<656x640xbf16>
    %cst_141 = arith.constant dense<0.000000e+00> : vector<128x640xf32>
    %145 = tpu.matmul %143, %144, %cst_141 {dimension_numbers = #tpu.dot_dimension_numbers<[1], [0], [0], [1], [0, 0, 1, 1], [], []>} : vector<128x656xbf16>, vector<656x640xbf16>, vector<128x640xf32> -> vector<128x640xf32>
    %146 = vector.extract_strided_slice %121 {offsets = [0, 0], sizes = [1, 640], strides = [1, 1]} : vector<3x640xf32> to vector<1x640xf32>
    %cst_142 = arith.constant 5.000000e-01 : f32
    %147 = vector.broadcast %cst_142 : f32 to vector<1x640xf32>
    %148 = arith.cmpf ogt, %146, %147 : vector<1x640xf32>
    %149 = vector.extract_strided_slice %121 {offsets = [0, 0], sizes = [1, 640], strides = [1, 1]} : vector<3x640xf32> to vector<1x640xf32>
    %cst_143 = arith.constant dense<0.000000e+00> : vector<1xf32>
    %150 = vector.multi_reduction <add>, %149, %cst_143 [1] : vector<1x640xf32> to vector<1xf32>
    %151 = vector.shape_cast %150 : vector<1xf32> to vector<1x1xf32>
    %cst_144 = arith.constant 0.000000e+00 : f32
    %152 = vector.shape_cast %148 : vector<1x640xi1> to vector<1x640xi1>
    %153 = vector.broadcast %152 : vector<1x640xi1> to vector<128x640xi1>
    %154 = vector.broadcast %cst_144 : f32 to vector<128x640xf32>
    %155 = arith.select %153, %145, %154 : vector<128x640xi1>, vector<128x640xf32>
    %cst_145 = arith.constant dense<0.000000e+00> : vector<128xf32>
    %156 = vector.multi_reduction <add>, %155, %cst_145 [1] : vector<128x640xf32> to vector<128xf32>
    %157 = vector.shape_cast %156 : vector<128xf32> to vector<128x1xf32>
    %158 = vector.broadcast %151 : vector<1x1xf32> to vector<128x1xf32>
    %159 = arith.divf %157, %158 : vector<128x1xf32>
    %160 = vector.broadcast %159 : vector<128x1xf32> to vector<128x640xf32>
    %161 = arith.subf %145, %160 : vector<128x640xf32>
    %cst_146 = arith.constant 0.000000e+00 : f32
    %162 = vector.shape_cast %148 : vector<1x640xi1> to vector<1x640xi1>
    %163 = vector.broadcast %162 : vector<1x640xi1> to vector<128x640xi1>
    %164 = vector.broadcast %cst_146 : f32 to vector<128x640xf32>
    %165 = arith.select %163, %161, %164 : vector<128x640xi1>, vector<128x640xf32>
    %c0_147 = arith.constant 0 : index
    %c0_148 = arith.constant 0 : index
    %c0_149 = arith.constant 0 : index
    %166 = vector.load %arg5[%c0_147, %c0_148, %c0_149] : memref<1x128x2xf32, #tpu.memory_space<vmem>>, vector<1x128x1xf32>
    %167 = vector.shape_cast %166 : vector<1x128x1xf32> to vector<128x1xf32>
    %168 = vector.shape_cast %157 : vector<128x1xf32> to vector<1x128x1xf32>
    tpu.vector_store %arg5[%c0_147, %c0_148, %c0_149], %168 {strides = array<i32>} : memref<1x128x2xf32, #tpu.memory_space<vmem>>, vector<1x128x1xf32>,
    %169 = arith.mulf %165, %165 : vector<128x640xf32>
    %cst_150 = arith.constant dense<0.000000e+00> : vector<128xf32>
    %170 = vector.multi_reduction <add>, %169, %cst_150 [1] : vector<128x640xf32> to vector<128xf32>
    %171 = vector.shape_cast %170 : vector<128xf32> to vector<128x1xf32>
    %c0_151 = arith.constant 0 : index
    %c0_152 = arith.constant 0 : index
    %c1_153 = arith.constant 1 : index
    %172 = vector.load %arg5[%c0_151, %c0_152, %c1_153] : memref<1x128x2xf32, #tpu.memory_space<vmem>>, vector<1x128x1xf32>
    %173 = vector.shape_cast %172 : vector<1x128x1xf32> to vector<128x1xf32>
    %174 = vector.shape_cast %171 : vector<128x1xf32> to vector<1x128x1xf32>
    tpu.vector_store %arg5[%c0_151, %c0_152, %c1_153], %174 {strides = array<i32>} : memref<1x128x2xf32, #tpu.memory_space<vmem>>, vector<1x128x1xf32>,
    %175 = vector.extract_strided_slice %145 {offsets = [0, 19], sizes = [128, 64], strides = [1, 1]} : vector<128x640xf32> to vector<128x64xf32>
    %176 = arith.truncf %175 : vector<128x64xf32> to vector<128x64xbf16>
    %c0_154 = arith.constant 0 : index
    %c0_155 = arith.constant 0 : index
    %c0_156 = arith.constant 0 : index
    %177 = vector.load %arg4[%c0_154, %c0_155, %c0_156] : memref<1x128x320xbf16, #tpu.memory_space<vmem>>, vector<1x128x64xbf16>
    %178 = vector.shape_cast %177 : vector<1x128x64xbf16> to vector<128x64xbf16>
    %179 = vector.shape_cast %176 : vector<128x64xbf16> to vector<1x128x64xbf16>
    tpu.vector_store %arg4[%c0_154, %c0_155, %c0_156], %179 {strides = array<i32>} : memref<1x128x320xbf16, #tpu.memory_space<vmem>>, vector<1x128x64xbf16>,
    %180 = vector.extract_strided_slice %145 {offsets = [0, 122], sizes = [128, 64], strides = [1, 1]} : vector<128x640xf32> to vector<128x64xf32>
    %181 = arith.truncf %180 : vector<128x64xf32> to vector<128x64xbf16>
    %c0_157 = arith.constant 0 : index
    %c0_158 = arith.constant 0 : index
    %c64_159 = arith.constant 64 : index
    %182 = vector.load %arg4[%c0_157, %c0_158, %c64_159] : memref<1x128x320xbf16, #tpu.memory_space<vmem>>, vector<1x128x64xbf16>
    %183 = vector.shape_cast %182 : vector<1x128x64xbf16> to vector<128x64xbf16>
    %184 = vector.shape_cast %181 : vector<128x64xbf16> to vector<1x128x64xbf16>
    tpu.vector_store %arg4[%c0_157, %c0_158, %c64_159], %184 {strides = array<i32>} : memref<1x128x320xbf16, #tpu.memory_space<vmem>>, vector<1x128x64xbf16>,
    %185 = vector.extract_strided_slice %145 {offsets = [0, 225], sizes = [128, 64], strides = [1, 1]} : vector<128x640xf32> to vector<128x64xf32>
    %186 = arith.truncf %185 : vector<128x64xf32> to vector<128x64xbf16>
    %c0_160 = arith.constant 0 : index
    %c0_161 = arith.constant 0 : index
    %c128_162 = arith.constant 128 : index
    %187 = vector.load %arg4[%c0_160, %c0_161, %c128_162] : memref<1x128x320xbf16, #tpu.memory_space<vmem>>, vector<1x128x64xbf16>
    %188 = vector.shape_cast %187 : vector<1x128x64xbf16> to vector<128x64xbf16>
    %189 = vector.shape_cast %186 : vector<128x64xbf16> to vector<1x128x64xbf16>
    tpu.vector_store %arg4[%c0_160, %c0_161, %c128_162], %189 {strides = array<i32>} : memref<1x128x320xbf16, #tpu.memory_space<vmem>>, vector<1x128x64xbf16>,
    %190 = vector.extract_strided_slice %145 {offsets = [0, 328], sizes = [128, 64], strides = [1, 1]} : vector<128x640xf32> to vector<128x64xf32>
    %191 = arith.truncf %190 : vector<128x64xf32> to vector<128x64xbf16>
    %c0_163 = arith.constant 0 : index
    %c0_164 = arith.constant 0 : index
    %c192_165 = arith.constant 192 : index
    %192 = vector.load %arg4[%c0_163, %c0_164, %c192_165] : memref<1x128x320xbf16, #tpu.memory_space<vmem>>, vector<1x128x64xbf16>
    %193 = vector.shape_cast %192 : vector<1x128x64xbf16> to vector<128x64xbf16>
    %194 = vector.shape_cast %191 : vector<128x64xbf16> to vector<1x128x64xbf16>
    tpu.vector_store %arg4[%c0_163, %c0_164, %c192_165], %194 {strides = array<i32>} : memref<1x128x320xbf16, #tpu.memory_space<vmem>>, vector<1x128x64xbf16>,
    %195 = vector.extract_strided_slice %145 {offsets = [0, 431], sizes = [128, 64], strides = [1, 1]} : vector<128x640xf32> to vector<128x64xf32>
    %196 = arith.truncf %195 : vector<128x64xf32> to vector<128x64xbf16>
    %c0_166 = arith.constant 0 : index
    %c0_167 = arith.constant 0 : index
    %c256_168 = arith.constant 256 : index
    %197 = vector.load %arg4[%c0_166, %c0_167, %c256_168] : memref<1x128x320xbf16, #tpu.memory_space<vmem>>, vector<1x128x64xbf16>
    %198 = vector.shape_cast %197 : vector<1x128x64xbf16> to vector<128x64xbf16>
    %199 = vector.shape_cast %196 : vector<128x64xbf16> to vector<1x128x64xbf16>
    tpu.vector_store %arg4[%c0_166, %c0_167, %c256_168], %199 {strides = array<i32>} : memref<1x128x320xbf16, #tpu.memory_space<vmem>>, vector<1x128x64xbf16>,
    return
  }
  func.func @transform_0(%arg0: i32) -> (i32, i32, i32) {
    %c0_i32 = arith.constant 0 : i32
    %c0_i32_0 = arith.constant 0 : i32
    %c0_i32_1 = arith.constant 0 : i32
    return %arg0, %c0_i32, %c0_i32_0 : i32, i32, i32
  }
  func.func @transform_1(%arg0: i32) -> (i32, i32) {
    %c0_i32 = arith.constant 0 : i32
    %c0_i32_0 = arith.constant 0 : i32
    %c0_i32_1 = arith.constant 0 : i32
    return %c0_i32, %c0_i32_0 : i32, i32
  }
  func.func @transform_2(%arg0: i32) -> (i32, i32, i32) {
    %c0_i32 = arith.constant 0 : i32
    %c0_i32_0 = arith.constant 0 : i32
    %c0_i32_1 = arith.constant 0 : i32
    return %arg0, %c0_i32, %c0_i32_0 : i32, i32, i32
  }
  func.func @transform_3(%arg0: i32) -> (i32, i32, i32) {
    %c0_i32 = arith.constant 0 : i32
    %c0_i32_0 = arith.constant 0 : i32
    %c0_i32_1 = arith.constant 0 : i32
    return %arg0, %c0_i32, %c0_i32_0 : i32, i32, i32
  }
  func.func @transform_4(%arg0: i32) -> (i32, i32, i32) {
    %c0_i32 = arith.constant 0 : i32
    %c0_i32_0 = arith.constant 0 : i32
    %c0_i32_1 = arith.constant 0 : i32
    return %arg0, %c0_i32, %c0_i32_0 : i32, i32, i32
  }
}

module attributes {stable_mosaic.version = 11 : i64} {
  func.func @bn_apply_kernel(%arg0: i32, %arg1: memref<1x128x320xbf16, #tpu.memory_space<vmem>>, %arg2: memref<128x1xf32, #tpu.memory_space<vmem>>, %arg3: memref<128x1xf32, #tpu.memory_space<vmem>>, %arg4: memref<1x128x320xf32, #tpu.memory_space<vmem>>) attributes {dimension_semantics = [#tpu.dimension_semantics<parallel>], iteration_bounds = array<i64: 2>, scalar_prefetch = 0 : i64, scratch_operands = 0 : i64, tpu.core_type = #tpu.core_type<tc>, window_params = [{transform_indices = @transform_0, window_bounds = array<i64: 1, 128, 320>}, {pipeline_mode = #tpu.pipeline_mode<synchronous>, transform_indices = @transform_1, window_bounds = array<i64: 128, 1>}, {pipeline_mode = #tpu.pipeline_mode<synchronous>, transform_indices = @transform_2, window_bounds = array<i64: 128, 1>}, {transform_indices = @transform_3, window_bounds = array<i64: 1, 128, 320>}]} {
    %c0 = arith.constant 0 : index
    %c0_0 = arith.constant 0 : index
    %c0_1 = arith.constant 0 : index
    %0 = vector.load %arg1[%c0, %c0_0, %c0_1] : memref<1x128x320xbf16, #tpu.memory_space<vmem>>, vector<1x128x320xbf16>
    %1 = vector.shape_cast %0 : vector<1x128x320xbf16> to vector<128x320xbf16>
    %2 = arith.extf %1 : vector<128x320xbf16> to vector<128x320xf32>
    %c0_2 = arith.constant 0 : index
    %c0_3 = arith.constant 0 : index
    %3 = vector.load %arg2[%c0_2, %c0_3] : memref<128x1xf32, #tpu.memory_space<vmem>>, vector<128x1xf32>
    %4 = vector.broadcast %3 : vector<128x1xf32> to vector<128x320xf32>
    %5 = arith.mulf %2, %4 : vector<128x320xf32>
    %c0_4 = arith.constant 0 : index
    %c0_5 = arith.constant 0 : index
    %6 = vector.load %arg3[%c0_4, %c0_5] : memref<128x1xf32, #tpu.memory_space<vmem>>, vector<128x1xf32>
    %7 = vector.broadcast %6 : vector<128x1xf32> to vector<128x320xf32>
    %8 = arith.addf %5, %7 : vector<128x320xf32>
    %cst = arith.constant 0.000000e+00 : f32
    %9 = vector.broadcast %cst : f32 to vector<128x320xf32>
    %10 = arith.maximumf %8, %9 : vector<128x320xf32>
    %c0_6 = arith.constant 0 : index
    %c0_7 = arith.constant 0 : index
    %c0_8 = arith.constant 0 : index
    %11 = vector.load %arg4[%c0_6, %c0_7, %c0_8] : memref<1x128x320xf32, #tpu.memory_space<vmem>>, vector<1x128x320xf32>
    %12 = vector.shape_cast %11 : vector<1x128x320xf32> to vector<128x320xf32>
    %13 = vector.shape_cast %10 : vector<128x320xf32> to vector<1x128x320xf32>
    tpu.vector_store %arg4[%c0_6, %c0_7, %c0_8], %13 {strides = array<i32>} : memref<1x128x320xf32, #tpu.memory_space<vmem>>, vector<1x128x320xf32>,
    return
  }
  func.func @transform_0(%arg0: i32) -> (i32, i32, i32) {
    %c0_i32 = arith.constant 0 : i32
    %c0_i32_0 = arith.constant 0 : i32
    %c0_i32_1 = arith.constant 0 : i32
    return %arg0, %c0_i32, %c0_i32_0 : i32, i32, i32
  }
  func.func @transform_1(%arg0: i32) -> (i32, i32) {
    %c0_i32 = arith.constant 0 : i32
    %c0_i32_0 = arith.constant 0 : i32
    %c0_i32_1 = arith.constant 0 : i32
    return %c0_i32, %c0_i32_0 : i32, i32
  }
  func.func @transform_2(%arg0: i32) -> (i32, i32) {
    %c0_i32 = arith.constant 0 : i32
    %c0_i32_0 = arith.constant 0 : i32
    %c0_i32_1 = arith.constant 0 : i32
    return %c0_i32, %c0_i32_0 : i32, i32
  }
  func.func @transform_3(%arg0: i32) -> (i32, i32, i32) {
    %c0_i32 = arith.constant 0 : i32
    %c0_i32_0 = arith.constant 0 : i32
    %c0_i32_1 = arith.constant 0 : i32
    return %arg0, %c0_i32, %c0_i32_0 : i32, i32, i32
  }
}

</mosaic_0001>

<bundles_post_ra>
// kernel: inception_module.3
= control target key start
LH: loop header
LB: loop body
LE: loop exit
PB: predicated region body
PF: predicated region fallthrough
CT: control target
= control target key end

     0   :  { %s742_s12 = smov 0   ;;  %s1251_s0 = inlined_call_operand.vmem [shape: bf16[2,128,320], index: 0, kind: input, shape index: {}]   ;;  %s1252_s1 = inlined_call_operand.vmem [shape: f32[128,1], index: 1, kind: input, shape index: {}]   ;;  %s1253_s2 = inlined_call_operand.vmem [shape: f32[128,1], index: 2, kind: input, shape index: {}]   ;;  %s1254_s3 = inlined_call_operand.vmem [shape: f32[2,128,320], index: 3, kind: output, shape index: {}]  }
   0x1 LB: > { %s691_s13 = sadd.s32 4294967295, %s719_s12   ;;  %p695_p0 = scmp.ge.s32.totalorder %s719_s12, 1  ;;  %s719_s12 = sphi %s742_s12, %s13_s12  }
   0x2   : > { %p137_p1 = scmp.lt.s32.totalorder %s719_s12, 3 }
   0x4   : > { %p138_p2 = pnand %p695_p0, %p137_p1 }
   0x5   : > { %v253_v0 = vld [vmem:[%s1252_s1 + $0x10] sm:$0xff] (!%p138_p2)  ;;  %v251_v1 = vld [vmem:[%s1252_s1] sm:$0xff] (!%p138_p2)  ;;  %v721_v2 = vmov (!%p138_p2), 0   ;;  %v254_v3 = vld [vmem:[%s1252_s1 + $0x18] sm:$0xff] (!%p138_p2)  ;;  %p161_p3 = scmp.lt.s32.totalorder (!%p138_p2), %s691_s13, 1  ;;  %vm589_vm0 = vcmask (!%p138_p2), 523264  }
   0x6   : > { %141 = sbr.rel (%p138_p2) target bundleno = 207 (0xcf), region = 32  ;;  %712 = vset.pattern.permute.xlu1 (!%p138_p2), %v721_v2  ;;  %711 = vset.pattern.permute.xlu0 (!%p138_p2), %v721_v2  ;;  %v252_v4 = vld [vmem:[%s1252_s1 + $0x8] sm:$0xff] (!%p138_p2)  ;;  %v255_v6 = vld [vmem:[%s1252_s1 + $0x20] sm:$0xff] (!%p138_p2)  ;;  %v258_v7 = vld [vmem:[%s1252_s1 + $0x38] sm:$0xff] (!%p138_p2) }
   0x7   : > { %279 = vperm.xlu1 (!%p138_p2), %712, %v253_v0   ;;  %269 = vperm.xlu0 (!%p138_p2), %711, %v251_v1   ;;  %v256_v5 = vld [vmem:[%s1252_s1 + $0x28] sm:$0xff] (!%p138_p2)  ;;  %v257_v8 = vld [vmem:[%s1252_s1 + $0x30] sm:$0xff] (!%p138_p2)  ;;  %v259_v10 = vld [vmem:[%s1252_s1 + $0x40] sm:$0xff] (!%p138_p2) }
   0x8   : > { %v260_v9 = vld [vmem:[%s1252_s1 + $0x48] sm:$0xff] (!%p138_p2)  ;;  %v262_v11 = vld [vmem:[%s1252_s1 + $0x58] sm:$0xff] (!%p138_p2)  ;;  %v261_v12 = vld [vmem:[%s1252_s1 + $0x50] sm:$0xff] (!%p138_p2) }
   0x9   : > { %v264_v13 = vld [vmem:[%s1252_s1 + $0x68] sm:$0xff] (!%p138_p2)  ;;  %v263_v14 = vld [vmem:[%s1252_s1 + $0x60] sm:$0xff] (!%p138_p2)  ;;  %v266_v15 = vld [vmem:[%s1252_s1 + $0x78] sm:$0xff] (!%p138_p2) }
   0xa   : > { %v265_v16 = vld [vmem:[%s1252_s1 + $0x70] sm:$0xff] (!%p138_p2)  ;;  %v396_v17 = vld [vmem:[%s1253_s2 + $0x8] sm:$0xff] (!%p138_p2)  ;;  %v395_v18 = vld [vmem:[%s1253_s2] sm:$0xff] (!%p138_p2) }
   0xb   : > { %284 = vperm.xlu1 (!%p138_p2), %712, %v254_v3   ;;  %274 = vperm.xlu0 (!%p138_p2), %711, %v252_v4   ;;  %v398_v19 = vld [vmem:[%s1253_s2 + $0x18] sm:$0xff] (!%p138_p2)  ;;  %v397_v20 = vld [vmem:[%s1253_s2 + $0x10] sm:$0xff] (!%p138_p2)  ;;  %v400_v21 = vld [vmem:[%s1253_s2 + $0x28] sm:$0xff] (!%p138_p2) }
   0xc   : > { %v399_v22 = vld [vmem:[%s1253_s2 + $0x20] sm:$0xff] (!%p138_p2)  ;;  %v402_v23 = vld [vmem:[%s1253_s2 + $0x38] sm:$0xff] (!%p138_p2)  ;;  %v401_v24 = vld [vmem:[%s1253_s2 + $0x30] sm:$0xff] (!%p138_p2) }
   0xd   : > { %v404_v25 = vld [vmem:[%s1253_s2 + $0x48] sm:$0xff]  ;;  %v403_v26 = vld [vmem:[%s1253_s2 + $0x40] sm:$0xff]  ;;  %v406_v27 = vld [vmem:[%s1253_s2 + $0x58] sm:$0xff]  ;;  %s1284_s13 = smov (!%p161_p3, %s691_s13), 1 }
   0xe   : > { %v405_v28 = vld [vmem:[%s1253_s2 + $0x50] sm:$0xff]  ;;  %v408_v29 = vld [vmem:[%s1253_s2 + $0x68] sm:$0xff]  ;;  %v407_v30 = vld [vmem:[%s1253_s2 + $0x60] sm:$0xff]  ;;  %s700_s28 = smul.u32 192, %s1284_s13 }
   0xf   : > { %294 = vperm.xlu1 %712, %v256_v5   ;;  %289 = vperm.xlu0 %711, %v255_v6   ;;  %v410_v31 = vld [vmem:[%s1253_s2 + $0x78] sm:$0xff]  ;;  %v409_v32 = vld [vmem:[%s1253_s2 + $0x70] sm:$0xff]  ;;  %s701_s5 = smul.u32 384, %s1284_s13 }
  0x10   : > { %s868_s4 = scalar_lea.vmem %s1251_s0, %s700_s28 }
  0x11   : > { %v871_v39 = vld [vmem:[%s868_s4 + $0x18] sm:$0xff]  ;;  %v878_v42 = vld [vmem:[%s868_s4 + $0x8] ss:$24 sps:$4 sm:$0xff]   ;;  %v887_v45 = vld [vmem:[%s868_s4 + $0x14] ss:$24 sps:$4 sm:$0xff]   ;;  %s1088_s7 = scalar_lea.vmem %s1254_s3, %s701_s5 }
  0x12   : > { %v881_v43 = vld [vmem:[%s868_s4] sm:$0xff]  ;;  %v209_v46 = vunpack.c.l.bf16 %v871_v39  ;;  %v891_v47 = vld [vmem:[%s868_s4 + $0xc] sm:$0xff]  ;;  %v210_v49 = vunpack.c.h.bf16 %v871_v39  ;;  %v211_v50 = vunpack.c.h.bf16 %v878_v42  ;;  %v205_v57 = vunpack.c.l.bf16 %v878_v42  ;;  %v915_v61 = vld [vmem:[%s868_s4 + $0x54] sm:$0xff] }
  0x13   : > { %304 = vperm.xlu1 %712, %v258_v7   ;;  %299 = vperm.xlu0 %711, %v257_v8   ;;  %v884_v44 = vld [vmem:[%s868_s4 + $0x24] sm:$0xff]  ;;  %v894_v48 = vld [vmem:[%s868_s4 + $0x3c] sm:$0xff]  ;;  %v203_v51 = vunpack.c.l.bf16 %v881_v43  ;;  %v204_v52 = vunpack.c.h.bf16 %v881_v43  ;;  %v904_v54 = vld [vmem:[%s868_s4 + $0x30] sm:$0xff]  ;;  %v214_v60 = vunpack.c.h.bf16 %v887_v45  ;;  %v206_v63 = vunpack.c.l.bf16 %v891_v47 }
  0x14   : > { %v901_v53 = vld [vmem:[%s868_s4 + $0x38] ss:$12 sps:$4 sm:$0xff]   ;;  %v212_v58 = vunpack.c.l.bf16 %v884_v44  ;;  %v213_v59 = vunpack.c.h.bf16 %v884_v44  ;;  %v918_v62 = vld [vmem:[%s868_s4 + $0x50] ss:$12 sps:$4 sm:$0xff]   ;;  %v207_v0 = vunpack.c.h.bf16 %v891_v47  ;;  %v208_v1 = vunpack.c.l.bf16 %v887_v45  ;;  %v925_v3 = vld [vmem:[%s868_s4 + $0x48] sm:$0xff] }
  0x15   : > { %v218_v2 = vunpack.c.l.bf16 %v894_v48  ;;  %v928_v4 = vld [vmem:[%s868_s4 + $0x6c] sm:$0xff]  ;;  %v219_v5 = vunpack.c.h.bf16 %v894_v48  ;;  %v220_v6 = vunpack.c.h.bf16 %v901_v53  ;;  %v215_v7 = vunpack.c.l.bf16 %v904_v54 }
  0x16   : > { %v1255_v45 = vunpack.c.h.bf16 %v904_v54  ;;  %v1257_v48 = vunpack.c.l.bf16 %v915_v61 }
  0x17   : > { %314 = vperm.xlu1 %712, %v260_v9   ;;  %309 = vperm.xlu0 %711, %v259_v10   ;;  %v935_v9 = vld [vmem:[%s868_s4 + $0x68] ss:$12 sps:$4 sm:$0xff]   ;;  %v938_v10 = vld [vmem:[%s868_s4 + $0x60] sm:$0xff] }
  0x1b   : > { %324 = vperm.xlu1 %712, %v262_v11   ;;  %319 = vperm.xlu0 %711, %v261_v12  }
  0x1f   : > { %334 = vperm.xlu1 %712, %v264_v13   ;;  %329 = vperm.xlu0 %711, %v263_v14  }
  0x23   : > { %344 = vperm.xlu1 %712, %v266_v15   ;;  %339 = vperm.xlu0 %711, %v265_v16   ;;  %v947_v16 = vld [vmem:[%s868_s4 + $0x84] sm:$0xff] }
  0x27   : > { %418 = vperm.xlu1 %712, %v396_v17   ;;  %413 = vperm.xlu0 %711, %v395_v18   ;;  %v950_v17 = vld [vmem:[%s868_s4 + $0x80] ss:$12 sps:$4 sm:$0xff]  }
  0x2b   : > { %428 = vperm.xlu1 %712, %v398_v19   ;;  %423 = vperm.xlu0 %711, %v397_v20  }
  0x2f   : > { %438 = vperm.xlu1 %712, %v400_v21   ;;  %433 = vperm.xlu0 %711, %v399_v22  }
  0x33   : > { %448 = vperm.xlu1 %712, %v402_v23   ;;  %443 = vperm.xlu0 %711, %v401_v24   ;;  %v959_v23 = vld [vmem:[%s868_s4 + $0x78] sm:$0xff] }
  0x34   : > { %v962_v24 = vld [vmem:[%s868_s4 + $0x9c] sm:$0xff] }
  0x37   : > { %458 = vperm.xlu1 %712, %v404_v25   ;;  %453 = vperm.xlu0 %711, %v403_v26   ;;  %v979_v25 = vld [vmem:[%s868_s4 + $0xb4] sm:$0xff]  ;;  %v982_v26 = vld [vmem:[%s868_s4 + $0xb0] ss:$12 sps:$4 sm:$0xff]  }
  0x38   : > { %v249_v12 = vunpack.c.h.bf16 %v979_v25 }
  0x3b   : > { %468 = vperm.xlu1 %712, %v406_v27   ;;  %463 = vperm.xlu0 %711, %v405_v28  }
  0x3f   : > { %478 = vperm.xlu1 %712, %v408_v29   ;;  %473 = vperm.xlu0 %711, %v407_v30   ;;  %v969_v29 = vld [vmem:[%s868_s4 + $0x98] ss:$12 sps:$4 sm:$0xff]   ;;  %v972_v30 = vld [vmem:[%s868_s4 + $0x90] sm:$0xff] }
  0x40   : > { %v244_v22 = vunpack.c.h.bf16 %v969_v29  ;;  %v239_v13 = vunpack.c.l.bf16 %v972_v30  ;;  %v241_v28 = vunpack.c.l.bf16 %v969_v29 }
  0x43   : > { %488 = vperm.xlu1 %712, %v410_v31   ;;  %483 = vperm.xlu0 %711, %v409_v32   ;;  %v993_v32 = vld [vmem:[%s868_s4 + $0xa8] sm:$0xff] }
  0x86   : > { %v848_v33 = vpop.permute.xlu1 %279  ;;  %v850_v34 = vpop.permute.xlu0 %269 }
  0x87   : > { %v353_v27 = vmul.f32 %v848_v33, %v209_v46  ;;  %v354_v20 = vmul.f32 %v848_v33, %v210_v49  ;;  %v355_v31 = vmul.f32 %v848_v33, %v211_v50  ;;  %v347_v8 = vmul.f32 %v850_v34, %v203_v51 }
  0x88   : > { %v348_v46 = vmul.f32 %v850_v34, %v204_v52  ;;  %v349_v39 = vmul.f32 %v850_v34, %v205_v57  ;;  %v1256_v52 = vunpack.c.l.bf16 %v901_v53  ;;  %v1259_v53 = vunpack.c.h.bf16 %v918_v62 }
  0x8a   : > { %v856_v35 = vpop.permute.xlu1 %284  ;;  %v858_v36 = vpop.permute.xlu0 %274 }
  0x8b   : > { %v356_v33 = vmul.f32 %v856_v35, %v212_v58  ;;  %v357_v49 = vmul.f32 %v856_v35, %v213_v59  ;;  %v358_v50 = vmul.f32 %v856_v35, %v214_v60  ;;  %v350_v43 = vmul.f32 %v858_v36, %v206_v63 }
  0x8c   : > { %v351_v34 = vmul.f32 %v858_v36, %v207_v0  ;;  %v352_v42 = vmul.f32 %v858_v36, %v208_v1  ;;  %v1258_v59 = vunpack.c.h.bf16 %v915_v61 }
  0x8e   : > { %v861_v37 = vpop.permute.xlu1 %294  ;;  %v863_v38 = vpop.permute.xlu0 %289 }
  0x8f   : > { %v362_v44 = vmul.f32 %v861_v37, %v218_v2  ;;  %v363_v35 = vmul.f32 %v861_v37, %v219_v5  ;;  %v364_v51 = vmul.f32 %v861_v37, %v220_v6  ;;  %v359_v47 = vmul.f32 %v863_v38, %v215_v7 }
  0x90   : > { %v360_v36 = vmul.f32 %v863_v38, %v1255_v45  ;;  %v361_v57 = vmul.f32 %v863_v38, %v1256_v52  ;;  %v1260_v5 = vunpack.c.l.bf16 %v925_v3  ;;  %v1262_v52 = vunpack.c.l.bf16 %v918_v62 }
  0x91   : > { %v1263_v62 = vunpack.c.l.bf16 %v928_v4 }
  0x92   : > { %v873_v40 = vpop.permute.xlu1 %304  ;;  %v875_v41 = vpop.permute.xlu0 %299 }
  0x93   : > { %v1068_v58 = vmul.f32 %v873_v40, %v1257_v48  ;;  %v1073_v37 = vmul.f32 %v873_v40, %v1258_v59  ;;  %v1078_v38 = vmul.f32 %v873_v40, %v1259_v53  ;;  %v1083_v6 = vmul.f32 %v875_v41, %v1260_v5 }
  0x94   : > { %v1098_v48 = vmul.f32 %v875_v41, %v1262_v52 }
  0x96   : > { %v906_v55 = vpop.permute.xlu1 %314  ;;  %v908_v56 = vpop.permute.xlu0 %309 }
  0x9a   : > { %v944_v15 = vpop.permute.xlu1 %324  ;;  %v952_v18 = vpop.permute.xlu0 %319 }
  0x9e   : > { %v987_v19 = vpop.permute.xlu1 %334  ;;  %v990_v14 = vpop.permute.xlu0 %329 }
  0xa2   : > { %v1018_v11 = vpop.permute.xlu1 %344  ;;  %v1020_v21 = vpop.permute.xlu0 %339 }
  0xa6   : > { %v419_v60 = vpop.permute.xlu1 %418  ;;  %v414_v63 = vpop.permute.xlu0 %413 }
  0xa7   : > { %v494_v0 = vadd.f32 %v419_v60, %v350_v43  ;;  %v495_v54 = vadd.f32 %v419_v60, %v351_v34  ;;  %v496_v1 = vadd.f32 %v419_v60, %v352_v42  ;;  %v491_v2 = vadd.f32 %v414_v63, %v347_v8 }
  0xa8   : > { %v492_v61 = vadd.f32 %v414_v63, %v348_v46  ;;  %v493_v7 = vadd.f32 %v414_v63, %v349_v39  ;;  %v1261_v42 = vunpack.c.h.bf16 %v925_v3 }
  0xa9   : > { %v542_v8 = vmax.f32 %v494_v0, 0.0  ;;  %v543_v43 = vmax.f32 %v495_v54, 0.0  ;;  %v544_v40 = vmax.f32 %v496_v1, 0.0  ;;  %v539_v34 = vmax.f32 %v491_v2, 0.0 }
  0xaa   : > { %v1093_v45 = vmul.f32 %v875_v41, %v1261_v42  ;;  %v540_v59 = vmax.f32 %v492_v61, 0.0  ;;  %v541_v60 = vmax.f32 %v493_v7, 0.0  ;;  %v429_v46 = vpop.permute.xlu1 %428  ;;  %v424_v39 = vpop.permute.xlu0 %423  ;;  %v1108_v1 = vmul.f32 %v906_v55, %v1263_v62 }
  0xab   : > { %591 = vst [vmem:[%s1088_s7 + $0x18] sm:$0xff] %v542_v8  ;;  %592 = vst [vmem:[%s1088_s7 + $0x20] sm:$0xff] %v543_v43  ;;  %v500_v3 = vadd.f32 %v429_v46, %v356_v33  ;;  %v501_v63 = vadd.f32 %v429_v46, %v357_v49  ;;  %v502_v0 = vadd.f32 %v429_v46, %v358_v50  ;;  %v1264_v41 = vunpack.c.h.bf16 %v928_v4 }
  0xac   : > { %593 = vst.msk [vmem:[%s1088_s7 + $0x28] sm:$0xff] %vm589_vm0, %v544_v40  ;;  %587 = vst [vmem:[%s1088_s7] sm:$0xff] %v539_v34  ;;  %v497_v54 = vadd.f32 %v424_v39, %v353_v27  ;;  %v498_v33 = vadd.f32 %v424_v39, %v354_v20  ;;  %v499_v49 = vadd.f32 %v424_v39, %v355_v31  ;;  %v1265_v61 = vunpack.c.h.bf16 %v935_v9 }
  0xad   : > { %v1113_v2 = vmul.f32 %v906_v55, %v1264_v41  ;;  %588 = vst [vmem:[%s1088_s7 + $0x8] sm:$0xff] %v540_v59  ;;  %590 = vst.msk [vmem:[%s1088_s7 + $0x10] sm:$0xff] %vm589_vm0, %v541_v60  ;;  %v548_v27 = vmax.f32 %v500_v3, 0.0  ;;  %v549_v50 = vmax.f32 %v501_v63, 0.0  ;;  %v550_v53 = vmax.f32 %v502_v0, 0.0 }
  0xae   : > { %v545_v5 = vmax.f32 %v497_v54, 0.0  ;;  %v376_v4 = vmul.f32 %v906_v55, %v1265_v61  ;;  %v1266_v7 = vunpack.c.l.bf16 %v938_v10  ;;  %v546_v43 = vmax.f32 %v498_v33, 0.0  ;;  %v439_v34 = vpop.permute.xlu1 %438  ;;  %v434_v42 = vpop.permute.xlu0 %433 }
  0xaf   : > { %v547_v40 = vmax.f32 %v499_v49, 0.0  ;;  %597 = vst [vmem:[%s1088_s7 + $0x48] sm:$0xff] %v548_v27  ;;  %598 = vst [vmem:[%s1088_s7 + $0x50] sm:$0xff] %v549_v50  ;;  %v506_v20 = vadd.f32 %v439_v34, %v362_v44  ;;  %v507_v31 = vadd.f32 %v439_v34, %v363_v35  ;;  %v508_v52 = vadd.f32 %v439_v34, %v364_v51 }
  0xb0   : > { %v371_v8 = vmul.f32 %v908_v56, %v1266_v7  ;;  %599 = vst.msk [vmem:[%s1088_s7 + $0x58] sm:$0xff] %vm589_vm0, %v550_v53  ;;  %594 = vst [vmem:[%s1088_s7 + $0x30] sm:$0xff] %v545_v5  ;;  %v503_v59 = vadd.f32 %v434_v42, %v359_v47  ;;  %v1267_v55 = vunpack.c.h.bf16 %v938_v10  ;;  %v1268_v46 = vunpack.c.l.bf16 %v935_v9 }
  0xb1   : > { %595 = vst [vmem:[%s1088_s7 + $0x38] sm:$0xff] %v546_v43  ;;  %596 = vst.msk [vmem:[%s1088_s7 + $0x40] sm:$0xff] %vm589_vm0, %v547_v40  ;;  %v504_v3 = vadd.f32 %v434_v42, %v360_v36  ;;  %v505_v44 = vadd.f32 %v434_v42, %v361_v57  ;;  %v554_v35 = vmax.f32 %v506_v20, 0.0  ;;  %v555_v51 = vmax.f32 %v507_v31, 0.0 }
  0xb2   : > { %v372_v60 = vmul.f32 %v908_v56, %v1267_v55  ;;  %v373_v39 = vmul.f32 %v908_v56, %v1268_v46  ;;  %v556_v47 = vmax.f32 %v508_v52, 0.0  ;;  %v551_v63 = vmax.f32 %v503_v59, 0.0  ;;  %v449_v41 = vpop.permute.xlu1 %448  ;;  %v444_v33 = vpop.permute.xlu0 %443 }
  0xb3   : > { %v1269_v10 = vunpack.c.l.bf16 %v947_v16  ;;  %v1270_v9 = vunpack.c.h.bf16 %v947_v16  ;;  %v552_v54 = vmax.f32 %v504_v3, 0.0  ;;  %v553_v62 = vmax.f32 %v505_v44, 0.0  ;;  %603 = vst [vmem:[%s1088_s7 + $0x78] sm:$0xff] %v554_v35  ;;  %604 = vst [vmem:[%s1088_s7 + $0x80] sm:$0xff] %v555_v51 }
  0xb4   : > { %605 = vst.msk [vmem:[%s1088_s7 + $0x88] sm:$0xff] %vm589_vm0, %v556_v47  ;;  %600 = vst [vmem:[%s1088_s7 + $0x60] sm:$0xff] %v551_v63  ;;  %v512_v36 = vadd.f32 %v449_v41, %v1068_v58  ;;  %v513_v57 = vadd.f32 %v449_v41, %v1073_v37  ;;  %v514_v49 = vadd.f32 %v449_v41, %v1078_v38  ;;  %v1271_v27 = vunpack.c.h.bf16 %v950_v17 }
  0xb5   : > { %v380_v0 = vmul.f32 %v944_v15, %v1269_v10  ;;  %v381_v56 = vmul.f32 %v944_v15, %v1270_v9  ;;  %v509_v16 = vadd.f32 %v444_v33, %v1083_v6  ;;  %v1272_v53 = vunpack.c.l.bf16 %v959_v23  ;;  %601 = vst [vmem:[%s1088_s7 + $0x68] sm:$0xff] %v552_v54  ;;  %602 = vst.msk [vmem:[%s1088_s7 + $0x70] sm:$0xff] %vm589_vm0, %v553_v62 }
  0xb6   : > { %v382_v50 = vmul.f32 %v944_v15, %v1271_v27  ;;  %v510_v58 = vadd.f32 %v444_v33, %v1093_v45  ;;  %v511_v37 = vadd.f32 %v444_v33, %v1098_v48  ;;  %v560_v38 = vmax.f32 %v512_v36, 0.0  ;;  %v459_v31 = vpop.permute.xlu1 %458  ;;  %v454_v45 = vpop.permute.xlu0 %453 }
  0xb7   : > { %v377_v5 = vmul.f32 %v952_v18, %v1272_v53  ;;  %v561_v6 = vmax.f32 %v513_v57, 0.0  ;;  %v562_v61 = vmax.f32 %v514_v49, 0.0  ;;  %v557_v7 = vmax.f32 %v509_v16, 0.0 }
  0xb8   : > { %v1273_v15 = vunpack.c.h.bf16 %v959_v23  ;;  %v1274_v40 = vunpack.c.l.bf16 %v950_v17  ;;  %v558_v42 = vmax.f32 %v510_v58, 0.0  ;;  %v559_v20 = vmax.f32 %v511_v37, 0.0  ;;  %609 = vst [vmem:[%s1088_s7 + $0xa8] sm:$0xff] %v560_v38 }
  0xb9   : > { %610 = vst [vmem:[%s1088_s7 + $0xb0] sm:$0xff] %v561_v6  ;;  %611 = vst.msk [vmem:[%s1088_s7 + $0xb8] sm:$0xff] %vm589_vm0, %v562_v61  ;;  %v518_v48 = vadd.f32 %v459_v31, %v1108_v1  ;;  %v519_v23 = vadd.f32 %v459_v31, %v1113_v2  ;;  %v520_v52 = vadd.f32 %v459_v31, %v376_v4  ;;  %v1275_v17 = vunpack.c.l.bf16 %v962_v24 }
  0xba   : > { %v378_v43 = vmul.f32 %v952_v18, %v1273_v15  ;;  %v379_v34 = vmul.f32 %v952_v18, %v1274_v40  ;;  %606 = vst [vmem:[%s1088_s7 + $0x90] sm:$0xff] %v557_v7  ;;  %v515_v59 = vadd.f32 %v454_v45, %v371_v8  ;;  %v1276_v55 = vunpack.c.h.bf16 %v962_v24  ;;  %607 = vst [vmem:[%s1088_s7 + $0x98] sm:$0xff] %v558_v42  ;;  %v469_v63 = vpop.permute.xlu1 %468  ;;  %v464_v10 = vpop.permute.xlu0 %463 }
  0xbb   : > { %v386_v18 = vmul.f32 %v987_v19, %v1275_v17  ;;  %608 = vst.msk [vmem:[%s1088_s7 + $0xa0] sm:$0xff] %vm589_vm0, %v559_v20  ;;  %v516_v1 = vadd.f32 %v454_v45, %v372_v60  ;;  %v517_v3 = vadd.f32 %v454_v45, %v373_v39  ;;  %v566_v2 = vmax.f32 %v518_v48, 0.0 }
  0xbc   : > { %v387_v46 = vmul.f32 %v987_v19, %v1276_v55  ;;  %v567_v4 = vmax.f32 %v519_v23, 0.0  ;;  %v568_v8 = vmax.f32 %v520_v52, 0.0  ;;  %v563_v44 = vmax.f32 %v515_v59, 0.0 }
  0xbd   : > { %v388_v35 = vmul.f32 %v987_v19, %v244_v22  ;;  %v383_v24 = vmul.f32 %v990_v14, %v239_v13  ;;  %v564_v51 = vmax.f32 %v516_v1, 0.0  ;;  %v565_v47 = vmax.f32 %v517_v3, 0.0  ;;  %615 = vst [vmem:[%s1088_s7 + $0xd8] sm:$0xff] %v566_v2 }
  0xbe   : > { %616 = vst [vmem:[%s1088_s7 + $0xe0] sm:$0xff] %v567_v4  ;;  %617 = vst.msk [vmem:[%s1088_s7 + $0xe8] sm:$0xff] %vm589_vm0, %v568_v8  ;;  %v524_v60 = vadd.f32 %v469_v63, %v380_v0  ;;  %v525_v39 = vadd.f32 %v469_v63, %v381_v56  ;;  %v526_v9 = vadd.f32 %v469_v63, %v382_v50  ;;  %v1277_v19 = vunpack.c.h.bf16 %v972_v30  ;;  %v479_v49 = vpop.permute.xlu1 %478  ;;  %v474_v16 = vpop.permute.xlu0 %473 }
  0xbf   : > { %612 = vst [vmem:[%s1088_s7 + $0xc0] sm:$0xff] %v563_v44  ;;  %v521_v54 = vadd.f32 %v464_v10, %v377_v5  ;;  %v385_v13 = vmul.f32 %v990_v14, %v241_v28  ;;  %613 = vst [vmem:[%s1088_s7 + $0xc8] sm:$0xff] %v564_v51  ;;  %v522_v62 = vadd.f32 %v464_v10, %v378_v43  ;;  %v1278_v30 = vunpack.c.l.bf16 %v979_v25 }
  0xc0   : > { %v384_v22 = vmul.f32 %v990_v14, %v1277_v19  ;;  %614 = vst.msk [vmem:[%s1088_s7 + $0xd0] sm:$0xff] %vm589_vm0, %v565_v47  ;;  %v523_v0 = vadd.f32 %v464_v10, %v379_v34  ;;  %v572_v56 = vmax.f32 %v524_v60, 0.0  ;;  %v573_v41 = vmax.f32 %v525_v39, 0.0 }
  0xc1   : > { %v574_v33 = vmax.f32 %v526_v9, 0.0  ;;  %v569_v36 = vmax.f32 %v521_v54, 0.0  ;;  %v392_v57 = vmul.f32 %v1018_v11, %v1278_v30  ;;  %v393_v14 = vmul.f32 %v1018_v11, %v249_v12 }
  0xc2   : > { %v570_v28 = vmax.f32 %v522_v62, 0.0  ;;  %v571_v29 = vmax.f32 %v523_v0, 0.0  ;;  %621 = vst [vmem:[%s1088_s7 + $0x108] sm:$0xff] %v572_v56  ;;  %622 = vst [vmem:[%s1088_s7 + $0x110] sm:$0xff] %v573_v41  ;;  %v530_v27 = vadd.f32 %v479_v49, %v386_v18  ;;  %v531_v50 = vadd.f32 %v479_v49, %v387_v46  ;;  %v489_v45 = vpop.permute.xlu1 %488  ;;  %v484_v48 = vpop.permute.xlu0 %483 }
  0xc3   : > { %623 = vst.msk [vmem:[%s1088_s7 + $0x118] sm:$0xff] %vm589_vm0, %v574_v33  ;;  %618 = vst [vmem:[%s1088_s7 + $0xf0] sm:$0xff] %v569_v36  ;;  %v532_v53 = vadd.f32 %v479_v49, %v388_v35  ;;  %v527_v5 = vadd.f32 %v474_v16, %v383_v24  ;;  %v1279_v58 = vunpack.c.h.bf16 %v982_v26  ;;  %v1280_v12 = vunpack.c.l.bf16 %v993_v32 }
  0xc4   : > { %619 = vst [vmem:[%s1088_s7 + $0xf8] sm:$0xff] %v570_v28  ;;  %620 = vst.msk [vmem:[%s1088_s7 + $0x100] sm:$0xff] %vm589_vm0, %v571_v29  ;;  %v528_v38 = vadd.f32 %v474_v16, %v384_v22  ;;  %v529_v6 = vadd.f32 %v474_v16, %v385_v13  ;;  %v578_v61 = vmax.f32 %v530_v27, 0.0  ;;  %v579_v7 = vmax.f32 %v531_v50, 0.0 }
  0xc5   : > { %v394_v25 = vmul.f32 %v1018_v11, %v1279_v58  ;;  %v389_v37 = vmul.f32 %v1020_v21, %v1280_v12  ;;  %v580_v15 = vmax.f32 %v532_v53, 0.0  ;;  %v575_v43 = vmax.f32 %v527_v5, 0.0 }
  0xc6   : > { %v1281_v11 = vunpack.c.h.bf16 %v993_v32  ;;  %v1282_v34 = vunpack.c.l.bf16 %v982_v26  ;;  %v576_v20 = vmax.f32 %v528_v38, 0.0  ;;  %v577_v31 = vmax.f32 %v529_v6, 0.0  ;;  %627 = vst [vmem:[%s1088_s7 + $0x138] sm:$0xff] %v578_v61  ;;  %628 = vst [vmem:[%s1088_s7 + $0x140] sm:$0xff] %v579_v7 }
  0xc7   : > { %629 = vst.msk [vmem:[%s1088_s7 + $0x148] sm:$0xff] %vm589_vm0, %v580_v15  ;;  %624 = vst [vmem:[%s1088_s7 + $0x120] sm:$0xff] %v575_v43  ;;  %v536_v23 = vadd.f32 %v489_v45, %v392_v57  ;;  %v537_v32 = vadd.f32 %v489_v45, %v393_v14  ;;  %v538_v52 = vadd.f32 %v489_v45, %v394_v25 }
  0xc8   : > { %v390_v40 = vmul.f32 %v1020_v21, %v1281_v11  ;;  %v391_v42 = vmul.f32 %v1020_v21, %v1282_v34  ;;  %v533_v26 = vadd.f32 %v484_v48, %v389_v37  ;;  %625 = vst [vmem:[%s1088_s7 + $0x128] sm:$0xff] %v576_v20  ;;  %626 = vst.msk [vmem:[%s1088_s7 + $0x130] sm:$0xff] %vm589_vm0, %v577_v31 }
  0xc9   : > { %v584_v17 = vmax.f32 %v536_v23, 0.0  ;;  %v585_v18 = vmax.f32 %v537_v32, 0.0  ;;  %v586_v55 = vmax.f32 %v538_v52, 0.0 }
  0xca   : > { %v534_v21 = vadd.f32 %v484_v48, %v390_v40  ;;  %v535_v59 = vadd.f32 %v484_v48, %v391_v42  ;;  %v581_v46 = vmax.f32 %v533_v26, 0.0 }
  0xcb   : > { %633 = vst [vmem:[%s1088_s7 + $0x168] sm:$0xff] %v584_v17  ;;  %634 = vst [vmem:[%s1088_s7 + $0x170] sm:$0xff] %v585_v18 }
  0xcc   : > { %v582_v1 = vmax.f32 %v534_v21, 0.0  ;;  %v583_v3 = vmax.f32 %v535_v59, 0.0  ;;  %635 = vst.msk [vmem:[%s1088_s7 + $0x178] sm:$0xff] %vm589_vm0, %v586_v55  ;;  %630 = vst [vmem:[%s1088_s7 + $0x150] sm:$0xff] %v581_v46 }
  0xce   : > { %631 = vst [vmem:[%s1088_s7 + $0x158] sm:$0xff] %v582_v1  ;;  %632 = vst.msk [vmem:[%s1088_s7 + $0x160] sm:$0xff] %vm589_vm0, %v583_v3 }
  0xcf PF: > { %s13_s12 = sadd.s32 1, %s719_s12  }
  0xd0   : > { %p10_p4 = scmp.ge.s32.totalorder %s13_s12, 4  }
  0xd2   :  { %12 = sbr.rel (!%p10_p4) target bundleno = 1 (0x1), region = 62 }

// kernel: inception_module.2
= control target key start
LH: loop header
LB: loop body
LE: loop exit
PB: predicated region body
PF: predicated region fallthrough
CT: control target
= control target key end

     0   :  { %s6762_s15 = smov 0   ;;  %s9795_s0 = inlined_call_operand.vmem [shape: bf16[2,16,679], index: 0, kind: input, shape index: {}]   ;;  %s9796_s1 = inlined_call_operand.vmem [shape: bf16[128,656], index: 1, kind: input, shape index: {}]   ;;  %s9797_s2 = inlined_call_operand.vmem [shape: f32[2,3,640], index: 2, kind: input, shape index: {}]   ;;  %s9798_s3 = inlined_call_operand.vmem [shape: bf16[2,128,320], index: 3, kind: output, shape index: {0}]   ;;  %s9799_s4 = inlined_call_operand.vmem [shape: f32[2,128,2], index: 4, kind: output, shape index: {1}]  }
   0x1 LB: > { %s5736_s16 = sadd.s32 4294967295, %s6689_s15   ;;  %p5740_p0 = scmp.ge.s32.totalorder %s6689_s15, 1  ;;  %s6689_s15 = sphi %s6762_s15, %s15_s15  }
   0x2   : > { %p175_p1 = scmp.lt.s32.totalorder %s6689_s15, 3 }
   0x4   : > { %p176_p2 = pnand %p5740_p0, %p175_p1 }
   0x6   : > { %179 = sbr.rel (%p176_p2) target bundleno = 1381 (0x565), region = 32 }
   0xd   : > { %p211_p3 = scmp.lt.s32.totalorder %s5736_s16, 1  ;;  %s6691_s21 = smov 127   ;;  %v2548_v11 = vlaneseq  ;;  %vm313_vm0 = vcmask 1039360   ;;  %v9834_v25 = vmov 0   ;;  %vm371_vm4 = vcmask 1031168  }
   0xe   : > { %s6692_s22 = smov 126   ;;  %s6693_s23 = smov 125   ;;  %vm9815_vm9 = vcmask 1022976   ;;  %vm9813_vm14 = vcmask 1014784   ;;  %vm9811_vm15 = vcmask 1006592  }
   0xf   : > { %s10154_s16 = smov (!%p211_p3, %s5736_s16), 1  ;;  %s9819_s24 = smov 124   ;;  %v6943_v15 = vshrl.u32 %v2548_v11, 7 }
  0x10   : > { %s6500_s17 = smul.u32 48, %s10154_s16  ;;  %s9806_s25 = smov 123  }
  0x11   : > { %s9803_s26 = smov 122   ;;  %s9800_s27 = smov 121   ;;  %v2666_v20 = vsub.s32 2, %v6943_v15  ;;  %v2670_v21 = vsub.s32 6, %v6943_v15 }
  0x12   : > { %s6776_s20 = scalar_lea.vmem %s9795_s0, %s6500_s17  ;;  %s6698_s28 = smov 120  }
  0x13   : > { %v6779_v0 = vld [vmem:[%s6776_s20 + $0x8] sm:$0xff]  ;;  %v6782_v1 = vld [vmem:[%s6776_s20 + $0x20] sm:$0xff]  ;;  %v6792_v4 = vld [vmem:[%s6776_s20 + $0x18] sm:$0xff]  ;;  %s6699_s29 = smov 119   ;;  %s6700_s30 = smov 118  }
  0x14   : > { %v6785_v2 = vld [vmem:[%s6776_s20] sm:$0xff]  ;;  %v6789_v3 = vcombine.high %v6779_v0, %v6782_v1  ;;  %v6795_v5 = vld [vmem:[%s6776_s20 + $0x10] sm:$0xff]  ;;  %v6798_v6 = vld [vmem:[%s6776_s20 + $0x28] sm:$0xff]  ;;  %v6802_v7 = vcombine.low %v6779_v0, %v6782_v1  ;;  %s6701_s5 = smov 117   ;;  %s6501_s6 = smul.u32 20, %s10154_s16 }
  0x15   : > { %v6806_v8 = vcombine.high %v6785_v2, %v6792_v4  ;;  %v6812_v9 = vcombine.low %v6795_v5, %v6798_v6  ;;  %v6819_v10 = vcombine.low %v6785_v2, %v6792_v4  ;;  %s9823_s7 = smov 116   ;;  %s9817_s11 = smov 115  }
  0x16   : > { %307 = vrot.lane.b32.xlu1 %v6789_v3, %s6691_s21  ;;  %3726 = vmatprep.subr.bf16.mxu1 %v6789_v3  ;;  %s6936_s10 = scalar_lea.vmem %s9797_s2, %s6501_s6  ;;  %s9805_s12 = smov 114  }
  0x17   : > { %303 = vrot.lane.b32.xlu0 %v6806_v8, %s6691_s21  ;;  %3727 = vmatpush1.bf16.msra.mxu1 %v6802_v7  ;;  %v2534_v13 = vld [vmem:[%s6936_s10 + $0x8] sm:$0x77]  ;;  %v2533_v16 = vld [vmem:[%s6936_s10] sm:$0x77]  ;;  %v2535_v22 = vld [vmem:[%s6936_s10 + $0x10] sm:$0x7] }
  0x18   : > { %3387 = vmatprep.subr.bf16.mxu0 %v6806_v8  ;;  %vm2537_vm1 = vcmp.gt.f32.partialorder %v2534_v13, 0.5  ;;  %vm2536_vm2 = vcmp.gt.f32.partialorder %v2533_v16, 0.5  ;;  %vm2538_vm3 = vcmp.gt.f32.partialorder %v2535_v22, 0.5  ;;  %s6706_s13 = smov 20   ;;  %s6707_s14 = smov 1  }
  0x19   : > { %3388 = vmatpush1.bf16.msra.mxu0 %v6819_v10  ;;  %v6962_v26 = vsel %vm2537_vm1, 1, %v9834_v25  ;;  %v6967_v27 = vsel %vm2536_vm2, 1, %v9834_v25  ;;  %v6979_v35 = vsel %vm2538_vm3, 1, %v9834_v25  ;;  %s9801_s17 = smov 113   ;;  %vm9809_vm1 = vcmask 998400   ;;  %s6709_s6 = smov 112  }
  0x1a   : > { %309 = vrot.lane.b32.xlu1 %v6812_v9, %s6691_s21  ;;  %9914 = vst [vmem:[#allocation3_spill] sm:$0xff] %v6962_v26  ;;  %9915 = vst [vmem:[#allocation4_spill] sm:$0xff] %v6967_v27  ;;  %v2675_v30 = vrot.slane %v6962_v26, %v2666_v20  ;;  %v2679_v31 = vrot.slane %v6962_v26, %v2670_v21  ;;  %v2667_v33 = vrot.slane %v6967_v27, %v2666_v20  ;;  %vm9807_vm2 = vcmask 990208   ;;  %s6710_s8 = smov 111   ;;  %s6711_s9 = smov 110  }
  0x1b   : > { %305 = vrot.lane.b32.xlu0 %v6802_v7, %s6691_s21  ;;  %v2671_v34 = vrot.slane %v6967_v27, %v2670_v21  ;;  %9916 = vst [vmem:[#allocation5_spill] sm:$0xff] %v6979_v35  ;;  %v2683_v43 = vrot.slane %v6979_v35, %v2666_v20  ;;  %vm719_vm3 = vcmask 982016   ;;  %s9816_s18 = smov 107   ;;  %s9804_s19 = smov 106  }
  0x1c   : > { %v2695_v38 = vrot.slane %v2675_v30, %v2666_v20  ;;  %v2699_v39 = vrot.slane %v2679_v31, %v2666_v20  ;;  %v2687_v41 = vrot.slane %v2667_v33, %v2666_v20 }
  0x1d   : > { %v2691_v42 = vrot.slane %v2671_v34, %v2666_v20  ;;  %v2703_v48 = vrot.slane %v2683_v43, %v2666_v20 }
  0x1e   : > { %361 = vrot.lane.b32.xlu1 %v6806_v8, %s6692_s22  ;;  %vm2706_vm5 = vcmp.eq.s32.totalorder %v2695_v38, 1  ;;  %vm2707_vm6 = vcmp.eq.s32.totalorder %v2699_v39, 1  ;;  %vm2704_vm7 = vcmp.eq.s32.totalorder %v2687_v41, 1 }
  0x1f   : > { %301 = vrot.lane.b32.xlu0 %v6819_v10, %s6691_s21  ;;  %vm2705_vm8 = vcmp.eq.s32.totalorder %v2691_v42, 1  ;;  %vm2710_vm10 = vmpackc.low %vm2707_vm6, %vm2706_vm5  ;;  %vm2708_vm12 = vcmp.eq.s32.totalorder %v2703_v48, 1  ;;  %vm777_vm5 = vcmask 973824   ;;  %vm835_vm6 = vcmask 965632  }
  0x20   : > { %vm2709_vm11 = vmpackc.low %vm2705_vm8, %vm2704_vm7  ;;  %v2713_v53 = vsel %vm2710_vm10, 65537, %v9834_v25  ;;  %vm9847_vm7 = vcmask 957440   ;;  %vm9814_vm8 = vcmask 949248   ;;  %vm9812_vm10 = vcmask 941056  }
  0x21   : > { %v2712_v55 = vsel %vm2709_vm11, 65537, %v9834_v25  ;;  %vm2711_vm13 = vmpackc.low %vm2708_vm12, %vm2708_vm12  ;;  %vm9810_vm11 = vcmask 932864   ;;  %vm9808_vm12 = vcmask 924672  }
  0x22   : > { %365 = vrot.lane.b32.xlu1 %v6789_v3, %s6692_s22  ;;  %v2714_v60 = vsel %vm2711_vm13, 65537, %v9834_v25  ;;  %vm1183_vm13 = vcmask 916480  }
  0x23   : > { %363 = vrot.lane.b32.xlu0 %v6802_v7, %s6692_s22 }
  0x26   : > { %359 = vrot.lane.b32.xlu1 %v6819_v10, %s6692_s22 }
  0x27   : > { %367 = vrot.lane.b32.xlu0 %v6812_v9, %s6692_s22 }
  0x2a   : > { %421 = vrot.lane.b32.xlu1 %v6802_v7, %s6693_s23 }
  0x2b   : > { %419 = vrot.lane.b32.xlu0 %v6806_v8, %s6693_s23 }
  0x2e   : > { %425 = vrot.lane.b32.xlu1 %v6812_v9, %s6693_s23 }
  0x2f   : > { %423 = vrot.lane.b32.xlu0 %v6789_v3, %s6693_s23 }
  0x32   : > { %477 = vrot.lane.b32.xlu1 %v6806_v8, %s9819_s24 }
  0x33   : > { %417 = vrot.lane.b32.xlu0 %v6819_v10, %s6693_s23 }
  0x36   : > { %481 = vrot.lane.b32.xlu1 %v6789_v3, %s9819_s24 }
  0x37   : > { %479 = vrot.lane.b32.xlu0 %v6802_v7, %s9819_s24 }
  0x3a   : > { %475 = vrot.lane.b32.xlu1 %v6819_v10, %s9819_s24 }
  0x3b   : > { %483 = vrot.lane.b32.xlu0 %v6812_v9, %s9819_s24  ;;  %s9822_s24 = smov 98  }
  0x3e   : > { %537 = vrot.lane.b32.xlu1 %v6802_v7, %s9806_s25 }
  0x3f   : > { %535 = vrot.lane.b32.xlu0 %v6806_v8, %s9806_s25 }
  0x42   : > { %541 = vrot.lane.b32.xlu1 %v6812_v9, %s9806_s25 }
  0x43   : > { %539 = vrot.lane.b32.xlu0 %v6789_v3, %s9806_s25 }
  0x46   : > { %593 = vrot.lane.b32.xlu1 %v6806_v8, %s9803_s26 }
  0x47   : > { %533 = vrot.lane.b32.xlu0 %v6819_v10, %s9806_s25  ;;  %s6721_s25 = smov 100  }
  0x4a   : > { %597 = vrot.lane.b32.xlu1 %v6789_v3, %s9803_s26 }
  0x4b   : > { %595 = vrot.lane.b32.xlu0 %v6802_v7, %s9803_s26 }
  0x4e   : > { %591 = vrot.lane.b32.xlu1 %v6819_v10, %s9803_s26 }
  0x4f   : > { %599 = vrot.lane.b32.xlu0 %v6812_v9, %s9803_s26  ;;  %s6719_s26 = smov 102  }
  0x52   : > { %653 = vrot.lane.b32.xlu1 %v6802_v7, %s9800_s27 }
  0x53   : > { %651 = vrot.lane.b32.xlu0 %v6806_v8, %s9800_s27 }
  0x56   : > { %657 = vrot.lane.b32.xlu1 %v6812_v9, %s9800_s27 }
  0x57   : > { %655 = vrot.lane.b32.xlu0 %v6789_v3, %s9800_s27 }
  0x5a   : > { %709 = vrot.lane.b32.xlu1 %v6806_v8, %s6698_s28 }
  0x5b   : > { %649 = vrot.lane.b32.xlu0 %v6819_v10, %s9800_s27  ;;  %s9802_s27 = smov 105  }
  0x5e   : > { %713 = vrot.lane.b32.xlu1 %v6789_v3, %s6698_s28 }
  0x5f   : > { %711 = vrot.lane.b32.xlu0 %v6802_v7, %s6698_s28 }
  0x62   : > { %707 = vrot.lane.b32.xlu1 %v6819_v10, %s6698_s28 }
  0x63   : > { %715 = vrot.lane.b32.xlu0 %v6812_v9, %s6698_s28 }
  0x66   : > { %769 = vrot.lane.b32.xlu1 %v6802_v7, %s6699_s29 }
  0x67   : > { %767 = vrot.lane.b32.xlu0 %v6806_v8, %s6699_s29 }
  0x6a   : > { %773 = vrot.lane.b32.xlu1 %v6812_v9, %s6699_s29 }
  0x6b   : > { %771 = vrot.lane.b32.xlu0 %v6789_v3, %s6699_s29 }
  0x6e   : > { %825 = vrot.lane.b32.xlu1 %v6806_v8, %s6700_s30 }
  0x6f   : > { %765 = vrot.lane.b32.xlu0 %v6819_v10, %s6699_s29 }
  0x72   : > { %829 = vrot.lane.b32.xlu1 %v6789_v3, %s6700_s30 }
  0x73   : > { %827 = vrot.lane.b32.xlu0 %v6802_v7, %s6700_s30 }
  0x76   : > { %823 = vrot.lane.b32.xlu1 %v6819_v10, %s6700_s30 }
  0x77   : > { %831 = vrot.lane.b32.xlu0 %v6812_v9, %s6700_s30 }
  0x7a   : > { %885 = vrot.lane.b32.xlu1 %v6802_v7, %s6701_s5 }
  0x7b   : > { %883 = vrot.lane.b32.xlu0 %v6806_v8, %s6701_s5 }
  0x7e   : > { %889 = vrot.lane.b32.xlu1 %v6812_v9, %s6701_s5 }
  0x7f   : > { %887 = vrot.lane.b32.xlu0 %v6789_v3, %s6701_s5 }
  0x82   : > { %941 = vrot.lane.b32.xlu1 %v6806_v8, %s9823_s7 }
  0x83   : > { %881 = vrot.lane.b32.xlu0 %v6819_v10, %s6701_s5 }
  0x86   : > { %945 = vrot.lane.b32.xlu1 %v6789_v3, %s9823_s7 }
  0x87   : > { %943 = vrot.lane.b32.xlu0 %v6802_v7, %s9823_s7 }
  0x88   : > { %v308_v12 = vpop.permute.xlu1 %307 }
  0x89   : > { %v304_v14 = vpop.permute.xlu0 %303 }
  0x8a   : > { %939 = vrot.lane.b32.xlu1 %v6819_v10, %s9823_s7 }
  0x8b   : > { %947 = vrot.lane.b32.xlu0 %v6812_v9, %s9823_s7  ;;  %s6727_s7 = smov 95  }
  0x8c   : > { %v6950_v17 = vpop.permute.xlu1 %309 }
  0x8d   : > { %v306_v18 = vpop.permute.xlu0 %305  ;;  %v317_v19 = vsel %vm313_vm0, %v308_v12, %v6950_v17 }
  0x8e   : > { %1001 = vrot.lane.b32.xlu1 %v6802_v7, %s9817_s11  ;;  %v315_v23 = vsel %vm313_vm0, %v304_v14, %v306_v18  ;;  %3728 = vmatprep.subr.bf16.mxu1 %v317_v19  ;;  %v316_v24 = vsel %vm313_vm0, %v306_v18, %v308_v12 }
  0x8f   : > { %999 = vrot.lane.b32.xlu0 %v6806_v8, %s9817_s11  ;;  %3389 = vmatprep.subr.bf16.mxu0 %v315_v23 }
  0x90   : > { %3729 = vmatpush1.bf16.msra.mxu1 %v316_v24  ;;  %v362_v28 = vpop.permute.xlu1 %361 }
  0x91   : > { %v302_v29 = vpop.permute.xlu0 %301 }
  0x92   : > { %1005 = vrot.lane.b32.xlu1 %v6812_v9, %s9817_s11  ;;  %v314_v32 = vsel %vm313_vm0, %v302_v29, %v304_v14 }
  0x93   : > { %1003 = vrot.lane.b32.xlu0 %v6789_v3, %s9817_s11  ;;  %3390 = vmatpush1.bf16.msra.mxu0 %v314_v32 }
  0x94   : > { %v366_v36 = vpop.permute.xlu1 %365 }
  0x95   : > { %v364_v37 = vpop.permute.xlu0 %363 }
  0x96   : > { %1057 = vrot.lane.b32.xlu1 %v6806_v8, %s9805_s12  ;;  %v373_v40 = vsel %vm371_vm4, %v362_v28, %v364_v37  ;;  %v374_v49 = vsel %vm371_vm4, %v364_v37, %v366_v36 }
  0x97   : > { %997 = vrot.lane.b32.xlu0 %v6819_v10, %s9817_s11  ;;  %3391 = vmatprep.subr.bf16.mxu0 %v373_v40  ;;  %s9850_s11 = smov 93  }
  0x98   : > { %v360_v44 = vpop.permute.xlu1 %359 }
  0x99   : > { %v6987_v45 = vpop.permute.xlu0 %367  ;;  %v372_v46 = vsel %vm371_vm4, %v360_v44, %v362_v28 }
  0x9a   : > { %1061 = vrot.lane.b32.xlu1 %v6789_v3, %s9805_s12  ;;  %3392 = vmatpush1.bf16.msra.mxu0 %v372_v46  ;;  %v375_v47 = vsel %vm371_vm4, %v366_v36, %v6987_v45 }
  0x9b   : > { %1059 = vrot.lane.b32.xlu0 %v6802_v7, %s9805_s12  ;;  %3730 = vmatprep.subr.bf16.mxu1 %v375_v47 }
  0x9c   : > { %3731 = vmatpush1.bf16.msra.mxu1 %v374_v49  ;;  %v422_v50 = vpop.permute.xlu1 %421 }
  0x9d   : > { %v420_v51 = vpop.permute.xlu0 %419 }
  0x9e   : > { %1055 = vrot.lane.b32.xlu1 %v6819_v10, %s9805_s12  ;;  %v431_v52 = vsel %vm9815_vm9, %v420_v51, %v422_v50 }
  0x9f   : > { %1063 = vrot.lane.b32.xlu0 %v6812_v9, %s9805_s12  ;;  %3393 = vmatprep.subr.bf16.mxu0 %v431_v52  ;;  %s9818_s12 = smov 99  }
  0xa0   : > { %v7003_v54 = vpop.permute.xlu1 %425 }
  0xa1   : > { %v424_v56 = vpop.permute.xlu0 %423 }
  0xa2   : > { %2717 = vrot.lane.b32.xlu1 %v2713_v53, %s6706_s13  ;;  %v433_v57 = vsel %vm9815_vm9, %v424_v56, %v7003_v54  ;;  %v432_v58 = vsel %vm9815_vm9, %v422_v50, %v424_v56  ;;  %v1316_v56 = vld [vmem:[%s6776_s20 + $0x8] sm:$0xff] }
  0xa3   : > { %2715 = vrot.lane.b32.xlu0 %v2712_v55, %s6706_s13  ;;  %3732 = vmatprep.subr.bf16.mxu1 %v433_v57  ;;  %v1319_v57 = vld [vmem:[%s6776_s20 + $0x20] sm:$0xff] }
  0xa4   : > { %3733 = vmatpush1.bf16.msra.mxu1 %v432_v58  ;;  %v478_v59 = vpop.permute.xlu1 %477 }
  0xa5   : > { %v418_v61 = vpop.permute.xlu0 %417 }
  0xa6   : > { %2733 = vrot.lane.b32.xlu1 %v6785_v2, %s6707_s14  ;;  %v430_v62 = vsel %vm9815_vm9, %v418_v61, %v420_v51 }
  0xa7   : > { %2719 = vrot.lane.b32.xlu0 %v2714_v60, %s6706_s13  ;;  %3394 = vmatpush1.bf16.msra.mxu0 %v430_v62  ;;  %s6712_s13 = smov 109   ;;  %v7098_v60 = vcombine.high %v1316_v56, %v1319_v57 }
  0xa8   : > { %v482_v63 = vpop.permute.xlu1 %481 }
  0xa9   : > { %v480_v11 = vpop.permute.xlu0 %479 }
  0xaa   : > { %2737 = vrot.lane.b32.xlu1 %v6795_v5, %s6707_s14  ;;  %v489_v12 = vsel %vm9813_vm14, %v478_v59, %v480_v11  ;;  %v490_v5 = vsel %vm9813_vm14, %v480_v11, %v482_v63  ;;  %v7114_v11 = vld [vmem:[%s6776_s20 + $0x10] ss:$24 sps:$4 sm:$0xff]  }
  0xab   : > { %2735 = vrot.lane.b32.xlu0 %v6779_v0, %s6707_s14  ;;  %3395 = vmatprep.subr.bf16.mxu0 %v489_v12 }
  0xac   : > { %v476_v13 = vpop.permute.xlu1 %475 }
  0xad   : > { %v7015_v14 = vpop.permute.xlu0 %483  ;;  %v488_v16 = vsel %vm9813_vm14, %v476_v13, %v478_v59 }
  0xae   : > { %2741 = vrot.lane.b32.xlu1 %v6782_v1, %s6707_s14  ;;  %3396 = vmatpush1.bf16.msra.mxu0 %v488_v16  ;;  %v491_v2 = vsel %vm9813_vm14, %v482_v63, %v7015_v14 }
  0xaf   : > { %2739 = vrot.lane.b32.xlu0 %v6792_v4, %s6707_s14  ;;  %3734 = vmatprep.subr.bf16.mxu1 %v491_v2  ;;  %v6571_v4 = vld [vmem:[%s9796_s1 + $0x4] ss:$24 sps:$4 sm:$0xff]  }
  0xb0   : > { %3735 = vmatpush1.bf16.msra.mxu1 %v490_v5  ;;  %v538_v0 = vpop.permute.xlu1 %537  ;;  %3758 = vmatprep.mubr.bf16.mxu1 %v6571_v4  ;;  %v7122_v2 = vld [vmem:[%s6776_s20 + $0x4] ss:$24 sps:$4 sm:$0xff]  }
  0xb1   : > { %v536_v18 = vpop.permute.xlu0 %535  ;;  %3419 = vmatprep.mubr.bf16.mxu0 %v6571_v4 }
  0xb2   : > { %1115 = vrot.lane.b32.xlu1 %v6806_v8, %s9801_s17  ;;  %v547_v19 = vsel %vm9811_vm15, %v536_v18, %v538_v0 }
  0xb3   : > { %2743 = vrot.lane.b32.xlu0 %v6798_v6, %s6707_s14  ;;  %3397 = vmatprep.subr.bf16.mxu0 %v547_v19  ;;  %s9820_s14 = smov 108  }
  0xb4   : > { %v7027_v1 = vpop.permute.xlu1 %541 }
  0xb5   : > { %v540_v20 = vpop.permute.xlu0 %539 }
  0xb6   : > { %1119 = vrot.lane.b32.xlu1 %v6789_v3, %s9801_s17  ;;  %v549_v21 = vsel %vm9811_vm15, %v540_v20, %v7027_v1  ;;  %v548_v22 = vsel %vm9811_vm15, %v538_v0, %v540_v20 }
  0xb7   : > { %1117 = vrot.lane.b32.xlu0 %v6802_v7, %s9801_s17  ;;  %3736 = vmatprep.subr.bf16.mxu1 %v549_v21 }
  0xb8   : > { %3737 = vmatpush1.bf16.msra.mxu1 %v548_v22  ;;  %v594_v6 = vpop.permute.xlu1 %593  ;;  %v7140_v22 = vld [vmem:[%s6776_s20] ss:$24 sps:$4 sm:$0xff]  }
  0xb9   : > { %v534_v23 = vpop.permute.xlu0 %533 }
  0xba   : > { %1113 = vrot.lane.b32.xlu1 %v6819_v10, %s9801_s17  ;;  %v546_v24 = vsel %vm9811_vm15, %v534_v23, %v536_v18 }
  0xbb   : > { %1121 = vrot.lane.b32.xlu0 %v6812_v9, %s9801_s17  ;;  %3398 = vmatpush1.bf16.msra.mxu0 %v546_v24  ;;  %s6717_s17 = smov 104  }
  0xbc   : > { %v598_v28 = vpop.permute.xlu1 %597 }
  0xbd   : > { %v596_v29 = vpop.permute.xlu0 %595 }
  0xbe   : > { %1175 = vrot.lane.b32.xlu1 %v6802_v7, %s6709_s6  ;;  %v605_v30 = vsel %vm9809_vm1, %v594_v6, %v596_v29  ;;  %v606_v36 = vsel %vm9809_vm1, %v596_v29, %v598_v28 }
  0xbf   : > { %1173 = vrot.lane.b32.xlu0 %v6806_v8, %s6709_s6  ;;  %3399 = vmatprep.subr.bf16.mxu0 %v605_v30 }
  0xc0   : > { %v592_v31 = vpop.permute.xlu1 %591 }
  0xc1   : > { %v7049_v32 = vpop.permute.xlu0 %599  ;;  %v604_v33 = vsel %vm9809_vm1, %v592_v31, %v594_v6 }
  0xc2   : > { %1179 = vrot.lane.b32.xlu1 %v6812_v9, %s6709_s6  ;;  %3400 = vmatpush1.bf16.msra.mxu0 %v604_v33  ;;  %v607_v34 = vsel %vm9809_vm1, %v598_v28, %v7049_v32 }
  0xc3   : > { %1177 = vrot.lane.b32.xlu0 %v6789_v3, %s6709_s6  ;;  %3738 = vmatprep.subr.bf16.mxu1 %v607_v34 }
  0xc4   : > { %3739 = vmatpush1.bf16.msra.mxu1 %v606_v36  ;;  %v654_v37 = vpop.permute.xlu1 %653 }
  0xc5   : > { %v652_v38 = vpop.permute.xlu0 %651 }
  0xc6   : > { %1231 = vrot.lane.b32.xlu1 %v6806_v8, %s6710_s8  ;;  %v663_v39 = vsel %vm9807_vm2, %v652_v38, %v654_v37 }
  0xc7   : > { %1171 = vrot.lane.b32.xlu0 %v6819_v10, %s6709_s6  ;;  %3401 = vmatprep.subr.bf16.mxu0 %v663_v39 }
  0xc8   : > { %v7064_v40 = vpop.permute.xlu1 %657 }
  0xc9   : > { %9917 = vst [vmem:[#allocation6_spill] sm:$0xff] %v7064_v40  ;;  %v656_v41 = vpop.permute.xlu0 %655 }
  0xca   : > { %1235 = vrot.lane.b32.xlu1 %v6789_v3, %s6710_s8  ;;  %v665_v42 = vsel %vm9807_vm2, %v656_v41, %v7064_v40  ;;  %v664_v43 = vsel %vm9807_vm2, %v654_v37, %v656_v41 }
  0xcb   : > { %1233 = vrot.lane.b32.xlu0 %v6802_v7, %s6710_s8  ;;  %3740 = vmatprep.subr.bf16.mxu1 %v665_v42 }
  0xcc   : > { %3741 = vmatpush1.bf16.msra.mxu1 %v664_v43  ;;  %v710_v44 = vpop.permute.xlu1 %709 }
  0xcd   : > { %v650_v46 = vpop.permute.xlu0 %649 }
  0xce   : > { %1229 = vrot.lane.b32.xlu1 %v6819_v10, %s6710_s8  ;;  %v662_v47 = vsel %vm9807_vm2, %v650_v46, %v652_v38  ;;  %vm1241_vm2 = vcmask 908288  }
  0xcf   : > { %1237 = vrot.lane.b32.xlu0 %v6812_v9, %s6710_s8  ;;  %3402 = vmatpush1.bf16.msra.mxu0 %v662_v47 }
  0xd0   : > { %v714_v48 = vpop.permute.xlu1 %713 }
  0xd1   : > { %v712_v49 = vpop.permute.xlu0 %711 }
  0xd2   : > { %1291 = vrot.lane.b32.xlu1 %v6802_v7, %s6711_s9  ;;  %v721_v50 = vsel %vm719_vm3, %v710_v44, %v712_v49  ;;  %v722_v7 = vsel %vm719_vm3, %v712_v49, %v714_v48 }
  0xd3   : > { %1289 = vrot.lane.b32.xlu0 %v6806_v8, %s6711_s9  ;;  %3403 = vmatprep.subr.bf16.mxu0 %v721_v50 }
  0xd4   : > { %v708_v51 = vpop.permute.xlu1 %707 }
  0xd5   : > { %v7083_v52 = vpop.permute.xlu0 %715  ;;  %v720_v53 = vsel %vm719_vm3, %v708_v51, %v710_v44 }
  0xd6   : > { %1295 = vrot.lane.b32.xlu1 %v6812_v9, %s6711_s9  ;;  %3404 = vmatpush1.bf16.msra.mxu0 %v720_v53  ;;  %v723_v55 = vsel %vm719_vm3, %v714_v48, %v7083_v52 }
  0xd7   : > { %1293 = vrot.lane.b32.xlu0 %v6789_v3, %s6711_s9  ;;  %3742 = vmatprep.subr.bf16.mxu1 %v723_v55  ;;  %v7102_v3 = vcombine.low %v1316_v56, %v1319_v57 }
  0xd8   : > { %3743 = vmatpush1.bf16.msra.mxu1 %v722_v7  ;;  %v770_v58 = vpop.permute.xlu1 %769 }
  0xd9   : > { %v768_v59 = vpop.permute.xlu0 %767 }
  0xda   : > { %1347 = vrot.lane.b32.xlu1 %v6806_v8, %s6712_s13  ;;  %v779_v9 = vsel %vm777_vm5, %v768_v59, %v770_v58 }
  0xdb   : > { %1287 = vrot.lane.b32.xlu0 %v6819_v10, %s6711_s9  ;;  %3405 = vmatprep.subr.bf16.mxu0 %v779_v9 }
  0xdc   : > { %v7104_v61 = vpop.permute.xlu1 %773 }
  0xdd   : > { %v772_v62 = vpop.permute.xlu0 %771 }
  0xde   : > { %1351 = vrot.lane.b32.xlu1 %v7098_v60, %s6712_s13  ;;  %v781_v8 = vsel %vm777_vm5, %v772_v62, %v7104_v61  ;;  %v780_v63 = vsel %vm777_vm5, %v770_v58, %v772_v62 }
  0xdf   : > { %1349 = vrot.lane.b32.xlu0 %v7102_v3, %s6712_s13  ;;  %3744 = vmatprep.subr.bf16.mxu1 %v781_v8 }
  0xe0   : > { %3745 = vmatpush1.bf16.msra.mxu1 %v780_v63  ;;  %v826_v12 = vpop.permute.xlu1 %825 }
  0xe1   : > { %v766_v13 = vpop.permute.xlu0 %765 }
  0xe2   : > { %1345 = vrot.lane.b32.xlu1 %v6819_v10, %s6712_s13  ;;  %v778_v16 = vsel %vm777_vm5, %v766_v13, %v768_v59 }
  0xe3   : > { %1353 = vrot.lane.b32.xlu0 %v7114_v11, %s6712_s13  ;;  %3406 = vmatpush1.bf16.msra.mxu0 %v778_v16 }
  0xe4   : > { %v830_v5 = vpop.permute.xlu1 %829 }
  0xe5   : > { %v828_v0 = vpop.permute.xlu0 %827 }
  0xe6   : > { %1407 = vrot.lane.b32.xlu1 %v7102_v3, %s9820_s14  ;;  %v837_v18 = vsel %vm835_vm6, %v826_v12, %v828_v0  ;;  %v838_v21 = vsel %vm835_vm6, %v828_v0, %v830_v5 }
  0xe7   : > { %1405 = vrot.lane.b32.xlu0 %v7122_v2, %s9820_s14  ;;  %3407 = vmatprep.subr.bf16.mxu0 %v837_v18 }
  0xe8   : > { %v824_v10 = vpop.permute.xlu1 %823 }
  0xe9   : > { %v7129_v19 = vpop.permute.xlu0 %831  ;;  %v836_v20 = vsel %vm835_vm6, %v824_v10, %v826_v12 }
  0xea   : > { %1411 = vrot.lane.b32.xlu1 %v7114_v11, %s9820_s14  ;;  %3408 = vmatpush1.bf16.msra.mxu0 %v836_v20  ;;  %v839_v4 = vsel %vm835_vm6, %v830_v5, %v7129_v19 }
  0xeb   : > { %1409 = vrot.lane.b32.xlu0 %v7098_v60, %s9820_s14  ;;  %3746 = vmatprep.subr.bf16.mxu1 %v839_v4 }
  0xec   : > { %3747 = vmatpush1.bf16.msra.mxu1 %v838_v21  ;;  %v886_v6 = vpop.permute.xlu1 %885 }
  0xed   : > { %v884_v23 = vpop.permute.xlu0 %883 }
  0xee   : > { %1463 = vrot.lane.b32.xlu1 %v7122_v2, %s9816_s18  ;;  %v895_v24 = vsel %vm9847_vm7, %v884_v23, %v886_v6 }
  0xef   : > { %1403 = vrot.lane.b32.xlu0 %v7140_v22, %s9820_s14  ;;  %3409 = vmatprep.subr.bf16.mxu0 %v895_v24  ;;  %s6725_s14 = smov 97  }
  0xf0   : > { %v7147_v28 = vpop.permute.xlu1 %889 }
  0xf1   : > { %v888_v29 = vpop.permute.xlu0 %887 }
  0xf2   : > { %1467 = vrot.lane.b32.xlu1 %v7098_v60, %s9816_s18  ;;  %v897_v30 = vsel %vm9847_vm7, %v888_v29, %v7147_v28  ;;  %v896_v31 = vsel %vm9847_vm7, %v886_v6, %v888_v29 }
  0xf3   : > { %1465 = vrot.lane.b32.xlu0 %v7102_v3, %s9816_s18  ;;  %3748 = vmatprep.subr.bf16.mxu1 %v897_v30 }
  0xf4   : > { %3749 = vmatpush1.bf16.msra.mxu1 %v896_v31  ;;  %v942_v33 = vpop.permute.xlu1 %941 }
  0xf5   : > { %v882_v34 = vpop.permute.xlu0 %881 }
  0xf6   : > { %1461 = vrot.lane.b32.xlu1 %v7140_v22, %s9816_s18  ;;  %v894_v36 = vsel %vm9847_vm7, %v882_v34, %v884_v23 }
  0xf7   : > { %1469 = vrot.lane.b32.xlu0 %v7114_v11, %s9816_s18  ;;  %3410 = vmatpush1.bf16.msra.mxu0 %v894_v36  ;;  %s6723_s18 = smov 18  }
  0xf8   : > { %v946_v37 = vpop.permute.xlu1 %945 }
  0xf9   : > { %v944_v38 = vpop.permute.xlu0 %943 }
  0xfa   : > { %1523 = vrot.lane.b32.xlu1 %v7102_v3, %s9804_s19  ;;  %v953_v39 = vsel %vm9814_vm8, %v942_v33, %v944_v38  ;;  %v954_v46 = vsel %vm9814_vm8, %v944_v38, %v946_v37  ;;  %v6573_v38 = vld [vmem:[%s9796_s1] ss:$24 sps:$4 sm:$0xff]  }
  0xfb   : > { %1521 = vrot.lane.b32.xlu0 %v7122_v2, %s9804_s19  ;;  %3411 = vmatprep.subr.bf16.mxu0 %v953_v39 }
  0xfc   : > { %v940_v41 = vpop.permute.xlu1 %939 }
  0xfd   : > { %v7166_v42 = vpop.permute.xlu0 %947  ;;  %v952_v43 = vsel %vm9814_vm8, %v940_v41, %v942_v33 }
  0xfe   : > { %1527 = vrot.lane.b32.xlu1 %v7114_v11, %s9804_s19  ;;  %3412 = vmatpush1.bf16.msra.mxu0 %v952_v43  ;;  %v955_v44 = vsel %vm9814_vm8, %v946_v37, %v7166_v42 }
  0xff   : > { %1525 = vrot.lane.b32.xlu0 %v7098_v60, %s9804_s19  ;;  %3750 = vmatprep.subr.bf16.mxu1 %v955_v44 }
 0x100   : > { %3751 = vmatpush1.bf16.msra.mxu1 %v954_v46  ;;  %v1002_v47 = vpop.permute.xlu1 %1001 }
 0x101   : > { %v1000_v48 = vpop.permute.xlu0 %999 }
 0x102   : > { %1579 = vrot.lane.b32.xlu1 %v7122_v2, %s9802_s27  ;;  %v1011_v49 = vsel %vm9812_vm10, %v1000_v48, %v1002_v47 }
 0x103   : > { %1519 = vrot.lane.b32.xlu0 %v7140_v22, %s9804_s19  ;;  %3413 = vmatprep.subr.bf16.mxu0 %v1011_v49  ;;  %s6720_s19 = smov 101  }
 0x104   : > { %v7181_v50 = vpop.permute.xlu1 %1005 }
 0x105   : > { %v1004_v51 = vpop.permute.xlu0 %1003 }
 0x106   : > { %1583 = vrot.lane.b32.xlu1 %v7098_v60, %s9802_s27  ;;  %v1013_v53 = vsel %vm9812_vm10, %v1004_v51, %v7181_v50  ;;  %v1012_v55 = vsel %vm9812_vm10, %v1002_v47, %v1004_v51  ;;  %v2550_v47 = vsub.s32 1, %v6943_v15 }
 0x107   : > { %1581 = vrot.lane.b32.xlu0 %v7102_v3, %s9802_s27  ;;  %3752 = vmatprep.subr.bf16.mxu1 %v1013_v53 }
 0x108   : > { %3753 = vmatpush1.bf16.msra.mxu1 %v1012_v55  ;;  %v1058_v7 = vpop.permute.xlu1 %1057 }
 0x109   : > { %v998_v56 = vpop.permute.xlu0 %997 }
 0x10a   : > { %1577 = vrot.lane.b32.xlu1 %v7140_v22, %s9802_s27  ;;  %v1010_v57 = vsel %vm9812_vm10, %v998_v56, %v1000_v48  ;;  %v2554_v48 = vsub.s32 5, %v6943_v15  ;;  %vm1299_vm10 = vcmask 900096  }
 0x10b   : > { %1585 = vrot.lane.b32.xlu0 %v7114_v11, %s9802_s27  ;;  %3414 = vmatpush1.bf16.msra.mxu0 %v1010_v57  ;;  %s6718_s27 = smov 103  }
 0x10c   : > { %v1062_v58 = vpop.permute.xlu1 %1061  ;;  %v2563_v56 = vrot.slane %v6962_v26, %v2554_v48 }
 0x10d   : > { %v1060_v59 = vpop.permute.xlu0 %1059 }
 0x10e   : > { %1639 = vrot.lane.b32.xlu1 %v7102_v3, %s6717_s17  ;;  %v1069_v9 = vsel %vm9810_vm11, %v1058_v7, %v1060_v59  ;;  %v1070_v13 = vsel %vm9810_vm11, %v1060_v59, %v1062_v58  ;;  %v2555_v59 = vrot.slane %v6967_v27, %v2554_v48 }
 0x10f   : > { %1637 = vrot.lane.b32.xlu0 %v7122_v2, %s6717_s17  ;;  %3415 = vmatprep.subr.bf16.mxu0 %v1069_v9 }
 0x110   : > { %v1056_v62 = vpop.permute.xlu1 %1055 }
 0x111   : > { %v7200_v8 = vpop.permute.xlu0 %1063  ;;  %v1068_v63 = vsel %vm9810_vm11, %v1056_v62, %v1058_v7  ;;  %v2559_v7 = vrot.slane %v6962_v26, %v2550_v47 }
 0x112   : > { %1643 = vrot.lane.b32.xlu1 %v7114_v11, %s6717_s17  ;;  %3416 = vmatpush1.bf16.msra.mxu0 %v1068_v63  ;;  %v1071_v12 = vsel %vm9810_vm11, %v1062_v58, %v7200_v8  ;;  %v2551_v58 = vrot.slane %v6967_v27, %v2550_v47 }
 0x113   : > { %1641 = vrot.lane.b32.xlu0 %v7098_v60, %s6717_s17  ;;  %3754 = vmatprep.subr.bf16.mxu1 %v1071_v12  ;;  %v2579_v63 = vrot.slane %v2559_v7, %v2550_v47  ;;  %v2583_v12 = vrot.slane %v2563_v56, %v2550_v47 }
 0x114   : > { %3755 = vmatpush1.bf16.msra.mxu1 %v1070_v13  ;;  %v7210_v16 = vpop.permute.xlu1 %2717 }
 0x115   : > { %v7212_v5 = vpop.permute.xlu0 %2715  ;;  %vm2591_vm1 = vcmp.eq.s32.totalorder %v2583_v12, 1  ;;  %v7333_v12 = vld [vmem:[%s6776_s20 + $0x8] sm:$0xff] }
 0x116   : > { %1695 = vrot.lane.b32.xlu1 %v7122_v2, %s6718_s27 }
 0x117   : > { %1635 = vrot.lane.b32.xlu0 %v7140_v22, %s6717_s17 }
 0x118   : > { %v7218_v0 = vpop.permute.xlu1 %2733 }
 0x119   : > { %v7220_v18 = vpop.permute.xlu0 %2719 }
 0x11a   : > { %1699 = vrot.lane.b32.xlu1 %v7098_v60, %s6718_s27 }
 0x11b   : > { %1697 = vrot.lane.b32.xlu0 %v7102_v3, %s6718_s27 }
 0x11c   : > { %v7226_v10 = vpop.permute.xlu1 %2737 }
 0x11d   : > { %v7228_v20 = vpop.permute.xlu0 %2735 }
 0x11e   : > { %1693 = vrot.lane.b32.xlu1 %v7140_v22, %s6718_s27 }
 0x11f   : > { %1701 = vrot.lane.b32.xlu0 %v7114_v11, %s6718_s27 }
 0x120   : > { %v7234_v4 = vpop.permute.xlu1 %2741 }
 0x121   : > { %v7236_v21 = vpop.permute.xlu0 %2739 }
 0x122   : > { %1755 = vrot.lane.b32.xlu1 %v7102_v3, %s6719_s26 }
 0x123   : > { %1753 = vrot.lane.b32.xlu0 %v7122_v2, %s6719_s26 }
 0x124   : > { %v1116_v6 = vpop.permute.xlu1 %1115 }
 0x125   : > { %v7242_v23 = vpop.permute.xlu0 %2743 }
 0x126   : > { %1759 = vrot.lane.b32.xlu1 %v7114_v11, %s6719_s26 }
 0x127   : > { %1757 = vrot.lane.b32.xlu0 %v7098_v60, %s6719_s26 }
 0x128   : > { %v1120_v24 = vpop.permute.xlu1 %1119 }
 0x129   : > { %v1118_v29 = vpop.permute.xlu0 %1117 }
 0x12a   : > { %1811 = vrot.lane.b32.xlu1 %v7122_v2, %s6720_s19  ;;  %v1127_v30 = vsel %vm9808_vm12, %v1116_v6, %v1118_v29  ;;  %v1128_v37 = vsel %vm9808_vm12, %v1118_v29, %v1120_v24  ;;  %v2567_v29 = vrot.slane %v6979_v35, %v2550_v47 }
 0x12b   : > { %1751 = vrot.lane.b32.xlu0 %v7140_v22, %s6719_s26  ;;  %3417 = vmatprep.subr.bf16.mxu0 %v1127_v30 }
 0x12c   : > { %v1114_v31 = vpop.permute.xlu1 %1113 }
 0x12d   : > { %v7253_v33 = vpop.permute.xlu0 %1121  ;;  %v1126_v34 = vsel %vm9808_vm12, %v1114_v31, %v1116_v6  ;;  %v2571_v6 = vrot.slane %v2551_v58, %v2550_v47  ;;  %v7322_v58 = vld [vmem:[%s6776_s20] sm:$0xff] }
 0x12e   : > { %9918 = vst [vmem:[#allocation7_spill] sm:$0xff] %v7253_v33  ;;  %1815 = vrot.lane.b32.xlu1 %v7098_v60, %s6720_s19  ;;  %3418 = vmatpush1.bf16.msra.mxu0 %v1126_v34  ;;  %v1129_v36 = vsel %vm9808_vm12, %v1120_v24, %v7253_v33  ;;  %v2575_v24 = vrot.slane %v2555_v59, %v2550_v47  ;;  %vm2590_vm12 = vcmp.eq.s32.totalorder %v2579_v63, 1 }
 0x12f   : > { %1813 = vrot.lane.b32.xlu0 %v7102_v3, %s6720_s19  ;;  %3756 = vmatprep.subr.bf16.mxu1 %v1129_v36  ;;  %vm2588_vm11 = vcmp.eq.s32.totalorder %v2571_v6, 1  ;;  %vm2594_vm14 = vmpackc.low %vm2591_vm1, %vm2590_vm12  ;;  %vm9827_vm12 = vcmask 875520  }
 0x130   : > { %3757 = vmatpush1.bf16.msra.mxu1 %v1128_v37  ;;  %v1176_v39 = vpop.permute.xlu1 %1175  ;;  %vm2589_vm15 = vcmp.eq.s32.totalorder %v2575_v24, 1  ;;  %v2587_v37 = vrot.slane %v2567_v29, %v2550_v47  ;;  %v6585_v24 = vld [vmem:[%s9796_s1 + $0x30] ss:$24 sps:$4 sm:$0xff]  }
 0x131   : > { %v1174_v41 = vpop.permute.xlu0 %1173  ;;  %3420 = vmatmul.mubr.bf16.vlgmr.msra.gmra.mrb[0].mxu0 %v6573_v38  ;;  %vm2593_vm8 = vmpackc.low %vm2589_vm15, %vm2588_vm11  ;;  %vm2610_vm15 = vcmask 1043456   ;;  %vm9824_vm11 = vcmask 7168  }
 0x132   : > { %1809 = vrot.lane.b32.xlu1 %v7140_v22, %s6720_s19  ;;  %v1185_v43 = vsel %vm1183_vm13, %v1174_v41, %v1176_v39  ;;  %vm2592_vm9 = vcmp.eq.s32.totalorder %v2587_v37, 1  ;;  %v2596_v48 = vsel %vm2593_vm8, 65537, %v9834_v25  ;;  %v7354_v37 = vld [vmem:[%s6776_s20 + $0x18] sm:$0xff]  ;;  %vm2724_vm8 = vcmask 162816  }
 0x133   : > { %1817 = vrot.lane.b32.xlu0 %v7114_v11, %s6720_s19  ;;  %3500 = vmatprep.subr.bf16.mxu0 %v1185_v43  ;;  %vm2595_vm1 = vmpackc.low %vm2592_vm9, %vm2592_vm9  ;;  %vm9829_vm9 = vcmask 891904  }
 0x134   : > { %v7271_v44 = vpop.permute.xlu1 %1179  ;;  %3759 = vmatmul.mubr.bf16.vlgmr.msra.gmra.mrb[0].mxu1 %v6573_v38  ;;  %v2598_v7 = vsel %vm2595_vm1, 65537, %v9834_v25 }
 0x135   : > { %v1178_v46 = vpop.permute.xlu0 %1177 }
 0x136   : > { %1871 = vrot.lane.b32.xlu1 %v7102_v3, %s6721_s25  ;;  %v1187_v49 = vsel %vm1183_vm13, %v1178_v46, %v7271_v44  ;;  %v1186_v51 = vsel %vm1183_vm13, %v1176_v39, %v1178_v46  ;;  %v2597_v46 = vsel %vm2594_vm14, 65537, %v9834_v25  ;;  %vm9821_vm14 = vcmask 883712  }
 0x137   : > { %1869 = vrot.lane.b32.xlu0 %v7122_v2, %s6721_s25  ;;  %3839 = vmatprep.subr.bf16.mxu1 %v1187_v49 }
 0x138   : > { %3840 = vmatpush1.bf16.msra.mxu1 %v1186_v51  ;;  %v1232_v53 = vpop.permute.xlu1 %1231 }
 0x139   : > { %v1172_v55 = vpop.permute.xlu0 %1171 }
 0x13a   : > { %v1184_v57 = vsel %vm1183_vm13, %v1172_v55, %v1174_v41  ;;  %1875 = vrot.lane.b32.xlu1 %v7114_v11, %s6721_s25 }
 0x13b   : > { %1873 = vrot.lane.b32.xlu0 %v7098_v60, %s6721_s25  ;;  %3501 = vmatpush1.bf16.msra.mxu0 %v1184_v57 }
 0x13c   : > { %v1236_v9 = vpop.permute.xlu1 %1235 }
 0x13d   : > { %v1234_v62 = vpop.permute.xlu0 %1233 }
 0x13e   : > { %1927 = vrot.lane.b32.xlu1 %v7122_v2, %s9818_s12  ;;  %v1243_v13 = vsel %vm1241_vm2, %v1232_v53, %v1234_v62  ;;  %v1244_v38 = vsel %vm1241_vm2, %v1234_v62, %v1236_v9  ;;  %v7327_v62 = vld [vmem:[%s6776_s20 + $0x10] sm:$0xff] }
 0x13f   : > { %1867 = vrot.lane.b32.xlu0 %v7140_v22, %s6721_s25  ;;  %3502 = vmatprep.subr.bf16.mxu0 %v1243_v13  ;;  %v6583_v13 = vld [vmem:[%s9796_s1 + $0x34] ss:$24 sps:$4 sm:$0xff]  }
 0x140   : > { %v1230_v30 = vpop.permute.xlu1 %1229  ;;  %3429 = vmatprep.mubr.bf16.mxu0 %v6583_v13  ;;  %3768 = vmatprep.mubr.bf16.mxu1 %v6583_v13  ;;  %v2723_v13 = vrot.slane %v7220_v18, 4 }
 0x141   : > { %v1242_v31 = vsel %vm1241_vm2, %v1230_v30, %v1232_v53  ;;  %v7298_v34 = vpop.permute.xlu0 %1237  ;;  %3430 = vmatmul.mubr.bf16.gmra.mrb[4].mxu0 %v6585_v24  ;;  %3769 = vmatmul.mubr.bf16.gmra.mrb[4].mxu1 %v6585_v24  ;;  %v2747_v24 = vrot.slane %v7226_v10, 4 }
 0x142   : > { %1931 = vrot.lane.b32.xlu1 %v7098_v60, %s9818_s12  ;;  %3503 = vmatpush1.bf16.msra.mxu0 %v1242_v31  ;;  %v1245_v36 = vsel %vm1241_vm2, %v1236_v9, %v7298_v34  ;;  %v7347_v31 = vld [vmem:[%s6776_s20 + $0x20] sm:$0xff] }
 0x143   : > { %1929 = vrot.lane.b32.xlu0 %v7102_v3, %s9818_s12  ;;  %3841 = vmatprep.subr.bf16.mxu1 %v1245_v36 }
 0x144   : > { %3842 = vmatpush1.bf16.msra.mxu1 %v1244_v38  ;;  %v1292_v39 = vpop.permute.xlu1 %1291 }
 0x145   : > { %v1290_v41 = vpop.permute.xlu0 %1289 }
 0x146   : > { %1925 = vrot.lane.b32.xlu1 %v7140_v22, %s9818_s12  ;;  %v1301_v43 = vsel %vm1299_vm10, %v1290_v41, %v1292_v39 }
 0x147   : > { %1933 = vrot.lane.b32.xlu0 %v7114_v11, %s9818_s12  ;;  %3504 = vmatprep.subr.bf16.mxu0 %v1301_v43  ;;  %v2722_v43 = vrot.slane %v7210_v16, 4  ;;  %s9830_s12 = smov 92  }
 0x148   : > { %v7313_v47 = vpop.permute.xlu1 %1295 }
 0x149   : > { %v1294_v49 = vpop.permute.xlu0 %1293 }
 0x14a   : > { %2601 = vrot.lane.b32.xlu1 %v2597_v46, %s6723_s18  ;;  %v1303_v51 = vsel %vm1299_vm10, %v1294_v49, %v7313_v47  ;;  %v1302_v53 = vsel %vm1299_vm10, %v1292_v39, %v1294_v49  ;;  %v2721_v46 = vrot.slane %v7212_v5, 4  ;;  %v2746_v49 = vrot.slane %v7228_v20, 4 }
 0x14b   : > { %2599 = vrot.lane.b32.xlu0 %v2596_v48, %s6723_s18  ;;  %3843 = vmatprep.subr.bf16.mxu1 %v1303_v51  ;;  %v7366_v51 = vld [vmem:[%s6776_s20 + $0x28] sm:$0xff] }
 0x14c   : > { %3844 = vmatpush1.bf16.msra.mxu1 %v1302_v53  ;;  %v1348_v55 = vpop.permute.xlu1 %1347  ;;  %v6586_v53 = vld [vmem:[%s9796_s1 + $0x64] ss:$24 sps:$4 sm:$0xff]  }
 0x14d   : > { %v1288_v56 = vpop.permute.xlu0 %1287  ;;  %3439 = vmatprep.mubr.bf16.mxu0 %v6586_v53  ;;  %3778 = vmatprep.mubr.bf16.mxu1 %v6586_v53  ;;  %v2748_v53 = vrot.slane %v7236_v21, 4 }
 0x14e   : > { %v1300_v57 = vsel %vm1299_vm10, %v1288_v56, %v1290_v41  ;;  %2624 = vrot.lane.b32.xlu1 %v7322_v58, %s6691_s21  ;;  %v2745_v56 = vrot.slane %v7218_v0, 4 }
 0x14f   : > { %2603 = vrot.lane.b32.xlu0 %v2598_v7, %s6723_s18  ;;  %3505 = vmatpush1.bf16.msra.mxu0 %v1300_v57  ;;  %v6588_v7 = vld [vmem:[%s9796_s1 + $0x60] ss:$24 sps:$4 sm:$0xff]   ;;  %s9828_s18 = smov 94  }
 0x150   : > { %v1352_v59 = vpop.permute.xlu1 %1351  ;;  %3440 = vmatmul.mubr.bf16.gmra.mrb[8].mxu0 %v6588_v7  ;;  %3779 = vmatmul.mubr.bf16.gmra.mrb[8].mxu1 %v6588_v7 }
 0x151   : > { %v1350_v9 = vpop.permute.xlu0 %1349 }
 0x152   : > { %2628 = vrot.lane.b32.xlu1 %v7327_v62, %s6691_s21  ;;  %v1359_v63 = vsel %vm9829_vm9, %v1348_v55, %v1350_v9  ;;  %v1360_v38 = vsel %vm9829_vm9, %v1350_v9, %v1352_v59 }
 0x153   : > { %2626 = vrot.lane.b32.xlu0 %v7333_v12, %s6691_s21  ;;  %3506 = vmatprep.subr.bf16.mxu0 %v1359_v63 }
 0x154   : > { %v1346_v6 = vpop.permute.xlu1 %1345 }
 0x155   : > { %v1358_v29 = vsel %vm9829_vm9, %v1346_v6, %v1348_v55  ;;  %v7344_v30 = vpop.permute.xlu0 %1353  ;;  %v2753_v6 = vsel %vm2610_vm15, %v2745_v56, %v2746_v49 }
 0x156   : > { %2632 = vrot.lane.b32.xlu1 %v7347_v31, %s6691_s21  ;;  %3507 = vmatpush1.bf16.msra.mxu0 %v1358_v29  ;;  %v1361_v36 = vsel %vm9829_vm9, %v1352_v59, %v7344_v30  ;;  %v2726_v59 = vsel %vm2610_vm15, %v2721_v46, %v2722_v43  ;;  %vm9832_vm9 = vcmask 809984  }
 0x157   : > { %2630 = vrot.lane.b32.xlu0 %v7354_v37, %s6691_s21  ;;  %3845 = vmatprep.subr.bf16.mxu1 %v1361_v36 }
 0x158   : > { %3846 = vmatpush1.bf16.msra.mxu1 %v1360_v38  ;;  %v1408_v39 = vpop.permute.xlu1 %1407  ;;  %v2727_v38 = vsel %vm2724_vm8, %v2726_v59, %v7210_v16  ;;  %v2750_v16 = vrot.slane %v7242_v23, 4  ;;  %v2757_v59 = vsel %vm9824_vm11, %v2748_v53, %v7236_v21 }
 0x159   : > { %v1406_v41 = vpop.permute.xlu0 %1405  ;;  %vm2731_vm1 = vcmp.ne.s16.totalorder %v2727_v38, 0  ;;  %v6595_v38 = vld [vmem:[%s9796_s1 + $0xf4] ss:$24 sps:$4 sm:$0xff]  }
 0x15a   : > { %1985 = vrot.lane.b32.xlu1 %v7122_v2, %s9822_s24  ;;  %v1417_v48 = vsel %vm9821_vm14, %v1406_v41, %v1408_v39 }
 0x15b   : > { %2634 = vrot.lane.b32.xlu0 %v7366_v51, %s6691_s21  ;;  %3508 = vmatprep.subr.bf16.mxu0 %v1417_v48  ;;  %v2754_v48 = vsel %vm9824_vm11, %v2753_v6, %v7228_v20  ;;  %v2749_v20 = vrot.slane %v7234_v4, 4 }
 0x15c   : > { %v7373_v55 = vpop.permute.xlu1 %1411  ;;  %v2769_v7 = vsel %vm2731_vm1, %v7333_v12, %v2754_v48 }
 0x15d   : > { %v1410_v57 = vpop.permute.xlu0 %1409  ;;  %v2760_v6 = vsel %vm2610_vm15, %v2749_v20, %v2750_v16  ;;  %v6594_v16 = vld [vmem:[%s9796_s1 + $0xc0] ss:$24 sps:$4 sm:$0xff]  }
 0x15e   : > { %1989 = vrot.lane.b32.xlu1 %v7098_v60, %s9822_s24  ;;  %v1419_v9 = vsel %vm9821_vm14, %v1410_v57, %v7373_v55  ;;  %v1418_v63 = vsel %vm9821_vm14, %v1408_v39, %v1410_v57  ;;  %v2725_v39 = vsel %vm2724_vm8, %v2721_v46, %v7212_v5  ;;  %v6589_v5 = vld [vmem:[%s9796_s1 + $0x94] ss:$24 sps:$4 sm:$0xff]   ;;  %v2755_v46 = vsel %vm2610_vm15, %v2746_v49, %v2747_v24 }
 0x15f   : > { %1987 = vrot.lane.b32.xlu0 %v7102_v3, %s9822_s24  ;;  %3847 = vmatprep.subr.bf16.mxu1 %v1419_v9  ;;  %v2752_v9 = vsel %vm9824_vm11, %v2745_v56, %v7218_v0  ;;  %v6591_v0 = vld [vmem:[%s9796_s1 + $0x90] ss:$24 sps:$4 sm:$0xff]   ;;  %v2756_v24 = vsel %vm9824_vm11, %v2755_v46, %v7226_v10 }
 0x160   : > { %3848 = vmatpush1.bf16.msra.mxu1 %v1418_v63  ;;  %v1464_v29 = vpop.permute.xlu1 %1463  ;;  %v2728_v63 = vsel %vm2610_vm15, %v2722_v43, %v2723_v13  ;;  %3449 = vmatprep.mubr.bf16.mxu0 %v6589_v5 }
 0x161   : > { %v1404_v36 = vpop.permute.xlu0 %1403  ;;  %3788 = vmatprep.mubr.bf16.mxu1 %v6589_v5  ;;  %v2729_v56 = vsel %vm2724_vm8, %v2728_v63, %v7220_v18  ;;  %v2758_v18 = vsel %vm2610_vm15, %v2748_v53, %v2749_v20  ;;  %3450 = vmatmul.mubr.bf16.gmra.mrb[12].mxu0 %v6591_v0 }
 0x162   : > { %v1416_v57 = vsel %vm9821_vm14, %v1404_v36, %v1406_v41  ;;  %1983 = vrot.lane.b32.xlu1 %v7140_v22, %s9822_s24  ;;  %vm2730_vm14 = vcmp.ne.s16.totalorder %v2725_v39, 0  ;;  %vm2732_vm8 = vcmp.ne.s16.totalorder %v2729_v56, 0  ;;  %3789 = vmatmul.mubr.bf16.gmra.mrb[12].mxu1 %v6591_v0 }
 0x163   : > { %1991 = vrot.lane.b32.xlu0 %v7114_v11, %s9822_s24  ;;  %3509 = vmatpush1.bf16.msra.mxu0 %v1416_v57  ;;  %v2768_v49 = vsel %vm2730_vm14, %v7322_v58, %v2752_v9  ;;  %v2771_v57 = vsel %vm2730_vm14, %v7354_v37, %v2757_v59  ;;  %v2761_v9 = vsel %vm9824_vm11, %v2760_v6, %v7242_v23  ;;  %vm9826_vm14 = vcmask 867328   ;;  %v6598_v59 = vld [vmem:[%s9796_s1 + $0xf0] ss:$24 sps:$4 sm:$0xff]   ;;  %s9851_s24 = smov 96  }
 0x164   : > { %v1468_v41 = vpop.permute.xlu1 %1467  ;;  %v2770_v63 = vsel %vm2732_vm8, %v7327_v62, %v2756_v24  ;;  %v2759_v23 = vsel %vm9824_vm11, %v2758_v18, %v7234_v4  ;;  %v2773_v20 = vsel %vm2732_vm8, %v7366_v51, %v2761_v9  ;;  %vm1647_vm8 = vcmask 850944  }
 0x165   : > { %v1466_v43 = vpop.permute.xlu0 %1465  ;;  %v2772_v46 = vsel %vm2731_vm1, %v7347_v31, %v2759_v23  ;;  %vm9825_vm1 = vcmask 859136   ;;  %vm1705_vm11 = vcmask 842752  }
 0x166   : > { %2788 = vrot.lane.b32.xlu1 %v2769_v7, %s6692_s22  ;;  %v1475_v13 = vsel %vm9827_vm12, %v1464_v29, %v1466_v43  ;;  %v1476_v39 = vsel %vm9827_vm12, %v1466_v43, %v1468_v41 }
 0x167   : > { %2786 = vrot.lane.b32.xlu0 %v2768_v49, %s6692_s22  ;;  %3510 = vmatprep.subr.bf16.mxu0 %v1475_v13 }
 0x168   : > { %v1462_v36 = vpop.permute.xlu1 %1461 }
 0x169   : > { %v1474_v21 = vsel %vm9827_vm12, %v1462_v36, %v1464_v29  ;;  %v7430_v48 = vpop.permute.xlu0 %1469  ;;  %v6592_v29 = vld [vmem:[%s9796_s1 + $0xc4] ss:$24 sps:$4 sm:$0xff]  }
 0x16a   : > { %2792 = vrot.lane.b32.xlu1 %v2771_v57, %s6692_s22  ;;  %3511 = vmatpush1.bf16.msra.mxu0 %v1474_v21  ;;  %v1477_v10 = vsel %vm9827_vm12, %v1468_v41, %v7430_v48  ;;  %v7482_v36 = vld [vmem:[%s6776_s20 + $0xc] ss:$24 sps:$4 sm:$0xff]   ;;  %v6601_v21 = vld [vmem:[%s9796_s1 + $0x120] ss:$24 sps:$4 sm:$0xff]   ;;  %vm9833_vm12 = vcmask 818176  }
 0x16b   : > { %2790 = vrot.lane.b32.xlu0 %v2770_v63, %s6692_s22  ;;  %3849 = vmatprep.subr.bf16.mxu1 %v1477_v10  ;;  %v7506_v10 = vld [vmem:[%s6776_s20 + $0x10] ss:$24 sps:$4 sm:$0xff]  }
 0x16c   : > { %3850 = vmatpush1.bf16.msra.mxu1 %v1476_v39  ;;  %v1524_v53 = vpop.permute.xlu1 %1523  ;;  %3459 = vmatprep.mubr.bf16.mxu0 %v6592_v29 }
 0x16d   : > { %v1522_v5 = vpop.permute.xlu0 %1521  ;;  %3798 = vmatprep.mubr.bf16.mxu1 %v6592_v29  ;;  %3460 = vmatmul.mubr.bf16.gmra.mrb[16].mxu0 %v6594_v16 }
 0x16e   : > { %2796 = vrot.lane.b32.xlu1 %v2773_v20, %s6692_s22  ;;  %v1533_v4 = vsel %vm9826_vm14, %v1522_v5, %v1524_v53  ;;  %3799 = vmatmul.mubr.bf16.gmra.mrb[16].mxu1 %v6594_v16  ;;  %v7517_v16 = vld [vmem:[%s6776_s20 + $0x4] ss:$24 sps:$4 sm:$0xff]   ;;  %v6604_v20 = vld [vmem:[%s9796_s1 + $0x150] ss:$24 sps:$4 sm:$0xff]  }
 0x16f   : > { %2794 = vrot.lane.b32.xlu0 %v2772_v46, %s6692_s22  ;;  %3512 = vmatprep.subr.bf16.mxu0 %v1533_v4 }
 0x170   : > { %v7458_v41 = vpop.permute.xlu1 %1527  ;;  %3469 = vmatprep.mubr.bf16.mxu0 %v6595_v38  ;;  %3808 = vmatprep.mubr.bf16.mxu1 %v6595_v38  ;;  %v6607_v38 = vld [vmem:[%s9796_s1 + $0xc] ss:$24 sps:$4 sm:$0xff]  }
 0x171   : > { %9919 = vst [vmem:[#allocation8_spill] sm:$0xff] %v7458_v41  ;;  %v1526_v0 = vpop.permute.xlu0 %1525 }
 0x172   : > { %v1535_v43 = vsel %vm9826_vm14, %v1526_v0, %v7458_v41  ;;  %v1534_v7 = vsel %vm9826_vm14, %v1524_v53, %v1526_v0  ;;  %2045 = vrot.lane.b32.xlu1 %v7102_v3, %s6725_s14  ;;  %v6602_v53 = vld [vmem:[%s9796_s1 + $0x154] ss:$24 sps:$4 sm:$0xff]  }
 0x173   : > { %3851 = vmatprep.subr.bf16.mxu1 %v1535_v43  ;;  %2043 = vrot.lane.b32.xlu0 %v7122_v2, %s6725_s14 }
 0x174   : > { %3852 = vmatpush1.bf16.msra.mxu1 %v1534_v7  ;;  %v1580_v56 = vpop.permute.xlu1 %1579 }
 0x175   : > { %v1520_v49 = vpop.permute.xlu0 %1519  ;;  %3470 = vmatmul.mubr.bf16.gmra.mrb[20].mxu0 %v6598_v59 }
 0x176   : > { %v1532_v3 = vsel %vm9826_vm14, %v1520_v49, %v1522_v5  ;;  %2049 = vrot.lane.b32.xlu1 %v7114_v11, %s6725_s14  ;;  %3809 = vmatmul.mubr.bf16.gmra.mrb[20].mxu1 %v6598_v59  ;;  %v6599_v11 = vld [vmem:[%s9796_s1 + $0x124] ss:$24 sps:$4 sm:$0xff]   ;;  %vm9846_vm14 = vcmask 826368  }
 0x177   : > { %3513 = vmatpush1.bf16.msra.mxu0 %v1532_v3  ;;  %2047 = vrot.lane.b32.xlu0 %v7098_v60, %s6725_s14  ;;  %v7490_v60 = vld [vmem:[%s6776_s20 + $0x8] ss:$24 sps:$4 sm:$0xff]  }
 0x178   : > { %v1584_v13 = vpop.permute.xlu1 %1583  ;;  %3479 = vmatprep.mubr.bf16.mxu0 %v6599_v11  ;;  %3818 = vmatprep.mubr.bf16.mxu1 %v6599_v11 }
 0x179   : > { %v1582_v6 = vpop.permute.xlu0 %1581 }
 0x17a   : > { %v1591_v24 = vsel %vm9825_vm1, %v1580_v56, %v1582_v6  ;;  %2101 = vrot.lane.b32.xlu1 %v7122_v2, %s9851_s24  ;;  %v1592_v63 = vsel %vm9825_vm1, %v1582_v6, %v1584_v13 }
 0x17b   : > { %3514 = vmatprep.subr.bf16.mxu0 %v1591_v24  ;;  %2041 = vrot.lane.b32.xlu0 %v7140_v22, %s6725_s14 }
 0x17c   : > { %v1578_v18 = vpop.permute.xlu1 %1577 }
 0x17d   : > { %v1590_v2 = vsel %vm9825_vm1, %v1578_v18, %v1580_v56  ;;  %v7496_v57 = vpop.permute.xlu0 %1585  ;;  %3480 = vmatmul.mubr.bf16.gmra.mrb[24].mxu0 %v6601_v21  ;;  %v7540_v56 = vld [vmem:[%s6776_s20] ss:$24 sps:$4 sm:$0xff]  }
 0x17e   : > { %9920 = vst [vmem:[#allocation9_spill] sm:$0xff] %v7496_v57  ;;  %3515 = vmatpush1.bf16.msra.mxu0 %v1590_v2  ;;  %v1593_v9 = vsel %vm9825_vm1, %v1584_v13, %v7496_v57  ;;  %2105 = vrot.lane.b32.xlu1 %v7482_v36, %s9851_s24  ;;  %vm1763_vm1 = vcmask 834560  }
 0x17f   : > { %3853 = vmatprep.subr.bf16.mxu1 %v1593_v9  ;;  %2103 = vrot.lane.b32.xlu0 %v7490_v60, %s9851_s24 }
 0x180   : > { %3854 = vmatpush1.bf16.msra.mxu1 %v1592_v63  ;;  %v1640_v29 = vpop.permute.xlu1 %1639  ;;  %3489 = vmatprep.mubr.bf16.mxu0 %v6602_v53 }
 0x181   : > { %v1638_v39 = vpop.permute.xlu0 %1637  ;;  %3819 = vmatmul.mubr.bf16.gmra.mrb[24].mxu1 %v6601_v21 }
 0x182   : > { %v1649_v23 = vsel %vm1647_vm8, %v1638_v39, %v1640_v29  ;;  %2099 = vrot.lane.b32.xlu1 %v7140_v22, %s9851_s24  ;;  %3828 = vmatprep.mubr.bf16.mxu1 %v6602_v53 }
 0x183   : > { %3516 = vmatprep.subr.bf16.mxu0 %v1649_v23  ;;  %2107 = vrot.lane.b32.xlu0 %v7506_v10, %s9851_s24 }
 0x184   : > { %v7519_v5 = vpop.permute.xlu1 %1643 }
 0x185   : > { %v1642_v46 = vpop.permute.xlu0 %1641  ;;  %3490 = vmatmul.mubr.bf16.gmra.mrb[28].mxu0 %v6604_v20 }
 0x186   : > { %v1651_v22 = vsel %vm1647_vm8, %v1642_v46, %v7519_v5  ;;  %v1650_v4 = vsel %vm1647_vm8, %v1640_v29, %v1642_v46  ;;  %2161 = vrot.lane.b32.xlu1 %v7490_v60, %s6727_s7  ;;  %3532 = vmatprep.mubr.bf16.mxu0 %v6607_v38 }
 0x187   : > { %3855 = vmatprep.subr.bf16.mxu1 %v1651_v22  ;;  %2159 = vrot.lane.b32.xlu0 %v7517_v16, %s6727_s7 }
 0x188   : > { %3856 = vmatpush1.bf16.msra.mxu1 %v1650_v4  ;;  %v1696_v0 = vpop.permute.xlu1 %1695 }
 0x189   : > { %v1636_v43 = vpop.permute.xlu0 %1635  ;;  %3829 = vmatmul.mubr.bf16.gmra.mrb[28].mxu1 %v6604_v20 }
 0x18a   : > { %v1648_v7 = vsel %vm1647_vm8, %v1636_v43, %v1638_v39  ;;  %2165 = vrot.lane.b32.xlu1 %v7506_v10, %s6727_s7  ;;  %3871 = vmatprep.mubr.bf16.mxu1 %v6607_v38 }
 0x18b   : > { %3517 = vmatpush1.bf16.msra.mxu0 %v1648_v7  ;;  %2163 = vrot.lane.b32.xlu0 %v7482_v36, %s6727_s7 }
 0x18c   : > { %v1700_v59 = vpop.permute.xlu1 %1699 }
 0x18d   : > { %v1698_v49 = vpop.permute.xlu0 %1697 }
 0x18e   : > { %v1707_v3 = vsel %vm1705_vm11, %v1696_v0, %v1698_v49  ;;  %2217 = vrot.lane.b32.xlu1 %v7517_v16, %s9828_s18  ;;  %v1708_v18 = vsel %vm1705_vm11, %v1698_v49, %v1700_v59 }
 0x18f   : > { %3518 = vmatprep.subr.bf16.mxu0 %v1707_v3  ;;  %2157 = vrot.lane.b32.xlu0 %v7540_v56, %s6727_s7 }
 0x190   : > { %v1694_v13 = vpop.permute.xlu1 %1693 }
 0x191   : > { %v1706_v6 = vsel %vm1705_vm11, %v1694_v13, %v1696_v0  ;;  %v7548_v24 = vpop.permute.xlu0 %1701 }
 0x192   : > { %3519 = vmatpush1.bf16.msra.mxu0 %v1706_v6  ;;  %v1709_v11 = vsel %vm1705_vm11, %v1700_v59, %v7548_v24  ;;  %2221 = vrot.lane.b32.xlu1 %v7482_v36, %s9828_s18 }
 0x193   : > { %3857 = vmatprep.subr.bf16.mxu1 %v1709_v11  ;;  %2219 = vrot.lane.b32.xlu0 %v7490_v60, %s9828_s18 }
 0x194   : > { %3858 = vmatpush1.bf16.msra.mxu1 %v1708_v18  ;;  %v1756_v21 = vpop.permute.xlu1 %1755 }
 0x195   : > { %v1754_v2 = vpop.permute.xlu0 %1753 }
 0x196   : > { %v1765_v9 = vsel %vm1763_vm1, %v1754_v2, %v1756_v21  ;;  %2215 = vrot.lane.b32.xlu1 %v7540_v56, %s9828_s18 }
 0x197   : > { %3520 = vmatprep.subr.bf16.mxu0 %v1765_v9  ;;  %2223 = vrot.lane.b32.xlu0 %v7506_v10, %s9828_s18  ;;  %s9831_s18 = smov 91  }
 0x198   : > { %v7562_v63 = vpop.permute.xlu1 %1759 }
 0x199   : > { %v1758_v29 = vpop.permute.xlu0 %1757 }
 0x19a   : > { %v1767_v39 = vsel %vm1763_vm1, %v1758_v29, %v7562_v63  ;;  %v1766_v23 = vsel %vm1763_vm1, %v1756_v21, %v1758_v29  ;;  %2277 = vrot.lane.b32.xlu1 %v7490_v60, %s9850_s11 }
 0x19b   : > { %3859 = vmatprep.subr.bf16.mxu1 %v1767_v39  ;;  %2275 = vrot.lane.b32.xlu0 %v7517_v16, %s9850_s11 }
 0x19c   : > { %3860 = vmatpush1.bf16.msra.mxu1 %v1766_v23  ;;  %v1812_v53 = vpop.permute.xlu1 %1811 }
 0x19d   : > { %v1752_v20 = vpop.permute.xlu0 %1751 }
 0x19e   : > { %v1764_v46 = vsel %vm1763_vm1, %v1752_v20, %v1754_v2  ;;  %2281 = vrot.lane.b32.xlu1 %v7506_v10, %s9850_s11 }
 0x19f   : > { %3521 = vmatpush1.bf16.msra.mxu0 %v1764_v46  ;;  %2279 = vrot.lane.b32.xlu0 %v7482_v36, %s9850_s11 }
 0x1a0   : > { %v1816_v22 = vpop.permute.xlu1 %1815 }
 0x1a1   : > { %v1814_v4 = vpop.permute.xlu0 %1813 }
 0x1a2   : > { %v1823_v0 = vsel %vm9846_vm14, %v1812_v53, %v1814_v4  ;;  %2333 = vrot.lane.b32.xlu1 %v7517_v16, %s9830_s12  ;;  %v1824_v49 = vsel %vm9846_vm14, %v1814_v4, %v1816_v22 }
 0x1a3   : > { %3522 = vmatprep.subr.bf16.mxu0 %v1823_v0  ;;  %2273 = vrot.lane.b32.xlu0 %v7540_v56, %s9850_s11  ;;  %s9931_s11 = smov 106  }
 0x1a4   : > { %v1810_v43 = vpop.permute.xlu1 %1809 }
 0x1a5   : > { %v1822_v7 = vsel %vm9846_vm14, %v1810_v43, %v1812_v53  ;;  %v7582_v38 = vpop.permute.xlu0 %1817 }
 0x1a6   : > { %3523 = vmatpush1.bf16.msra.mxu0 %v1822_v7  ;;  %v1825_v59 = vsel %vm9846_vm14, %v1816_v22, %v7582_v38  ;;  %2337 = vrot.lane.b32.xlu1 %v7482_v36, %s9830_s12 }
 0x1a7   : > { %3861 = vmatprep.subr.bf16.mxu1 %v1825_v59  ;;  %2335 = vrot.lane.b32.xlu0 %v7490_v60, %s9830_s12 }
 0x1a8   : > { %3862 = vmatpush1.bf16.msra.mxu1 %v1824_v49  ;;  %v1872_v3 = vpop.permute.xlu1 %1871 }
 0x1a9   : > { %v1870_v13 = vpop.permute.xlu0 %1869 }
 0x1aa   : > { %v1881_v6 = vsel %vm9833_vm12, %v1870_v13, %v1872_v3  ;;  %2331 = vrot.lane.b32.xlu1 %v7540_v56, %s9830_s12 }
 0x1ab   : > { %3524 = vmatprep.subr.bf16.mxu0 %v1881_v6  ;;  %2339 = vrot.lane.b32.xlu0 %v7506_v10, %s9830_s12  ;;  %s9848_s12 = smov 90  }
 0x1ac   : > { %v7596_v11 = vpop.permute.xlu1 %1875 }
 0x1ad   : > { %v1874_v18 = vpop.permute.xlu0 %1873 }
 0x1ae   : > { %v1883_v21 = vsel %vm9833_vm12, %v1874_v18, %v7596_v11  ;;  %v1882_v2 = vsel %vm9833_vm12, %v1872_v3, %v1874_v18  ;;  %2393 = vrot.lane.b32.xlu1 %v7490_v60, %s9831_s18 }
 0x1af   : > { %3863 = vmatprep.subr.bf16.mxu1 %v1883_v21  ;;  %2391 = vrot.lane.b32.xlu0 %v7517_v16, %s9831_s18 }
 0x1b0   : > { %3864 = vmatpush1.bf16.msra.mxu1 %v1882_v2  ;;  %v1928_v9 = vpop.permute.xlu1 %1927 }
 0x1b1   : > { %v1868_v29 = vpop.permute.xlu0 %1867 }
 0x1b2   : > { %v1880_v39 = vsel %vm9833_vm12, %v1868_v29, %v1870_v13  ;;  %2397 = vrot.lane.b32.xlu1 %v7506_v10, %s9831_s18  ;;  %vm2608_vm12 = vcmask 146432  }
 0x1b3   : > { %3525 = vmatpush1.bf16.msra.mxu0 %v1880_v39  ;;  %2395 = vrot.lane.b32.xlu0 %v7482_v36, %s9831_s18 }
 0x1b4   : > { %v1932_v23 = vpop.permute.xlu1 %1931 }
 0x1b5   : > { %v1930_v53 = vpop.permute.xlu0 %1929 }
 0x1b6   : > { %v1939_v20 = vsel %vm9832_vm9, %v1928_v9, %v1930_v53  ;;  %2449 = vrot.lane.b32.xlu1 %v7517_v16, %s9848_s12  ;;  %v1940_v43 = vsel %vm9832_vm9, %v1930_v53, %v1932_v23 }
 0x1b7   : > { %3526 = vmatprep.subr.bf16.mxu0 %v1939_v20  ;;  %2389 = vrot.lane.b32.xlu0 %v7540_v56, %s9831_s18  ;;  %s9849_s18 = smov 89  }
 0x1b8   : > { %v1926_v46 = vpop.permute.xlu1 %1925 }
 0x1b9   : > { %v1938_v22 = vsel %vm9832_vm9, %v1926_v46, %v1928_v9  ;;  %v7616_v4 = vpop.permute.xlu0 %1933 }
 0x1ba   : > { %3527 = vmatpush1.bf16.msra.mxu0 %v1938_v22  ;;  %v1941_v0 = vsel %vm9832_vm9, %v1932_v23, %v7616_v4  ;;  %2453 = vrot.lane.b32.xlu1 %v7482_v36, %s9848_s12  ;;  %vm9845_vm9 = vcmask 801792  }
 0x1bb   : > { %3865 = vmatprep.subr.bf16.mxu1 %v1941_v0  ;;  %2451 = vrot.lane.b32.xlu0 %v7490_v60, %s9848_s12 }
 0x1bc   : > { %3866 = vmatpush1.bf16.msra.mxu1 %v1940_v43  ;;  %v2602_v7 = vpop.permute.xlu1 %2601 }
 0x1bd   : > { %v2600_v59 = vpop.permute.xlu0 %2599  ;;  %v2606_v23 = vrot.slane %v2602_v7, 4 }
 0x1be   : > { %2447 = vrot.lane.b32.xlu1 %v7540_v56, %s9848_s12  ;;  %v2605_v53 = vrot.slane %v2600_v59, 4 }
 0x1bf   : > { %2455 = vrot.lane.b32.xlu0 %v7506_v10, %s9848_s12  ;;  %s9923_s12 = smov 124  }
 0x1c0   : > { %v2625_v49 = vpop.permute.xlu1 %2624 }
 0x1c1   : > { %v2604_v3 = vpop.permute.xlu0 %2603 }
 0x1c2   : > { %2509 = vrot.lane.b32.xlu1 %v7490_v60, %s9849_s18  ;;  %v2607_v29 = vrot.slane %v2604_v3, 4 }
 0x1c3   : > { %2507 = vrot.lane.b32.xlu0 %v7517_v16, %s9849_s18 }
 0x1c4   : > { %v2629_v13 = vpop.permute.xlu1 %2628  ;;  %v2613_v22 = vsel %vm2610_vm15, %v2606_v23, %v2607_v29 }
 0x1c5   : > { %v2627_v6 = vpop.permute.xlu0 %2626  ;;  %v2638_v20 = vrot.slane %v2629_v13, 4  ;;  %v2614_v40 = vsel %vm2608_vm12, %v2613_v22, %v2604_v3 }
 0x1c6   : > { %2513 = vrot.lane.b32.xlu1 %v7506_v10, %s9849_s18  ;;  %v2636_v10 = vrot.slane %v2625_v49, 4  ;;  %v2637_v46 = vrot.slane %v2627_v6, 4  ;;  %vm2617_vm14 = vcmp.ne.s16.totalorder %v2614_v40, 0 }
 0x1c7   : > { %2511 = vrot.lane.b32.xlu0 %v7482_v36, %s9849_s18 }
 0x1c8   : > { %v2633_v18 = vpop.permute.xlu1 %2632  ;;  %v2642_v57 = vsel %vm2610_vm15, %v2636_v10, %v2637_v46  ;;  %v2644_v29 = vsel %vm2610_vm15, %v2637_v46, %v2638_v20 }
 0x1c9   : > { %v2631_v21 = vpop.permute.xlu0 %2630  ;;  %v2640_v43 = vrot.slane %v2633_v18, 4  ;;  %v2643_v10 = vsel %vm313_vm0, %v2625_v49, %v2642_v57 }
 0x1ca   : > { %v2639_v25 = vrot.slane %v2631_v21, 4 }
 0x1cb   : > { %2505 = vrot.lane.b32.xlu0 %v7540_v56, %s9849_s18  ;;  %s9921_s18 = smov 116  }
 0x1cc   : > { %v1986_v2 = vpop.permute.xlu1 %1985 }
 0x1cd   : > { %v2635_v9 = vpop.permute.xlu0 %2634 }
 0x1ce   : > { %v2641_v35 = vrot.slane %v2635_v9, 4 }
 0x1d0   : > { %v1990_v60 = vpop.permute.xlu1 %1989 }
 0x1d1   : > { %v1988_v39 = vpop.permute.xlu0 %1987 }
 0x1d2   : > { %v1997_v16 = vsel %vm9845_vm9, %v1986_v2, %v1988_v39  ;;  %v1998_v27 = vsel %vm9845_vm9, %v1988_v39, %v1990_v60 }
 0x1d3   : > { %3528 = vmatprep.subr.bf16.mxu0 %v1997_v16  ;;  %v2611_v16 = vsel %vm2610_vm15, %v2605_v53, %v2606_v23  ;;  %v2647_v23 = vsel %vm2610_vm15, %v2639_v25, %v2640_v43 }
 0x1d4   : > { %v1984_v36 = vpop.permute.xlu1 %1983  ;;  %v2612_v41 = vsel %vm2608_vm12, %v2611_v16, %v2602_v7  ;;  %v2648_v7 = vsel %vm313_vm0, %v2631_v21, %v2647_v23 }
 0x1d5   : > { %v1996_v56 = vsel %vm9845_vm9, %v1984_v36, %v1986_v2  ;;  %v7642_v0 = vpop.permute.xlu0 %1991  ;;  %v2609_v36 = vsel %vm2608_vm12, %v2605_v53, %v2600_v59  ;;  %v2651_v59 = vsel %vm313_vm0, %v2635_v9, %v2641_v35  ;;  %vm2616_vm7 = vcmp.ne.s16.totalorder %v2612_v41, 0 }
 0x1d6   : > { %3529 = vmatpush1.bf16.msra.mxu0 %v1996_v56  ;;  %v1999_v26 = vsel %vm9845_vm9, %v1990_v60, %v7642_v0  ;;  %v2646_v56 = vsel %vm313_vm0, %v2629_v13, %v2638_v20  ;;  %v2645_v60 = vsel %vm313_vm0, %v2627_v6, %v2644_v29  ;;  %vm2615_vm9 = vcmp.ne.s16.totalorder %v2609_v36, 0 }
 0x1d7   : > { %3867 = vmatprep.subr.bf16.mxu1 %v1999_v26  ;;  %v2649_v26 = vsel %vm2610_vm15, %v2640_v43, %v2641_v35  ;;  %v2660_v53 = vsel %vm2617_vm14, %v7327_v62, %v2646_v56  ;;  %v2659_v20 = vsel %vm2616_vm7, %v7333_v12, %v2645_v60  ;;  %v2658_v6 = vsel %vm2615_vm9, %v7322_v58, %v2643_v10 }
 0x1d8   : > { %3868 = vmatpush1.bf16.msra.mxu1 %v1998_v27  ;;  %v2789_v2 = vpop.permute.xlu1 %2788  ;;  %v2650_v25 = vsel %vm313_vm0, %v2633_v18, %v2649_v26  ;;  %v2663_v49 = vsel %vm2617_vm14, %v7366_v51, %v2651_v59  ;;  %vm2053_vm12 = vcmask 793600   ;;  %v2776_v35 = vmax.bf16 %v2660_v53, %v2646_v56 }
 0x1d9   : > { %v2787_v33 = vpop.permute.xlu0 %2786  ;;  %v2799_v39 = vrot.slane %v2789_v2, 4  ;;  %v2661_v41 = vsel %vm2615_vm9, %v7354_v37, %v2648_v7  ;;  %v2662_v18 = vsel %vm2616_vm7, %v7347_v31, %v2650_v25  ;;  %v2775_v46 = vmax.bf16 %v2659_v20, %v2645_v60 }
 0x1da   : > { %v2798_v27 = vrot.slane %v2787_v33, 4  ;;  %v2774_v12 = vmax.bf16 %v2658_v6, %v2643_v10  ;;  %v2779_v16 = vmax.bf16 %v2663_v49, %v2651_v59  ;;  %v2777_v56 = vmax.bf16 %v2661_v41, %v2648_v7 }
 0x1db   : > { %v2778_v37 = vmax.bf16 %v2662_v18, %v2650_v25  ;;  %vm2111_vm7 = vcmask 785408   ;;  %vm9855_vm9 = vcmask 777216   ;;  %vm9853_vm14 = vcmask 760832  }
 0x1dc   : > { %v2793_v3 = vpop.permute.xlu1 %2792  ;;  %v2804_v40 = vsel %vm2610_vm15, %v2798_v27, %v2799_v39 }
 0x1dd   : > { %v2791_v13 = vpop.permute.xlu0 %2790  ;;  %v2805_v29 = vsel %vm371_vm4, %v2787_v33, %v2804_v40  ;;  %v2801_v23 = vrot.slane %v2793_v3, 4 }
 0x1de   : > { %v2800_v57 = vrot.slane %v2791_v13, 4  ;;  %v2820_v59 = vmax.bf16 %v2805_v29, %v2774_v12  ;;  %v7698_v12 = vld [vmem:[%s9796_s1 + $0x3c] ss:$24 sps:$4 sm:$0xff]  }
 0x1e0   : > { %v2806_v21 = vsel %vm2610_vm15, %v2799_v39, %v2800_v57  ;;  %v2797_v9 = vpop.permute.xlu1 %2796  ;;  %v2808_v22 = vsel %vm371_vm4, %v2791_v13, %v2800_v57 }
 0x1e1   : > { %v2803_v58 = vrot.slane %v2797_v9, 4  ;;  %v2795_v43 = vpop.permute.xlu0 %2794  ;;  %v2807_v39 = vsel %vm371_vm4, %v2789_v2, %v2806_v21  ;;  %v7675_v27 = vmax.bf16 %v2808_v22, %v2776_v35 }
 0x1e2   : > { %v2802_v26 = vrot.slane %v2795_v43, 4  ;;  %v2821_v20 = vmax.bf16 %v2807_v39, %v2775_v46 }
 0x1e3   : > { %v2813_v36 = vsel %vm371_vm4, %v2797_v9, %v2803_v58 }
 0x1e4   : > { %v7677_v31 = vmax.bf16 %v2813_v36, %v2779_v16  ;;  %v2809_v60 = vsel %vm2610_vm15, %v2801_v23, %v2802_v26  ;;  %v2811_v10 = vsel %vm2610_vm15, %v2802_v26, %v2803_v58  ;;  %v2046_v53 = vpop.permute.xlu1 %2045  ;;  %v7703_v58 = vld [vmem:[%s9796_s1 + $0x8] ss:$24 sps:$4 sm:$0xff]   ;;  %vm9852_vm15 = vcmask 769024  }
 0x1e5   : > { %v2810_v33 = vsel %vm371_vm4, %v2793_v3, %v2809_v60  ;;  %v2812_v13 = vsel %vm371_vm4, %v2795_v43, %v2811_v10  ;;  %v2044_v7 = vpop.permute.xlu0 %2043  ;;  %v7707_v43 = vcombine.high %v7327_v62, %v7366_v51  ;;  %v7718_v62 = vld [vmem:[%s6776_s20 + $0x14] ss:$24 sps:$4 sm:$0xff]   ;;  %v7730_v60 = vld [vmem:[%s9796_s1 + $0x38] ss:$24 sps:$4 sm:$0xff]  }
 0x1e6   : > { %v5990_v25 = vcombine.high %v7675_v27, %v7677_v31  ;;  %v2824_v2 = vmax.bf16 %v2812_v13, %v2778_v37  ;;  %v2823_v6 = vmax.bf16 %v2810_v33, %v2777_v56  ;;  %v2055_v57 = vsel %vm2053_vm12, %v2044_v7, %v2046_v53 }
 0x1e7   : > { %3530 = vmatprep.subr.bf16.mxu0 %v2055_v57  ;;  %v5989_v9 = vcombine.low %v7675_v27, %v7677_v31  ;;  %v7960_v27 = vld [vmem:[%s9796_s1 + $0x10] ss:$24 sps:$4 sm:$0xff]   ;;  %v7965_v31 = vld [vmem:[%s9796_s1 + $0x44] ss:$24 sps:$4 sm:$0xff]  }
 0x1e8   : > { %v5987_v49 = vcombine.low %v2821_v20, %v2824_v2  ;;  %v5986_v40 = vcombine.high %v2820_v59, %v2823_v6  ;;  %v7686_v35 = vpop.permute.xlu1 %2049  ;;  %v5988_v18 = vcombine.high %v2821_v20, %v2824_v2  ;;  %v5985_v29 = vcombine.low %v2820_v59, %v2823_v6  ;;  %v7741_v59 = vld [vmem:[%s9796_s1 + $0x6c] ss:$24 sps:$4 sm:$0xff]   ;;  %v7757_v2 = vld [vmem:[%s9796_s1 + $0x68] ss:$24 sps:$4 sm:$0xff]  }
 0x1e9   : > { %v2048_v41 = vpop.permute.xlu0 %2047 }
 0x1ea   : > { %2854 = vrot.lane.b32.xlu0 %v5987_v49, %s6711_s9  ;;  %2852 = vrot.lane.b32.xlu1 %v5986_v40, %s6711_s9  ;;  %v2057_v3 = vsel %vm2053_vm12, %v2048_v41, %v7686_v35  ;;  %v2056_v21 = vsel %vm2053_vm12, %v2046_v53, %v2048_v41  ;;  %v7769_v49 = vld [vmem:[%s9796_s1 + $0x9c] ss:$24 sps:$4 sm:$0xff]  }
 0x1eb   : > { %3869 = vmatprep.subr.bf16.mxu1 %v2057_v3 }
 0x1ec   : > { %v2102_v46 = vpop.permute.xlu1 %2101  ;;  %3870 = vmatpush1.bf16.msra.mxu1 %v2056_v21 }
 0x1ed   : > { %v2042_v22 = vpop.permute.xlu0 %2041 }
 0x1ee   : > { %2858 = vrot.lane.b32.xlu0 %v5989_v9, %s6711_s9  ;;  %2856 = vrot.lane.b32.xlu1 %v5988_v18, %s6711_s9  ;;  %v2054_v16 = vsel %vm2053_vm12, %v2042_v22, %v2044_v7  ;;  %v7782_v18 = vld [vmem:[%s9796_s1 + $0x98] ss:$24 sps:$4 sm:$0xff]  }
 0x1ef   : > { %3531 = vmatpush1.bf16.msra.mxu0 %v2054_v16  ;;  %3872 = vmatmul.mubr.bf16.vlgmr.msra.gmra.mrb[0].mxu1 %v7703_v58 }
 0x1f0   : > { %v2106_v23 = vpop.permute.xlu1 %2105  ;;  %3881 = vmatprep.mubr.bf16.mxu1 %v7698_v12 }
 0x1f1   : > { %v2104_v26 = vpop.permute.xlu0 %2103 }
 0x1f2   : > { %717 = vrot.lane.b32.xlu0 %v7707_v43, %s6698_s28  ;;  %2850 = vrot.lane.b32.xlu1 %v5985_v29, %s6711_s9  ;;  %v2113_v51 = vsel %vm2111_vm7, %v2102_v46, %v2104_v26  ;;  %v2114_v39 = vsel %vm2111_vm7, %v2104_v26, %v2106_v23  ;;  %v7798_v26 = vld [vmem:[%s9796_s1 + $0xcc] ss:$24 sps:$4 sm:$0xff]  }
 0x1f3   : > { %3613 = vmatprep.subr.bf16.mxu0 %v2113_v51  ;;  %3533 = vmatmul.mubr.bf16.vlgmr.msra.gmra.mrb[0].mxu0 %v7703_v58 }
 0x1f4   : > { %v2100_v56 = vpop.permute.xlu1 %2099  ;;  %3542 = vmatprep.mubr.bf16.mxu0 %v7698_v12 }
 0x1f5   : > { %v2112_v36 = vsel %vm2111_vm7, %v2100_v56, %v2102_v46  ;;  %v7724_v37 = vpop.permute.xlu0 %2107 }
 0x1f6   : > { %1181 = vrot.lane.b32.xlu0 %v7707_v43, %s6709_s6  ;;  %1645 = vrot.lane.b32.xlu1 %v7718_v62, %s6717_s17  ;;  %v2115_v10 = vsel %vm2111_vm7, %v2106_v23, %v7724_v37  ;;  %s9934_s6 = smov 113  }
 0x1f7   : > { %3614 = vmatpush1.bf16.msra.mxu0 %v2112_v36  ;;  %3952 = vmatprep.subr.bf16.mxu1 %v2115_v10 }
 0x1f8   : > { %v2162_v53 = vpop.permute.xlu1 %2161  ;;  %3953 = vmatpush1.bf16.msra.mxu1 %v2114_v39  ;;  %v7811_v39 = vld [vmem:[%s9796_s1 + $0xc8] ss:$24 sps:$4 sm:$0xff]  }
 0x1f9   : > { %v2160_v33 = vpop.permute.xlu0 %2159  ;;  %3882 = vmatmul.mubr.bf16.gmra.mrb[4].mxu1 %v7730_v60 }
 0x1fa   : > { %1703 = vrot.lane.b32.xlu0 %v7718_v62, %s6718_s27  ;;  %775 = vrot.lane.b32.xlu1 %v7707_v43, %s6699_s29  ;;  %v2171_v13 = vsel %vm9855_vm9, %v2160_v33, %v2162_v53  ;;  %s9924_s27 = smov 99   ;;  %s9925_s29 = smov 115  }
 0x1fb   : > { %3615 = vmatprep.subr.bf16.mxu0 %v2171_v13  ;;  %3543 = vmatmul.mubr.bf16.gmra.mrb[4].mxu0 %v7730_v60 }
 0x1fc   : > { %v7750_v7 = vpop.permute.xlu1 %2165  ;;  %3891 = vmatprep.mubr.bf16.mxu1 %v7741_v59  ;;  %3552 = vmatprep.mubr.bf16.mxu0 %v7741_v59 }
 0x1fd   : > { %v2164_v20 = vpop.permute.xlu0 %2163 }
 0x1fe   : > { %1239 = vrot.lane.b32.xlu0 %v7707_v43, %s6710_s8  ;;  %311 = vrot.lane.b32.xlu1 %v7707_v43, %s6691_s21  ;;  %v2173_v6 = vsel %vm9855_vm9, %v2164_v20, %v7750_v7  ;;  %v2172_v57 = vsel %vm9855_vm9, %v2162_v53, %v2164_v20  ;;  %v7822_v53 = vld [vmem:[%s9796_s1 + $0xfc] ss:$24 sps:$4 sm:$0xff]   ;;  %s9938_s21 = smov 93   ;;  %s9939_s8 = smov 94  }
 0x1ff   : > { %3954 = vmatprep.subr.bf16.mxu1 %v2173_v6 }
 0x200   : > { %v2218_v40 = vpop.permute.xlu1 %2217  ;;  %3955 = vmatpush1.bf16.msra.mxu1 %v2172_v57 }
 0x201   : > { %v2158_v41 = vpop.permute.xlu0 %2157  ;;  %3892 = vmatmul.mubr.bf16.gmra.mrb[8].mxu1 %v7757_v2 }
 0x202   : > { %1761 = vrot.lane.b32.xlu0 %v7718_v62, %s6719_s26  ;;  %833 = vrot.lane.b32.xlu1 %v7707_v43, %s6700_s30  ;;  %v2170_v3 = vsel %vm9855_vm9, %v2158_v41, %v2160_v33  ;;  %v7839_v41 = vld [vmem:[%s9796_s1 + $0xf8] ss:$24 sps:$4 sm:$0xff]   ;;  %s9926_s26 = smov 107   ;;  %s9927_s30 = smov 123   ;;  %vm2459_vm9 = vcmask 736256  }
 0x203   : > { %3616 = vmatpush1.bf16.msra.mxu0 %v2170_v3  ;;  %3901 = vmatprep.mubr.bf16.mxu1 %v7769_v49 }
 0x204   : > { %v2222_v21 = vpop.permute.xlu1 %2221  ;;  %3553 = vmatmul.mubr.bf16.gmra.mrb[8].mxu0 %v7757_v2 }
 0x205   : > { %v2220_v9 = vpop.permute.xlu0 %2219  ;;  %3562 = vmatprep.mubr.bf16.mxu0 %v7769_v49 }
 0x206   : > { %1297 = vrot.lane.b32.xlu0 %v7707_v43, %s6711_s9  ;;  %369 = vrot.lane.b32.xlu1 %v7707_v43, %s6692_s22  ;;  %v2229_v46 = vsel %vm9852_vm15, %v2218_v40, %v2220_v9  ;;  %v2230_v23 = vsel %vm9852_vm15, %v2220_v9, %v2222_v21  ;;  %s9943_s22 = smov 90  }
 0x207   : > { %3617 = vmatprep.subr.bf16.mxu0 %v2229_v46 }
 0x208   : > { %v2216_v22 = vpop.permute.xlu1 %2215 }
 0x209   : > { %v2228_v16 = vsel %vm9852_vm15, %v2216_v22, %v2218_v40  ;;  %v7791_v29 = vpop.permute.xlu0 %2223  ;;  %3902 = vmatmul.mubr.bf16.gmra.mrb[12].mxu1 %v7782_v18 }
 0x20a   : > { %1819 = vrot.lane.b32.xlu0 %v7718_v62, %s6720_s19  ;;  %891 = vrot.lane.b32.xlu1 %v7707_v43, %s6701_s5  ;;  %v2231_v51 = vsel %vm9852_vm15, %v2222_v21, %v7791_v29  ;;  %vm9854_vm15 = vcmask 752640   ;;  %v7850_v21 = vld [vmem:[%s9796_s1 + $0x12c] ss:$24 sps:$4 sm:$0xff]   ;;  %s9928_s5 = smov 98   ;;  %s9929_s19 = smov 114  }
 0x20b   : > { %3618 = vmatpush1.bf16.msra.mxu0 %v2228_v16  ;;  %3956 = vmatprep.subr.bf16.mxu1 %v2231_v51 }
 0x20c   : > { %v2278_v56 = vpop.permute.xlu1 %2277  ;;  %3957 = vmatpush1.bf16.msra.mxu1 %v2230_v23  ;;  %3563 = vmatmul.mubr.bf16.gmra.mrb[12].mxu0 %v7782_v18 }
 0x20d   : > { %v2276_v36 = vpop.permute.xlu0 %2275  ;;  %3911 = vmatprep.mubr.bf16.mxu1 %v7798_v26  ;;  %3572 = vmatprep.mubr.bf16.mxu0 %v7798_v26 }
 0x20e   : > { %1355 = vrot.lane.b32.xlu0 %v7718_v62, %s6712_s13  ;;  %427 = vrot.lane.b32.xlu1 %v7707_v43, %s6693_s23  ;;  %v2287_v10 = vsel %vm9853_vm14, %v2276_v36, %v2278_v56 }
 0x20f   : > { %3619 = vmatprep.subr.bf16.mxu0 %v2287_v10 }
 0x210   : > { %v7824_v33 = vpop.permute.xlu1 %2281 }
 0x211   : > { %v2280_v13 = vpop.permute.xlu0 %2279  ;;  %3912 = vmatmul.mubr.bf16.gmra.mrb[16].mxu1 %v7811_v39 }
 0x212   : > { %1877 = vrot.lane.b32.xlu0 %v7718_v62, %s6721_s25  ;;  %949 = vrot.lane.b32.xlu1 %v7707_v43, %s9921_s18  ;;  %v2289_v20 = vsel %vm9853_vm14, %v2280_v13, %v7824_v33  ;;  %v2288_v6 = vsel %vm9853_vm14, %v2278_v56, %v2280_v13  ;;  %s9922_s25 = smov 108   ;;  %v7879_v13 = vld [vmem:[%s9796_s1 + $0x15c] ss:$24 sps:$4 sm:$0xff]  }
 0x213   : > { %3958 = vmatprep.subr.bf16.mxu1 %v2289_v20  ;;  %3921 = vmatprep.mubr.bf16.mxu1 %v7822_v53 }
 0x214   : > { %v2334_v57 = vpop.permute.xlu1 %2333  ;;  %3959 = vmatpush1.bf16.msra.mxu1 %v2288_v6  ;;  %3573 = vmatmul.mubr.bf16.gmra.mrb[16].mxu0 %v7811_v39 }
 0x215   : > { %v2274_v40 = vpop.permute.xlu0 %2273  ;;  %3582 = vmatprep.mubr.bf16.mxu0 %v7822_v53 }
 0x216   : > { %1413 = vrot.lane.b32.xlu0 %v7718_v62, %s9922_s25  ;;  %485 = vrot.lane.b32.xlu1 %v7707_v43, %s9923_s12  ;;  %v2286_v3 = vsel %vm9853_vm14, %v2274_v40, %v2276_v36  ;;  %v7867_v36 = vld [vmem:[%s9796_s1 + $0x128] ss:$24 sps:$4 sm:$0xff]   ;;  %vm9856_vm14 = vcmask 744448   ;;  %s9932_s25 = smov 122  }
 0x217   : > { %3620 = vmatpush1.bf16.msra.mxu0 %v2286_v3 }
 0x218   : > { %v2338_v9 = vpop.permute.xlu1 %2337 }
 0x219   : > { %v2336_v46 = vpop.permute.xlu0 %2335  ;;  %3922 = vmatmul.mubr.bf16.gmra.mrb[20].mxu1 %v7839_v41 }
 0x21a   : > { %1935 = vrot.lane.b32.xlu0 %v7718_v62, %s9924_s27  ;;  %1007 = vrot.lane.b32.xlu1 %v7707_v43, %s9925_s29  ;;  %v2345_v22 = vsel %vm9854_vm15, %v2334_v57, %v2336_v46  ;;  %v2346_v56 = vsel %vm9854_vm15, %v2336_v46, %v2338_v9  ;;  %s9935_s27 = smov 105   ;;  %s9937_s29 = smov 96  }
 0x21b   : > { %3621 = vmatprep.subr.bf16.mxu0 %v2345_v22  ;;  %3931 = vmatprep.mubr.bf16.mxu1 %v7850_v21 }
 0x21c   : > { %v2332_v16 = vpop.permute.xlu1 %2331  ;;  %3583 = vmatmul.mubr.bf16.gmra.mrb[20].mxu0 %v7839_v41 }
 0x21d   : > { %v2344_v23 = vsel %vm9854_vm15, %v2332_v16, %v2334_v57  ;;  %v7861_v51 = vpop.permute.xlu0 %2339  ;;  %3592 = vmatprep.mubr.bf16.mxu0 %v7850_v21  ;;  %v7907_v16 = vld [vmem:[%s9796_s1 + $0x14] ss:$24 sps:$4 sm:$0xff]  }
 0x21e   : > { %1471 = vrot.lane.b32.xlu0 %v7718_v62, %s9926_s26  ;;  %543 = vrot.lane.b32.xlu1 %v7707_v43, %s9927_s30  ;;  %v2347_v10 = vsel %vm9854_vm15, %v2338_v9, %v7861_v51  ;;  %v7894_v9 = vld [vmem:[%s9796_s1 + $0x158] ss:$24 sps:$4 sm:$0xff]   ;;  %9933 = vst [vmem:[#allocation11_spill] sm:$0xff] %v7907_v16  ;;  %vm3362_vm15 = vcmask 130048   ;;  %s9941_s26 = smov 92   ;;  %s9942_s30 = smov 89  }
 0x21f   : > { %3622 = vmatpush1.bf16.msra.mxu0 %v2344_v23  ;;  %3960 = vmatprep.subr.bf16.mxu1 %v2347_v10  ;;  %9930 = vst [vmem:[#allocation10_spill] sm:$0xff] %v7894_v9 }
 0x220   : > { %v2394_v20 = vpop.permute.xlu1 %2393  ;;  %3961 = vmatpush1.bf16.msra.mxu1 %v2346_v56 }
 0x221   : > { %v2392_v6 = vpop.permute.xlu0 %2391  ;;  %3932 = vmatmul.mubr.bf16.gmra.mrb[24].mxu1 %v7867_v36 }
 0x222   : > { %1993 = vrot.lane.b32.xlu0 %v7718_v62, %s9928_s5  ;;  %1065 = vrot.lane.b32.xlu1 %v7707_v43, %s9929_s19  ;;  %v2403_v57 = vsel %vm9856_vm14, %v2392_v6, %v2394_v20  ;;  %s6145_s19 = sshll.u32 %s10154_s16, 7 }
 0x223   : > { %3623 = vmatprep.subr.bf16.mxu0 %v2403_v57  ;;  %3941 = vmatprep.mubr.bf16.mxu1 %v7879_v13 }
 0x224   : > { %v7888_v40 = vpop.permute.xlu1 %2397  ;;  %3593 = vmatmul.mubr.bf16.gmra.mrb[24].mxu0 %v7867_v36 }
 0x225   : > { %v2396_v3 = vpop.permute.xlu0 %2395  ;;  %3602 = vmatprep.mubr.bf16.mxu0 %v7879_v13 }
 0x226   : > { %1529 = vrot.lane.b32.xlu0 %v7718_v62, %s9931_s11  ;;  %601 = vrot.lane.b32.xlu1 %v7707_v43, %s9932_s25  ;;  %v2405_v46 = vsel %vm9856_vm14, %v2396_v3, %v7888_v40  ;;  %v2404_v22 = vsel %vm9856_vm14, %v2394_v20, %v2396_v3  ;;  %v6611_v3 = vld [vmem:[%s6776_s20 + $0x14] ss:$24 sps:$4 sm:$0xff]  }
 0x227   : > { %3962 = vmatprep.subr.bf16.mxu1 %v2405_v46 }
 0x228   : > { %v2450_v23 = vpop.permute.xlu1 %2449  ;;  %3963 = vmatpush1.bf16.msra.mxu1 %v2404_v22 }
 0x229   : > { %v2390_v56 = vpop.permute.xlu0 %2389  ;;  %3942 = vmatmul.mubr.bf16.gmra.mrb[28].mxu1 %v7894_v9 }
 0x22a   : > { %2051 = vrot.lane.b32.xlu0 %v7718_v62, %s6725_s14  ;;  %1123 = vrot.lane.b32.xlu1 %v7707_v43, %s9934_s6  ;;  %v2402_v10 = vsel %vm9856_vm14, %v2390_v56, %v2392_v6  ;;  %s9936_s14 = smov 121   ;;  %vm2517_vm14 = vcmask 728064  }
 0x22b   : > { %3624 = vmatpush1.bf16.msra.mxu0 %v2402_v10  ;;  %6047 = vmatprep.mubr.msk.bf16.mxu1 %vm3362_vm15, %v7907_v16 }
 0x22c   : > { %v2454_v20 = vpop.permute.xlu1 %2453  ;;  %3603 = vmatmul.mubr.bf16.gmra.mrb[28].mxu0 %v7894_v9 }
 0x22d   : > { %v2452_v57 = vpop.permute.xlu0 %2451  ;;  %6039 = vmatprep.mubr.msk.bf16.mxu0 %vm3362_vm15, %v7907_v16 }
 0x22e   : > { %1587 = vrot.lane.b32.xlu0 %v7718_v62, %s9935_s27  ;;  %659 = vrot.lane.b32.xlu1 %v7707_v43, %s9936_s14  ;;  %v2461_v6 = vsel %vm2459_vm9, %v2450_v23, %v2452_v57  ;;  %v2462_v10 = vsel %vm2459_vm9, %v2452_v57, %v2454_v20 }
 0x22f   : > { %3625 = vmatprep.subr.bf16.mxu0 %v2461_v6 }
 0x230   : > { %v2448_v46 = vpop.permute.xlu1 %2447 }
 0x231   : > { %v2460_v22 = vsel %vm2459_vm9, %v2448_v46, %v2450_v23  ;;  %v7927_v56 = vpop.permute.xlu0 %2455 }
 0x232   : > { %2167 = vrot.lane.b32.xlu0 %v6611_v3, %s6727_s7  ;;  %2109 = vrot.lane.b32.xlu1 %v6611_v3, %s9937_s29  ;;  %v2463_v62 = vsel %vm2459_vm9, %v2454_v20, %v7927_v56  ;;  %s9940_s7 = smov 91  }
 0x233   : > { %3626 = vmatpush1.bf16.msra.mxu0 %v2460_v22  ;;  %3964 = vmatprep.subr.bf16.mxu1 %v2463_v62 }
 0x234   : > { %3965 = vmatpush1.bf16.msra.mxu1 %v2462_v10  ;;  %v2510_v43 = vpop.permute.xlu1 %2509 }
 0x235   : > { %v2508_v6 = vpop.permute.xlu0 %2507 }
 0x236   : > { %2283 = vrot.lane.b32.xlu0 %v6611_v3, %s9938_s21  ;;  %2225 = vrot.lane.b32.xlu1 %v6611_v3, %s9939_s8  ;;  %v2519_v23 = vsel %vm2517_vm14, %v2508_v6, %v2510_v43 }
 0x237   : > { %3627 = vmatprep.subr.bf16.mxu0 %v2519_v23 }
 0x238   : > { %v7937_v57 = vpop.permute.xlu1 %2513 }
 0x239   : > { %v2512_v46 = vpop.permute.xlu0 %2511 }
 0x23a   : > { %2399 = vrot.lane.b32.xlu0 %v6611_v3, %s9940_s7  ;;  %2341 = vrot.lane.b32.xlu1 %v6611_v3, %s9941_s26  ;;  %v2521_v20 = vsel %vm2517_vm14, %v2512_v46, %v7937_v57  ;;  %v2520_v22 = vsel %vm2517_vm14, %v2510_v43, %v2512_v46 }
 0x23b   : > { %3966 = vmatprep.subr.bf16.mxu1 %v2521_v20 }
 0x23c   : > { %3967 = vmatpush1.bf16.msra.mxu1 %v2520_v22 }
 0x23d   : > { %v2506_v10 = vpop.permute.xlu0 %2505 }
 0x23e   : > { %2515 = vrot.lane.b32.xlu0 %v6611_v3, %s9942_s30  ;;  %2457 = vrot.lane.b32.xlu1 %v6611_v3, %s9943_s22  ;;  %v2518_v62 = vsel %vm2517_vm14, %v2506_v10, %v2508_v6  ;;  %s6735_s22 = smov 31  }
 0x23f   : > { %3628 = vmatpush1.bf16.msra.mxu0 %v2518_v62 }
 0x242   : > { %2860 = vrot.lane.b32.xlu1 %v5990_v25, %s6711_s9 }
 0x25c   : > { %v2853_v23 = vpop.permute.xlu1 %2852  ;;  %v2855_v16 = vpop.permute.xlu0 %2854 }
 0x25d   : > { %v2863_v9 = vsel %vm1299_vm10, %v2853_v23, %v2855_v16 }
 0x25e   : > { %3629 = vmatprep.subr.bf16.mxu0 %v2863_v9 }
 0x260   : > { %v2857_v43 = vpop.permute.xlu1 %2856  ;;  %v7952_v46 = vpop.permute.xlu0 %2858 }
 0x261   : > { %v2865_v3 = vsel %vm1299_vm10, %v2857_v43, %v7952_v46  ;;  %v2864_v6 = vsel %vm1299_vm10, %v2855_v16, %v2857_v43  ;;  %v6635_v16 = vld [vmem:[%s6776_s20 + $0x10] ss:$24 sps:$4 sm:$0xff]   ;;  %s9358_s20 = scalar_lea.vmem %s9799_s4, %s6145_s19 }
 0x262   : > { %3968 = vmatprep.subr.bf16.mxu1 %v2865_v3 }
 0x263   : > { %3969 = vmatpush1.bf16.msra.mxu1 %v2864_v6 }
 0x264   : > { %v2851_v25 = vpop.permute.xlu1 %2850  ;;  %v718_v9 = vpop.permute.xlu0 %717 }
 0x265   : > { %v2862_v20 = vsel %vm1299_vm10, %v2851_v25, %v2853_v23  ;;  %v724_v22 = vsel %vm719_vm3, %v7083_v52, %v718_v9  ;;  %v7982_v52 = vld [vmem:[%s9796_s1 + $0x40] ss:$24 sps:$4 sm:$0xff]  }
 0x266   : > { %3630 = vmatpush1.bf16.msra.mxu0 %v2862_v20  ;;  %3985 = vmatmul.mubr.bf16.vlgmr.msra.gmra.mrb[0].mxu1 %v7960_v27 }
 0x267   : > { %6226 = vmatprep.subr.bf16.mxu0 %v724_v22  ;;  %6048 = vmatprep.mubr.msk.bf16.mxu1 %vm3362_vm15, %v7965_v31 }
 0x268   : > { %v1646_v10 = vpop.permute.xlu1 %1645  ;;  %v1182_v62 = vpop.permute.xlu0 %1181 }
 0x269   : > { %v1188_v43 = vsel %vm1183_vm13, %v7271_v44, %v1182_v62  ;;  %3646 = vmatmul.mubr.bf16.vlgmr.msra.gmra.mrb[0].mxu0 %v7960_v27  ;;  %v1652_v23 = vsel %vm1647_vm8, %v7519_v5, %v1646_v10  ;;  %v7989_v44 = vld [vmem:[%s9796_s1 + $0x74] ss:$24 sps:$4 sm:$0xff]   ;;  %vm9949_vm13 = vcmask 949248   ;;  %vm9952_vm8 = vcmask 883712  }
 0x26a   : > { %6290 = vmatprep.subr.bf16.mxu1 %v1652_v23  ;;  %6227 = vmatpush3.bf16.msra.mxu0 %v6635_v16 }
 0x26b   : > { %6291 = vmatpush3.bf16.msra.mxu1 %v1188_v43  ;;  %6040 = vmatprep.mubr.msk.bf16.mxu0 %vm3362_vm15, %v7965_v31 }
 0x26c   : > { %v776_v3 = vpop.permute.xlu1 %775  ;;  %v1704_v6 = vpop.permute.xlu0 %1703 }
 0x26d   : > { %v782_v5 = vsel %vm777_vm5, %v7104_v61, %v776_v3  ;;  %v1710_v25 = vsel %vm1705_vm11, %v7548_v24, %v1704_v6  ;;  %v8006_v61 = vld [vmem:[%s9796_s1 + $0x70] ss:$24 sps:$4 sm:$0xff]   ;;  %v8013_v24 = vld [vmem:[%s9796_s1 + $0xa4] ss:$24 sps:$4 sm:$0xff]   ;;  %vm9948_vm5 = vcmask 891904   ;;  %vm9950_vm11 = vcmask 818176  }
 0x26e   : > { %3995 = vmatmul.mubr.bf16.gmra.mrb[4].mxu1 %v7982_v52  ;;  %6228 = vmatprep.subr.bf16.mxu0 %v782_v5  ;;  %v8040_v5 = vsub.s32 0, %v6943_v15 }
 0x26f   : > { %6292 = vmatprep.subr.bf16.mxu1 %v1710_v25  ;;  %6049 = vmatprep.mubr.msk.bf16.mxu1 %vm3362_vm15, %v7989_v44 }
 0x270   : > { %v312_v9 = vpop.permute.xlu1 %311  ;;  %v1240_v20 = vpop.permute.xlu0 %1239  ;;  %9944 = vst [vmem:[#allocation12_spill] sm:$0xff] %v8040_v5 }
 0x271   : > { %v318_v22 = vsel %vm313_vm0, %v6950_v17, %v312_v9  ;;  %v1246_v16 = vsel %vm1241_vm2, %v7298_v34, %v1240_v20  ;;  %3656 = vmatmul.mubr.bf16.gmra.mrb[4].mxu0 %v7982_v52  ;;  %vm9945_vm0 = vcmask 957440   ;;  %vm9947_vm2 = vcmask 1022976  }
 0x272   : > { %6229 = vmatpush3.bf16.msra.mxu0 %v318_v22  ;;  %6293 = vmatpush3.bf16.msra.mxu1 %v1246_v16 }
 0x273   : > { %6041 = vmatprep.mubr.msk.bf16.mxu0 %vm3362_vm15, %v7989_v44 }
 0x274   : > { %v834_v17 = vpop.permute.xlu1 %833  ;;  %v1762_v10 = vpop.permute.xlu0 %1761 }
 0x275   : > { %v840_v34 = vsel %vm835_vm6, %v7129_v19, %v834_v17  ;;  %v1768_v62 = vsel %vm1763_vm1, %v7562_v63, %v1762_v10  ;;  %v8030_v19 = vld [vmem:[%s9796_s1 + $0xa0] ss:$24 sps:$4 sm:$0xff]   ;;  %v8057_v10 = vsub.s32 4, %v6943_v15  ;;  %vm4384_vm6 = vcmask 1040384  }
 0x276   : > { %4005 = vmatmul.mubr.bf16.gmra.mrb[8].mxu1 %v8006_v61  ;;  %6230 = vmatprep.subr.bf16.mxu0 %v840_v34  ;;  %v8062_v34 = vld [vmem:[%s9796_s1 + $0xd0] ss:$24 sps:$4 sm:$0xff]   ;;  %vm9951_vm1 = vcmask 1014784  }
 0x277   : > { %6294 = vmatprep.subr.bf16.mxu1 %v1768_v62  ;;  %6050 = vmatprep.mubr.msk.bf16.mxu1 %vm3362_vm15, %v8013_v24 }
 0x278   : > { %v370_v43 = vpop.permute.xlu1 %369  ;;  %v1298_v23 = vpop.permute.xlu0 %1297 }
 0x279   : > { %v376_v3 = vsel %vm371_vm4, %v6987_v45, %v370_v43  ;;  %v1304_v6 = vsel %vm1299_vm10, %v7313_v47, %v1298_v23  ;;  %3666 = vmatmul.mubr.bf16.gmra.mrb[8].mxu0 %v8006_v61  ;;  %v8037_v45 = vld [vmem:[%s9796_s1 + $0xd4] ss:$24 sps:$4 sm:$0xff]   ;;  %vm9946_vm4 = vcmask 826368  }
 0x27a   : > { %6231 = vmatpush3.bf16.msra.mxu0 %v376_v3  ;;  %6295 = vmatpush3.bf16.msra.mxu1 %v1304_v6 }
 0x27b   : > { %6042 = vmatprep.mubr.msk.bf16.mxu0 %vm3362_vm15, %v8013_v24 }
 0x27c   : > { %v892_v63 = vpop.permute.xlu1 %891  ;;  %v1820_v47 = vpop.permute.xlu0 %1819 }
 0x27d   : > { %v898_v25 = vsel %vm9945_vm0, %v7147_v28, %v892_v63  ;;  %v1826_v9 = vsel %vm9946_vm4, %v7582_v38, %v1820_v47  ;;  %v6663_v28 = vld [vmem:[%s6936_s10] sm:$0x77]  ;;  %v6665_v63 = vld [vmem:[%s6936_s10 + $0x10] sm:$0x7]  ;;  %vm9953_vm0 = vcmask 941056   ;;  %vm9954_vm4 = vcmask 809984  }
 0x27e   : > { %4015 = vmatmul.mubr.bf16.gmra.mrb[12].mxu1 %v8030_v19  ;;  %6232 = vmatprep.subr.bf16.mxu0 %v898_v25  ;;  %v4362_v38 = vrot.slane %v6663_v28, %v8040_v5  ;;  %v4366_v15 = vrot.slane %v6663_v28, %v8057_v10  ;;  %v4378_v47 = vrot.slane %v6665_v63, %v8040_v5 }
 0x27f   : > { %6296 = vmatprep.subr.bf16.mxu1 %v1826_v9  ;;  %6051 = vmatprep.mubr.msk.bf16.mxu1 %vm3362_vm15, %v8037_v45 }
 0x280   : > { %v428_v20 = vpop.permute.xlu1 %427  ;;  %v1356_v22 = vpop.permute.xlu0 %1355  ;;  %v4385_v23 = vsel %vm4384_vm6, %v4362_v38, 0.0 }
 0x281   : > { %v434_v16 = vsel %vm9947_vm2, %v7003_v54, %v428_v20  ;;  %v1362_v17 = vsel %vm9948_vm5, %v7344_v30, %v1356_v22  ;;  %3676 = vmatmul.mubr.bf16.gmra.mrb[12].mxu0 %v8030_v19  ;;  %v6664_v54 = vld [vmem:[%s6936_s10 + $0x8] sm:$0x77]  ;;  %v8071_v30 = vld [vmem:[%s9796_s1 + $0x104] ss:$24 sps:$4 sm:$0xff]   ;;  %v4386_v20 = vsel %vm4384_vm6, %v4366_v15, 0.0  ;;  %vm9955_vm2 = vcmask 1006592  }
 0x282   : > { %6233 = vmatpush3.bf16.msra.mxu0 %v434_v16  ;;  %6297 = vmatpush3.bf16.msra.mxu1 %v1362_v17  ;;  %v4370_v62 = vrot.slane %v6664_v54, %v8040_v5  ;;  %v4374_v43 = vrot.slane %v6664_v54, %v8057_v10  ;;  %v4387_v16 = vadd.f32 %v4386_v20, %v4385_v23  ;;  %v8097_v15 = vld [vmem:[%s9796_s1 + $0x100] ss:$24 sps:$4 sm:$0xff]   ;;  %vm9956_vm5 = vcmask 875520   ;;  %s6734_s10 = smov 70  }
 0x283   : > { %6043 = vmatprep.mubr.msk.bf16.mxu0 %vm3362_vm15, %v8037_v45 }
 0x284   : > { %v950_v3 = vpop.permute.xlu1 %949  ;;  %v1878_v6 = vpop.permute.xlu0 %1877  ;;  %v4388_v22 = vsel %vm4384_vm6, %v4370_v62, 0.0  ;;  %v4390_v17 = vsel %vm4384_vm6, %v4374_v43, 0.0  ;;  %v4392_v62 = vsel %vm4384_vm6, %v4378_v47, 0.0  ;;  %vm9957_vm6 = vcmask 932864  }
 0x285   : > { %v956_v25 = vsel %vm9949_vm13, %v7166_v42, %v950_v3  ;;  %v1884_v9 = vsel %vm9950_vm11, %v7596_v11, %v1878_v6  ;;  %v4389_v42 = vadd.f32 %v4388_v22, %v4387_v16  ;;  %vm9958_vm13 = vcmask 801792  }
 0x286   : > { %4025 = vmatmul.mubr.bf16.gmra.mrb[16].mxu1 %v8062_v34  ;;  %6234 = vmatprep.subr.bf16.mxu0 %v956_v25  ;;  %vm9959_vm11 = vcmask 998400  }
 0x287   : > { %6298 = vmatprep.subr.bf16.mxu1 %v1884_v9  ;;  %6052 = vmatprep.mubr.msk.bf16.mxu1 %vm3362_vm15, %v8071_v30  ;;  %v4391_v43 = vadd.f32 %v4390_v17, %v4389_v42  ;;  %v9960_v42 = vld [vmem:[#allocation8_spill] sm:$0xff] }
 0x288   : > { %v486_v28 = vpop.permute.xlu1 %485  ;;  %v1414_v38 = vpop.permute.xlu0 %1413 }
 0x289   : > { %v492_v11 = vsel %vm9951_vm1, %v7015_v14, %v486_v28  ;;  %v1420_v54 = vsel %vm9952_vm8, %v7373_v55, %v1414_v38  ;;  %3686 = vmatmul.mubr.bf16.gmra.mrb[16].mxu0 %v8062_v34  ;;  %v8104_v14 = vld [vmem:[%s9796_s1 + $0x134] ss:$24 sps:$4 sm:$0xff]   ;;  %v4393_v3 = vadd.f32 %v4392_v62, %v4391_v43  ;;  %vm9961_vm1 = vcmask 867328   ;;  %v9962_v62 = vld [vmem:[#allocation7_spill] sm:$0xff] }
 0x28a   : > { %6235 = vmatpush3.bf16.msra.mxu0 %v492_v11  ;;  %6299 = vmatpush3.bf16.msra.mxu1 %v1420_v54  ;;  %vm9963_vm8 = vcmask 924672  }
 0x28b   : > { %6044 = vmatprep.mubr.msk.bf16.mxu0 %vm3362_vm15, %v8071_v30  ;;  %4394 = vadd.xlane.f32.xlu0 %v4393_v3 }
 0x28c   : > { %v1008_v55 = vpop.permute.xlu1 %1007  ;;  %v1936_v23 = vpop.permute.xlu0 %1935 }
 0x28d   : > { %v1014_v6 = vsel %vm9953_vm0, %v7181_v50, %v1008_v55  ;;  %v1942_v63 = vsel %vm9954_vm4, %v7616_v4, %v1936_v23  ;;  %v8121_v50 = vld [vmem:[%s9796_s1 + $0x130] ss:$24 sps:$4 sm:$0xff]   ;;  %v8128_v4 = vld [vmem:[%s9796_s1 + $0x164] ss:$24 sps:$4 sm:$0xff]   ;;  %vm9965_vm0 = vcmask 990208   ;;  %vm9967_vm4 = vcmask 859136  }
 0x28e   : > { %4035 = vmatmul.mubr.bf16.gmra.mrb[20].mxu1 %v8097_v15  ;;  %6236 = vmatprep.subr.bf16.mxu0 %v1014_v6  ;;  %v6666_v55 = vld [vmem:[%s9796_s1 + $0xc] ss:$24 sps:$4 sm:$0xff]   ;;  %v9964_v6 = vld [vmem:[#allocation6_spill] sm:$0xff] }
 0x28f   : > { %6300 = vmatprep.subr.bf16.mxu1 %v1942_v63  ;;  %6053 = vmatprep.mubr.msk.bf16.mxu1 %vm3362_vm15, %v8104_v14 }
 0x290   : > { %v544_v47 = vpop.permute.xlu1 %543  ;;  %v1472_v25 = vpop.permute.xlu0 %1471 }
 0x291   : > { %v550_v9 = vsel %vm9955_vm2, %v7027_v1, %v544_v47  ;;  %v1478_v20 = vsel %vm9956_vm5, %v7430_v48, %v1472_v25  ;;  %3696 = vmatmul.mubr.bf16.gmra.mrb[20].mxu0 %v8097_v15  ;;  %v9966_v47 = vld [vmem:[#allocation9_spill] sm:$0xff]  ;;  %vm9971_vm2 = vcmask 760832   ;;  %vm9972_vm5 = vcmask 752640  }
 0x292   : > { %6237 = vmatpush3.bf16.msra.mxu0 %v550_v9  ;;  %6301 = vmatpush3.bf16.msra.mxu1 %v1478_v20  ;;  %v6667_v9 = vld [vmem:[%s9796_s1 + $0x4] ss:$24 sps:$4 sm:$0xff]  }
 0x293   : > { %6045 = vmatprep.mubr.msk.bf16.mxu0 %vm3362_vm15, %v8104_v14 }
 0x294   : > { %v1066_v1 = vpop.permute.xlu1 %1065  ;;  %v1994_v22 = vpop.permute.xlu0 %1993 }
 0x295   : > { %v1072_v48 = vsel %vm9957_vm6, %v7200_v8, %v1066_v1  ;;  %v2000_v16 = vsel %vm9958_vm13, %v7642_v0, %v1994_v22  ;;  %v8145_v8 = vld [vmem:[%s9796_s1 + $0x160] ss:$24 sps:$4 sm:$0xff]   ;;  %vm9973_vm6 = vcmask 744448   ;;  %vm5104_vm13 = vcmask 519168  }
 0x296   : > { %4045 = vmatmul.mubr.bf16.gmra.mrb[24].mxu1 %v8121_v50  ;;  %6238 = vmatprep.subr.bf16.mxu0 %v1072_v48  ;;  %v6668_v48 = vld [vmem:[%s9796_s1] ss:$24 sps:$4 sm:$0xff]  }
 0x297   : > { %6302 = vmatprep.subr.bf16.mxu1 %v2000_v16  ;;  %6054 = vmatprep.mubr.msk.bf16.mxu1 %vm3362_vm15, %v8128_v4 }
 0x298   : > { %v602_v17 = vpop.permute.xlu1 %601  ;;  %v1530_v28 = vpop.permute.xlu0 %1529 }
 0x299   : > { %v608_v38 = vsel %vm9959_vm11, %v7049_v32, %v602_v17  ;;  %v1536_v11 = vsel %vm9961_vm1, %v9960_v42, %v1530_v28  ;;  %3706 = vmatmul.mubr.bf16.gmra.mrb[24].mxu0 %v8121_v50  ;;  %vm5217_vm11 = vcmask 572416   ;;  %vm5250_vm1 = vcmask 1043968  }
 0x29a   : > { %6239 = vmatpush3.bf16.msra.mxu0 %v608_v38  ;;  %6303 = vmatpush3.bf16.msra.mxu1 %v1536_v11 }
 0x29b   : > { %6046 = vmatprep.mubr.msk.bf16.mxu0 %vm3362_vm15, %v8128_v4 }
 0x29c   : > { %v1124_v0 = vpop.permute.xlu1 %1123  ;;  %v2052_v54 = vpop.permute.xlu0 %2051 }
 0x29d   : > { %v1130_v32 = vsel %vm9963_vm8, %v9962_v62, %v1124_v0  ;;  %v2058_v43 = vsel %vm2053_vm12, %v7686_v35, %v2052_v54  ;;  %v9968_v35 = vmov 0   ;;  %vm9969_vm12 = vcmask 777216   ;;  %v6677_v54 = vld [vmem:[%s9796_s1 + $0xf4] ss:$24 sps:$4 sm:$0xff]  }
 0x29e   : > { %4055 = vmatmul.mubr.bf16.gmra.mrb[28].mxu1 %v8145_v8  ;;  %6240 = vmatprep.subr.bf16.mxu0 %v1130_v32  ;;  %vm5363_vm8 = vcmask 252928  }
 0x29f   : > { %6304 = vmatprep.subr.bf16.mxu1 %v2058_v43  ;;  %4194 = vmatprep.mubr.bf16.mxu1 %v6666_v55 }
 0x2a0   : > { %v660_v23 = vpop.permute.xlu1 %659  ;;  %v1588_v3 = vpop.permute.xlu0 %1587 }
 0x2a1   : > { %v666_v63 = vsel %vm9965_vm0, %v9964_v6, %v660_v23  ;;  %v1594_v25 = vsel %vm9967_vm4, %v9966_v47, %v1588_v3  ;;  %3716 = vmatmul.mubr.bf16.gmra.mrb[28].mxu0 %v8145_v8 }
 0x2a2   : > { %6241 = vmatpush3.bf16.msra.mxu0 %v666_v63  ;;  %6305 = vmatpush3.bf16.msra.mxu1 %v1594_v25 }
 0x2a3   : > { %6354 = vmatprep.subr.bf16.mxu1 %v9968_v35  ;;  %4097 = vmatprep.mubr.bf16.mxu0 %v6667_v9 }
 0x2a4   : > { %v2110_v20 = vpop.permute.xlu1 %2109  ;;  %4259 = vmatprep.subr.bf16.mxu0 %v9968_v35  ;;  %v2168_v22 = vpop.permute.xlu0 %2167 }
 0x2a5   : > { %v2116_v1 = vsel %vm2111_vm7, %v7724_v37, %v2110_v20  ;;  %v2174_v16 = vsel %vm9969_vm12, %v7750_v7, %v2168_v22  ;;  %v6669_v37 = vld [vmem:[%s9796_s1 + $0x34] ss:$24 sps:$4 sm:$0xff]   ;;  %vm9970_vm7 = vcmask 769024   ;;  %v6670_v7 = vld [vmem:[%s9796_s1 + $0x30] ss:$24 sps:$4 sm:$0xff]  }
 0x2a6   : > { %4195 = vmatmul.mubr.bf16.vlgmr.msra.gmra.mrb[32].mxu1 %v7703_v58 }
 0x2a7   : > { %6363 = vmatpush1.bf16.msra.mxu1 %v2116_v1  ;;  %4202 = vmatprep.mubr.bf16.mxu1 %v7698_v12 }
 0x2a8   : > { %6355 = vmatprep.subr.bf16.mxu1 %v9968_v35  ;;  %v2226_v58 = vpop.permute.xlu1 %2225  ;;  %v2284_v17 = vpop.permute.xlu0 %2283 }
 0x2a9   : > { %4098 = vmatmul.mubr.bf16.vlgmr.msra.gmra.mrb[32].mxu0 %v6668_v48  ;;  %v2232_v12 = vsel %vm9970_vm7, %v7791_v29, %v2226_v58  ;;  %v2290_v28 = vsel %vm9971_vm2, %v7824_v33, %v2284_v17  ;;  %v6672_v33 = vld [vmem:[%s9796_s1 + $0x60] ss:$24 sps:$4 sm:$0xff]  }
 0x2aa   : > { %4260 = vmatpush1.bf16.msra.mxu0 %v2116_v1  ;;  %4105 = vmatprep.mubr.bf16.mxu0 %v6669_v37 }
 0x2ab   : > { %6364 = vmatpush1.bf16.msra.mxu1 %v2174_v16  ;;  %4261 = vmatprep.subr.bf16.mxu0 %v9968_v35 }
 0x2ac   : > { %6356 = vmatprep.subr.bf16.mxu1 %v9968_v35  ;;  %v2342_v29 = vpop.permute.xlu1 %2341  ;;  %v2400_v38 = vpop.permute.xlu0 %2399 }
 0x2ad   : > { %v2406_v42 = vsel %vm9973_vm6, %v7888_v40, %v2400_v38  ;;  %v6674_v40 = vld [vmem:[%s9796_s1 + $0x90] ss:$24 sps:$4 sm:$0xff]  }
 0x2ae   : > { %4262 = vmatpush1.bf16.msra.mxu0 %v2174_v16  ;;  %4203 = vmatmul.mubr.bf16.gmra.mrb[36].mxu1 %v7730_v60  ;;  %v6671_v60 = vld [vmem:[%s9796_s1 + $0x64] ss:$24 sps:$4 sm:$0xff]  }
 0x2af   : > { %6365 = vmatpush1.bf16.msra.mxu1 %v2232_v12  ;;  %4263 = vmatprep.subr.bf16.mxu0 %v9968_v35 }
 0x2b0   : > { %6357 = vmatprep.subr.bf16.mxu1 %v9968_v35  ;;  %4210 = vmatprep.mubr.bf16.mxu1 %v7741_v59  ;;  %v2348_v59 = vsel %vm9972_vm5, %v7861_v51, %v2342_v29  ;;  %v2458_v51 = vpop.permute.xlu1 %2457  ;;  %v2516_v11 = vpop.permute.xlu0 %2515 }
 0x2b1   : > { %4106 = vmatmul.mubr.bf16.gmra.mrb[36].mxu0 %v6670_v7  ;;  %v2522_v0 = vsel %vm2517_vm14, %v7937_v57, %v2516_v11  ;;  %v6676_v57 = vld [vmem:[%s9796_s1 + $0xc0] ss:$24 sps:$4 sm:$0xff]  }
 0x2b2   : > { %4264 = vmatpush1.bf16.msra.mxu0 %v2232_v12  ;;  %4113 = vmatprep.mubr.bf16.mxu0 %v6671_v60 }
 0x2b3   : > { %6366 = vmatpush1.bf16.msra.mxu1 %v2290_v28  ;;  %4265 = vmatprep.subr.bf16.mxu0 %v9968_v35 }
 0x2b4   : > { %6358 = vmatprep.subr.bf16.mxu1 %v9968_v35 }
 0x2b6   : > { %4266 = vmatpush1.bf16.msra.mxu0 %v2290_v28  ;;  %4211 = vmatmul.mubr.bf16.gmra.mrb[40].mxu1 %v7757_v2  ;;  %v6673_v2 = vld [vmem:[%s9796_s1 + $0x94] ss:$24 sps:$4 sm:$0xff]  }
 0x2b7   : > { %6367 = vmatpush1.bf16.msra.mxu1 %v2348_v59  ;;  %4267 = vmatprep.subr.bf16.mxu0 %v9968_v35 }
 0x2b8   : > { %6359 = vmatprep.subr.bf16.mxu1 %v9968_v35  ;;  %4218 = vmatprep.mubr.bf16.mxu1 %v7769_v49  ;;  %v2464_v49 = vsel %vm2459_vm9, %v7927_v56, %v2458_v51  ;;  %v2861_v56 = vpop.permute.xlu1 %2860 }
 0x2b9   : > { %4114 = vmatmul.mubr.bf16.gmra.mrb[40].mxu0 %v6672_v33 }
 0x2ba   : > { %4268 = vmatpush1.bf16.msra.mxu0 %v2348_v59  ;;  %4121 = vmatprep.mubr.bf16.mxu0 %v6673_v2 }
 0x2bb   : > { %6368 = vmatpush1.bf16.msra.mxu1 %v2406_v42  ;;  %4269 = vmatprep.subr.bf16.mxu0 %v9968_v35 }
 0x2bc   : > { %6360 = vmatprep.subr.bf16.mxu1 %v9968_v35 }
 0x2be   : > { %4270 = vmatpush1.bf16.msra.mxu0 %v2406_v42  ;;  %4219 = vmatmul.mubr.bf16.gmra.mrb[44].mxu1 %v7782_v18  ;;  %v6675_v18 = vld [vmem:[%s9796_s1 + $0xc4] ss:$24 sps:$4 sm:$0xff]  }
 0x2bf   : > { %6369 = vmatpush1.bf16.msra.mxu1 %v2464_v49  ;;  %4271 = vmatprep.subr.bf16.mxu0 %v9968_v35 }
 0x2c0   : > { %6361 = vmatprep.subr.bf16.mxu1 %v9968_v35  ;;  %4226 = vmatprep.mubr.bf16.mxu1 %v7798_v26  ;;  %v2866_v26 = vsel %vm1299_vm10, %v7952_v46, %v2861_v56  ;;  %v9974_v46 = vld [vmem:[#allocation10_spill] sm:$0xff] }
 0x2c1   : > { %4122 = vmatmul.mubr.bf16.gmra.mrb[44].mxu0 %v6674_v40 }
 0x2c2   : > { %4272 = vmatpush1.bf16.msra.mxu0 %v2464_v49  ;;  %4129 = vmatprep.mubr.bf16.mxu0 %v6675_v18 }
 0x2c3   : > { %6370 = vmatpush1.bf16.msra.mxu1 %v2522_v0  ;;  %4273 = vmatprep.subr.bf16.mxu0 %v9968_v35 }
 0x2c4   : > { %6362 = vmatprep.subr.bf16.mxu1 %v9968_v35 }
 0x2c6   : > { %4274 = vmatpush1.bf16.msra.mxu0 %v2522_v0  ;;  %4227 = vmatmul.mubr.bf16.gmra.mrb[48].mxu1 %v7811_v39  ;;  %v6678_v39 = vld [vmem:[%s9796_s1 + $0xf0] ss:$24 sps:$4 sm:$0xff]  }
 0x2c7   : > { %6371 = vmatpush1.bf16.msra.mxu1 %v2866_v26  ;;  %4275 = vmatprep.subr.bf16.mxu0 %v9968_v35 }
 0x2c8   : > { %4234 = vmatprep.mubr.bf16.mxu1 %v7822_v53  ;;  %v6679_v53 = vld [vmem:[%s9796_s1 + $0x124] ss:$24 sps:$4 sm:$0xff]  }
 0x2c9   : > { %4130 = vmatmul.mubr.bf16.gmra.mrb[48].mxu0 %v6676_v57 }
 0x2ca   : > { %4276 = vmatpush1.bf16.msra.mxu0 %v2866_v26  ;;  %4137 = vmatprep.mubr.bf16.mxu0 %v6677_v54 }
 0x2ce   : > { %4235 = vmatmul.mubr.bf16.gmra.mrb[52].mxu1 %v7839_v41  ;;  %v6680_v41 = vld [vmem:[%s9796_s1 + $0x120] ss:$24 sps:$4 sm:$0xff]  }
 0x2cf   : > { %4242 = vmatprep.mubr.bf16.mxu1 %v7850_v21  ;;  %v6681_v21 = vld [vmem:[%s9796_s1 + $0x154] ss:$24 sps:$4 sm:$0xff]  }
 0x2d1   : > { %4138 = vmatmul.mubr.bf16.gmra.mrb[52].mxu0 %v6678_v39 }
 0x2d2   : > { %4145 = vmatprep.mubr.bf16.mxu0 %v6679_v53 }
 0x2d6   : > { %4243 = vmatmul.mubr.bf16.gmra.mrb[56].mxu1 %v7867_v36  ;;  %v6682_v36 = vld [vmem:[%s9796_s1 + $0x150] ss:$24 sps:$4 sm:$0xff]  }
 0x2d7   : > { %4250 = vmatprep.mubr.bf16.mxu1 %v7879_v13  ;;  %v9975_v13 = vld [vmem:[#allocation11_spill] sm:$0xff] }
 0x2d9   : > { %4146 = vmatmul.mubr.bf16.gmra.mrb[56].mxu0 %v6680_v41 }
 0x2da   : > { %4153 = vmatprep.mubr.bf16.mxu0 %v6681_v21 }
 0x2de   : > { %4251 = vmatmul.mubr.bf16.gmra.mrb[60].mxu1 %v9974_v46 }
 0x2df   : > { %6059 = vmatprep.mubr.msk.bf16.mxu1 %vm3362_vm15, %v8037_v45 }
 0x2e1   : > { %4154 = vmatmul.mubr.bf16.gmra.mrb[60].mxu0 %v6682_v36 }
 0x2e2   : > { %6055 = vmatprep.mubr.msk.bf16.mxu0 %vm3362_vm15, %v9975_v13 }
 0x2e6   : > { %4324 = vmatmul.mubr.bf16.vlgmr.msra.gmra.mrb[64].mxu1 %v8062_v34 }
 0x2e7   : > { %6060 = vmatprep.mubr.msk.bf16.mxu1 %vm3362_vm15, %v8071_v30 }
 0x2e9   : > { %4292 = vmatmul.mubr.bf16.vlgmr.msra.gmra.mrb[64].mxu0 %v7960_v27  ;;  %v9976_v27 = vld [vmem:[#allocation4_spill] sm:$0xff] }
 0x2ea   : > { %6056 = vmatprep.mubr.msk.bf16.mxu0 %vm3362_vm15, %v7965_v31  ;;  %v4399_v31 = vrot.slane %v9976_v27, %v8040_v5 }
 0x2ec   : > { %v8292_v34 = vrot.slane %v4399_v31, %v8040_v5 }
 0x2ee   : > { %4332 = vmatmul.mubr.bf16.gmra.mrb[68].mxu1 %v8097_v15  ;;  %9978 = vst [vmem:[#allocation8_spill] sm:$0xff] %v8292_v34  ;;  %vm4436_vm10 = vcmp.eq.s32.totalorder %v8292_v34, 1 }
 0x2ef   : > { %6061 = vmatprep.mubr.msk.bf16.mxu1 %vm3362_vm15, %v8104_v14 }
 0x2f1   : > { %4300 = vmatmul.mubr.bf16.gmra.mrb[68].mxu0 %v7982_v52  ;;  %v4403_v52 = vrot.slane %v9976_v27, %v8057_v10 }
 0x2f2   : > { %6057 = vmatprep.mubr.msk.bf16.mxu0 %vm3362_vm15, %v7989_v44  ;;  %v9977_v44 = vld [vmem:[#allocation3_spill] sm:$0xff] }
 0x2f3   : > { %v4407_v45 = vrot.slane %v9977_v44, %v8040_v5 }
 0x2f6   : > { %4340 = vmatmul.mubr.bf16.gmra.mrb[72].mxu1 %v8121_v50 }
 0x2f7   : > { %6062 = vmatprep.mubr.msk.bf16.mxu1 %vm3362_vm15, %v8128_v4 }
 0x2f9   : > { %4308 = vmatmul.mubr.bf16.gmra.mrb[72].mxu0 %v8006_v61  ;;  %v4411_v61 = vrot.slane %v9977_v44, %v8057_v10 }
 0x2fa   : > { %6058 = vmatprep.mubr.msk.bf16.mxu0 %vm3362_vm15, %v8013_v24  ;;  %v8297_v24 = vrot.slane %v4403_v52, %v8040_v5 }
 0x2fb   : > { %v8308_v14 = vrot.slane %v4411_v61, %v8040_v5 }
 0x2fc   : > { %9979 = vst [vmem:[#allocation7_spill] sm:$0xff] %v8297_v24  ;;  %vm4437_vm9 = vcmp.eq.s32.totalorder %v8297_v24, 1 }
 0x2fd   : > { %vm4439_vm14 = vcmp.eq.s32.totalorder %v8308_v14, 1 }
 0x2fe   : > { %4348 = vmatmul.mubr.bf16.gmra.mrb[76].mxu1 %v8145_v8 }
 0x301   : > { %4316 = vmatmul.mubr.bf16.gmra.mrb[76].mxu0 %v8030_v19  ;;  %v8300_v19 = vrot.slane %v4407_v45, %v8040_v5 }
 0x303   : > { %9980 = vst [vmem:[#allocation6_spill] sm:$0xff] %v8300_v19  ;;  %vm4438_vm15 = vcmp.eq.s32.totalorder %v8300_v19, 1 }
 0x339   : > { %v8302_v30 = vpop.f32.mrb[0].mxu1 }
 0x33a   : > { %v8305_v15 = vpop.f32.mrb[1].mxu1  ;;  %v4443_v9 = vsel %vm4438_vm15, %v8302_v30, 0.0 }
 0x33b   : > { %v8313_v50 = vpop.f32.mrb[2].mxu1  ;;  %v4444_v58 = vsel %vm4439_vm14, %v8305_v15, 0.0 }
 0x33c   : > { %v8315_v4 = vpop.f32.mrb[0].mxu0  ;;  %v8317_v8 = vpop.f32.mrb[3].mxu1  ;;  %v4448_v17 = vsel %vm4438_vm15, %v8313_v50, 0.0 }
 0x33d   : > { %9981 = vst [vmem:[#allocation9_spill] sm:$0xff] %v8315_v4  ;;  %v4441_v62 = vsel %vm4436_vm10, %v8315_v4, 0.0  ;;  %v6146_v32 = vpack.c.bf16 %v8315_v4, %v8315_v4  ;;  %v8327_v55 = vpop.f32.mrb[1].mxu0  ;;  %v4449_v33 = vsel %vm4439_vm14, %v8317_v8, 0.0 }
 0x33e   : > { %9982 = vst [vmem:[#allocation10_spill] sm:$0xff] %v8327_v55  ;;  %v4442_v23 = vsel %vm4437_vm9, %v8327_v55, 0.0  ;;  %v6162_v3 = vpack.c.bf16 %v8327_v55, %v8315_v4  ;;  %v6178_v6 = vpack.c.bf16 %v8302_v30, %v8327_v55  ;;  %v8336_v63 = vpop.f32.mrb[2].mxu0 }
 0x33f   : > { %9983 = vst [vmem:[#allocation11_spill] sm:$0xff] %v8336_v63  ;;  %v4521_v47 = vadd.f32 %v4442_v23, %v4441_v62  ;;  %v4446_v25 = vsel %vm4436_vm10, %v8336_v63, 0.0  ;;  %5056 = vrot.lane.b32.xlu0 %v6146_v32, %s6712_s13  ;;  %v8343_v35 = vpop.f32.mrb[3].mxu0  ;;  %v6147_v49 = vpack.c.bf16 %v8336_v63, %v8336_v63 }
 0x340   : > { %9984 = vst [vmem:[#allocation4_spill] sm:$0xff] %v8343_v35  ;;  %v4447_v20 = vsel %vm4437_vm9, %v8343_v35, 0.0  ;;  %v6163_v1 = vpack.c.bf16 %v8343_v35, %v8336_v63  ;;  %v6179_v22 = vpack.c.bf16 %v8313_v50, %v8343_v35  ;;  %5169 = vrot.lane.b32.xlu1 %v6162_v3, %s6734_s10 }
 0x341   : > { %v4527_v48 = vadd.f32 %v4447_v20, %v4446_v25  ;;  %v8356_v16 = vpop.f32.mrb[4].mxu1  ;;  %v4522_v37 = vadd.f32 %v4521_v47, %v4443_v9 }
 0x342   : > { %v8361_v12 = vpop.f32.mrb[5].mxu1  ;;  %v4453_v39 = vsel %vm4438_vm15, %v8356_v16, 0.0 }
 0x343   : > { %v8368_v28 = vpop.f32.mrb[6].mxu1  ;;  %5171 = vrot.lane.b32.xlu0 %v6163_v1, %s6734_s10  ;;  %v8371_v60 = vadd.f32 %v4522_v37, %v4444_v58  ;;  %v4528_v38 = vadd.f32 %v4527_v48, %v4448_v17  ;;  %v4454_v31 = vsel %vm4439_vm14, %v8361_v12, 0.0 }
 0x344   : > { %v8373_v29 = vpop.f32.mrb[7].mxu1  ;;  %5315 = vrot.lane.b32.xlu1 %v6178_v6, %s6735_s22  ;;  %v8376_v59 = vpop.f32.mrb[4].mxu0  ;;  %v4458_v45 = vsel %vm4438_vm15, %v8368_v28, 0.0 }
 0x345   : > { %9985 = vst [vmem:[#allocation3_spill] sm:$0xff] %v8371_v60  ;;  %9986 = vst [vmem:[#allocation13_spill] sm:$0xff] %v8376_v59  ;;  %v4451_v2 = vsel %vm4436_vm10, %v8376_v59, 0.0  ;;  %v8386_v51 = vpop.f32.mrb[5].mxu0  ;;  %v8405_v54 = vadd.f32 %v4528_v38, %v4449_v33  ;;  %v6148_v52 = vpack.c.bf16 %v8376_v59, %v8376_v59  ;;  %v4459_v20 = vsel %vm4439_vm14, %v8373_v29, 0.0 }
 0x346   : > { %9987 = vst [vmem:[#allocation14_spill] sm:$0xff] %v8386_v51  ;;  %v4452_v11 = vsel %vm4437_vm9, %v8386_v51, 0.0  ;;  %v6164_v40 = vpack.c.bf16 %v8386_v51, %v8376_v59  ;;  %v6180_v0 = vpack.c.bf16 %v8356_v16, %v8386_v51  ;;  %v8397_v18 = vpop.f32.mrb[6].mxu0 }
 0x347   : > { %9988 = vst [vmem:[#allocation15_spill] sm:$0xff] %v8397_v18  ;;  %v4533_v56 = vadd.f32 %v4452_v11, %v4451_v2  ;;  %v4456_v26 = vsel %vm4436_vm10, %v8397_v18, 0.0  ;;  %5317 = vrot.lane.b32.xlu0 %v6179_v22, %s6735_s22  ;;  %v8403_v57 = vpop.f32.mrb[7].mxu0  ;;  %9990 = vst [vmem:[#allocation17_spill] sm:$0xff] %v8405_v54  ;;  %v6149_v46 = vpack.c.bf16 %v8397_v18, %v8397_v18 }
 0x348   : > { %9989 = vst [vmem:[#allocation16_spill] sm:$0xff] %v8403_v57  ;;  %v4457_v53 = vsel %vm4437_vm9, %v8403_v57, 0.0  ;;  %v6165_v41 = vpack.c.bf16 %v8403_v57, %v8397_v18  ;;  %v6181_v21 = vpack.c.bf16 %v8368_v28, %v8403_v57  ;;  %5058 = vrot.lane.b32.xlu1 %v6147_v49, %s6712_s13 }
 0x349   : > { %v4539_v36 = vadd.f32 %v4457_v53, %v4456_v26  ;;  %v8420_v13 = vpop.f32.mrb[8].mxu1  ;;  %v4534_v27 = vadd.f32 %v4533_v56, %v4453_v39 }
 0x34a   : > { %9991 = vst [vmem:[#allocation18_spill] sm:$0xff] %v8420_v13  ;;  %v8427_v44 = vpop.f32.mrb[9].mxu1  ;;  %v4463_v2 = vsel %vm4438_vm15, %v8420_v13, 0.0 }
 0x34b   : > { %v8434_v62 = vpop.f32.mrb[10].mxu1  ;;  %5062 = vrot.lane.b32.xlu0 %v6149_v46, %s6712_s13  ;;  %v8437_v32 = vadd.f32 %v4534_v27, %v4454_v31  ;;  %v4540_v6 = vadd.f32 %v4539_v36, %v4458_v45 }
 0x34c   : > { %9992 = vst [vmem:[#allocation19_spill] sm:$0xff] %v8434_v62  ;;  %v8439_v23 = vpop.f32.mrb[11].mxu1  ;;  %5060 = vrot.lane.b32.xlu1 %v6148_v52, %s6712_s13  ;;  %v8442_v3 = vpop.f32.mrb[8].mxu0  ;;  %v4468_v36 = vsel %vm4438_vm15, %v8434_v62, 0.0 }
 0x34d   : > { %9993 = vst [vmem:[#allocation20_spill] sm:$0xff] %v8437_v32  ;;  %9994 = vst [vmem:[#allocation21_spill] sm:$0xff] %v8442_v3  ;;  %v4461_v25 = vsel %vm4436_vm10, %v8442_v3, 0.0  ;;  %v8449_v9 = vpop.f32.mrb[9].mxu0  ;;  %v8469_v33 = vadd.f32 %v4540_v6, %v4459_v20 }
 0x34e   : > { %9995 = vst [vmem:[#allocation22_spill] sm:$0xff] %v8449_v9  ;;  %v4462_v1 = vsel %vm4437_vm9, %v8449_v9, 0.0  ;;  %v6166_v22 = vpack.c.bf16 %v8449_v9, %v8442_v3  ;;  %v6182_v48 = vpack.c.bf16 %v8420_v13, %v8449_v9  ;;  %v8461_v37 = vpop.f32.mrb[10].mxu0 }
 0x34f   : > { %9996 = vst [vmem:[#allocation23_spill] sm:$0xff] %v8461_v37  ;;  %v4545_v58 = vadd.f32 %v4462_v1, %v4461_v25  ;;  %v4466_v17 = vsel %vm4436_vm10, %v8461_v37, 0.0  ;;  %5175 = vrot.lane.b32.xlu0 %v6165_v41, %s6734_s10  ;;  %v8467_v38 = vpop.f32.mrb[11].mxu0  ;;  %9998 = vst [vmem:[#allocation25_spill] sm:$0xff] %v8469_v33  ;;  %v4464_v41 = vsel %vm4439_vm14, %v8427_v44, 0.0  ;;  %v4469_v25 = vsel %vm4439_vm14, %v8439_v23, 0.0 }
 0x350   : > { %9997 = vst [vmem:[#allocation24_spill] sm:$0xff] %v8467_v38  ;;  %v4467_v49 = vsel %vm4437_vm9, %v8467_v38, 0.0  ;;  %v6167_v11 = vpack.c.bf16 %v8467_v38, %v8461_v37  ;;  %v6183_v56 = vpack.c.bf16 %v8434_v62, %v8467_v38  ;;  %5173 = vrot.lane.b32.xlu1 %v6164_v40, %s6734_s10  ;;  %v6151_v20 = vpack.c.bf16 %v8461_v37, %v8461_v37 }
 0x351   : > { %v4551_v26 = vadd.f32 %v4467_v49, %v4466_v17  ;;  %v8482_v39 = vpop.f32.mrb[12].mxu1  ;;  %v4546_v53 = vadd.f32 %v4545_v58, %v4463_v2 }
 0x352   : > { %9999 = vst [vmem:[#allocation26_spill] sm:$0xff] %v8482_v39  ;;  %v8487_v46 = vpop.f32.mrb[13].mxu1  ;;  %v4473_v1 = vsel %vm4438_vm15, %v8482_v39, 0.0 }
 0x353   : > { %v8494_v31 = vpop.f32.mrb[14].mxu1  ;;  %5321 = vrot.lane.b32.xlu0 %v6181_v21, %s6735_s22  ;;  %v8497_v40 = vadd.f32 %v4546_v53, %v4464_v41  ;;  %v4552_v6 = vadd.f32 %v4551_v26, %v4468_v36 }
 0x354   : > { %10000 = vst [vmem:[#allocation27_spill] sm:$0xff] %v8494_v31  ;;  %v8499_v52 = vpop.f32.mrb[15].mxu1  ;;  %5319 = vrot.lane.b32.xlu1 %v6180_v0, %s6735_s22  ;;  %v8502_v45 = vpop.f32.mrb[12].mxu0  ;;  %v6150_v0 = vpack.c.bf16 %v8442_v3, %v8442_v3  ;;  %v4478_v42 = vsel %vm4438_vm15, %v8494_v31, 0.0 }
 0x355   : > { %10001 = vst [vmem:[#allocation28_spill] sm:$0xff] %v8497_v40  ;;  %10002 = vst [vmem:[#allocation29_spill] sm:$0xff] %v8502_v45  ;;  %v4471_v21 = vsel %vm4436_vm10, %v8502_v45, 0.0  ;;  %v8514_v58 = vpop.f32.mrb[13].mxu0  ;;  %v8533_v27 = vadd.f32 %v4552_v6, %v4469_v25  ;;  %v4474_v25 = vsel %vm4439_vm14, %v8487_v46, 0.0  ;;  %v6152_v37 = vpack.c.bf16 %v8502_v45, %v8502_v45 }
 0x356   : > { %10003 = vst [vmem:[#allocation30_spill] sm:$0xff] %v8514_v58  ;;  %v4472_v17 = vsel %vm4437_vm9, %v8514_v58, 0.0  ;;  %v8525_v26 = vpop.f32.mrb[14].mxu0 }
 0x357   : > { %10004 = vst [vmem:[#allocation31_spill] sm:$0xff] %v8525_v26  ;;  %v4557_v53 = vadd.f32 %v4472_v17, %v4471_v21  ;;  %v4476_v41 = vsel %vm4436_vm10, %v8525_v26, 0.0  ;;  %5066 = vrot.lane.b32.xlu0 %v6151_v20, %s6712_s13  ;;  %v8531_v36 = vpop.f32.mrb[15].mxu0  ;;  %10006 = vst [vmem:[#allocation33_spill] sm:$0xff] %v8533_v27 }
 0x358   : > { %10005 = vst [vmem:[#allocation32_spill] sm:$0xff] %v8531_v36  ;;  %v4477_v61 = vsel %vm4437_vm9, %v8531_v36, 0.0  ;;  %v6169_v21 = vpack.c.bf16 %v8531_v36, %v8525_v26  ;;  %5064 = vrot.lane.b32.xlu1 %v6150_v0, %s6712_s13 }
 0x359   : > { %v4563_v20 = vadd.f32 %v4477_v61, %v4476_v41  ;;  %v8546_v47 = vpop.f32.mrb[16].mxu1  ;;  %v4558_v6 = vadd.f32 %v4557_v53, %v4473_v1 }
 0x35a   : > { %v8551_v7 = vpop.f32.mrb[17].mxu1 }
 0x35b   : > { %v8558_v43 = vpop.f32.mrb[18].mxu1  ;;  %5179 = vrot.lane.b32.xlu0 %v6167_v11, %s6734_s10  ;;  %v8561_v61 = vadd.f32 %v4558_v6, %v4474_v25  ;;  %v4564_v53 = vadd.f32 %v4563_v20, %v4478_v42  ;;  %v4479_v11 = vsel %vm4439_vm14, %v8499_v52, 0.0  ;;  %v4483_v42 = vsel %vm4438_vm15, %v8546_v47, 0.0 }
 0x35c   : > { %v8563_v1 = vpop.f32.mrb[19].mxu1  ;;  %5177 = vrot.lane.b32.xlu1 %v6166_v22, %s6734_s10  ;;  %v8566_v0 = vpop.f32.mrb[16].mxu0 }
 0x35d   : > { %10007 = vst [vmem:[#allocation34_spill] sm:$0xff] %v8561_v61  ;;  %10008 = vst [vmem:[#allocation35_spill] sm:$0xff] %v8566_v0  ;;  %v4481_v10 = vsel %vm4436_vm10, %v8566_v0, 0.0  ;;  %v8573_v49 = vpop.f32.mrb[17].mxu0  ;;  %v8593_v2 = vadd.f32 %v4564_v53, %v4479_v11 }
 0x35e   : > { %10009 = vst [vmem:[#allocation36_spill] sm:$0xff] %v8573_v49  ;;  %v4482_v22 = vsel %vm4437_vm9, %v8573_v49, 0.0  ;;  %v8585_v6 = vpop.f32.mrb[18].mxu0 }
 0x35f   : > { %10010 = vst [vmem:[#allocation37_spill] sm:$0xff] %v8585_v6  ;;  %v4569_v25 = vadd.f32 %v4482_v22, %v4481_v10  ;;  %v4486_v41 = vsel %vm4436_vm10, %v8585_v6, 0.0  ;;  %5325 = vrot.lane.b32.xlu0 %v6183_v56, %s6735_s22  ;;  %v8591_v17 = vpop.f32.mrb[19].mxu0  ;;  %10011 = vst [vmem:[#allocation38_spill] sm:$0xff] %v8593_v2  ;;  %v6153_v56 = vpack.c.bf16 %v8525_v26, %v8525_v26  ;;  %v4484_v10 = vsel %vm4439_vm14, %v8551_v7, 0.0 }
 0x360   : > { %v4487_v20 = vsel %vm4437_vm9, %v8591_v17, 0.0  ;;  %5323 = vrot.lane.b32.xlu1 %v6182_v48, %s6735_s22  ;;  %v4488_v48 = vsel %vm4438_vm15, %v8558_v43, 0.0  ;;  %v6155_v63 = vpack.c.bf16 %v8585_v6, %v8585_v6 }
 0x361   : > { %v4575_v53 = vadd.f32 %v4487_v20, %v4486_v41  ;;  %v8611_v11 = vpop.f32.mrb[20].mxu1  ;;  %v4570_v38 = vadd.f32 %v4569_v25, %v4483_v42 }
 0x362   : > { %10012 = vst [vmem:[#allocation39_spill] sm:$0xff] %v8611_v11  ;;  %v8618_v22 = vpop.f32.mrb[21].mxu1 }
 0x363   : > { %v8625_v41 = vpop.f32.mrb[22].mxu1  ;;  %5070 = vrot.lane.b32.xlu0 %v6153_v56, %s6712_s13  ;;  %v8628_v42 = vadd.f32 %v4570_v38, %v4484_v10  ;;  %v4576_v9 = vadd.f32 %v4575_v53, %v4488_v48  ;;  %v4489_v38 = vsel %vm4439_vm14, %v8563_v1, 0.0  ;;  %v4493_v10 = vsel %vm4438_vm15, %v8611_v11, 0.0 }
 0x364   : > { %10013 = vst [vmem:[#allocation40_spill] sm:$0xff] %v8625_v41  ;;  %v8630_v20 = vpop.f32.mrb[23].mxu1  ;;  %5068 = vrot.lane.b32.xlu1 %v6152_v37, %s6712_s13  ;;  %v8633_v25 = vpop.f32.mrb[20].mxu0  ;;  %v4494_v4 = vsel %vm4439_vm14, %v8618_v22, 0.0 }
 0x365   : > { %10014 = vst [vmem:[#allocation41_spill] sm:$0xff] %v8628_v42  ;;  %v4491_v26 = vsel %vm4436_vm10, %v8633_v25, 0.0  ;;  %v8640_v57 = vpop.f32.mrb[21].mxu0  ;;  %v8660_v51 = vadd.f32 %v4576_v9, %v4489_v38 }
 0x366   : > { %10015 = vst [vmem:[#allocation42_spill] sm:$0xff] %v8640_v57  ;;  %v4492_v37 = vsel %vm4437_vm9, %v8640_v57, 0.0  ;;  %v8652_v53 = vpop.f32.mrb[22].mxu0 }
 0x367   : > { %10016 = vst [vmem:[#allocation43_spill] sm:$0xff] %v8652_v53  ;;  %v4581_v48 = vadd.f32 %v4492_v37, %v4491_v26  ;;  %v4496_v3 = vsel %vm4436_vm10, %v8652_v53, 0.0  ;;  %5183 = vrot.lane.b32.xlu0 %v6169_v21, %s6734_s10  ;;  %v8658_v18 = vpop.f32.mrb[23].mxu0  ;;  %10018 = vst [vmem:[#allocation45_spill] sm:$0xff] %v8660_v51  ;;  %v10019_v21 = vpack.c.bf16 %v8514_v58, %v8502_v45  ;;  %v4498_v26 = vsel %vm4438_vm15, %v8625_v41, 0.0 }
 0x368   : > { %10017 = vst [vmem:[#allocation44_spill] sm:$0xff] %v8658_v18  ;;  %v4497_v56 = vsel %vm4437_vm9, %v8658_v18, 0.0  ;;  %v6154_v37 = vpack.c.bf16 %v8566_v0, %v8566_v0 }
 0x369   : > { %5181 = vrot.lane.b32.xlu1 %v10019_v21, %s6734_s10  ;;  %v4587_v9 = vadd.f32 %v4497_v56, %v4496_v3  ;;  %v8676_v38 = vpop.f32.mrb[24].mxu1  ;;  %v4582_v55 = vadd.f32 %v4581_v48, %v4493_v10  ;;  %v10021_v3 = vpack.c.bf16 %v8494_v31, %v8531_v36  ;;  %v10023_v48 = vpack.c.bf16 %v8482_v39, %v8514_v58 }
 0x36a   : > { %v8681_v59 = vpop.f32.mrb[25].mxu1 }
 0x36b   : > { %v8688_v35 = vpop.f32.mrb[26].mxu1  ;;  %5329 = vrot.lane.b32.xlu0 %v10021_v3, %s6735_s22  ;;  %v8694_v10 = vadd.f32 %v4582_v55, %v4494_v4  ;;  %v4588_v45 = vadd.f32 %v4587_v9, %v4498_v26  ;;  %v4503_v9 = vsel %vm4438_vm15, %v8676_v38, 0.0 }
 0x36c   : > { %10020 = vst [vmem:[#allocation46_spill] sm:$0xff] %v8688_v35  ;;  %v8696_v56 = vpop.f32.mrb[27].mxu1  ;;  %v8702_v21 = vpop.f32.mrb[24].mxu0  ;;  %v4508_v40 = vsel %vm4438_vm15, %v8688_v35, 0.0 }
 0x36d   : > { %10022 = vst [vmem:[#allocation47_spill] sm:$0xff] %v8694_v10  ;;  %5327 = vrot.lane.b32.xlu1 %v10023_v48, %s6735_s22  ;;  %10024 = vst [vmem:[#allocation48_spill] sm:$0xff] %v8702_v21  ;;  %v4501_v55 = vsel %vm4436_vm10, %v8702_v21, 0.0  ;;  %v8713_v3 = vpop.f32.mrb[25].mxu0  ;;  %v4499_v48 = vsel %vm4439_vm14, %v8630_v20, 0.0 }
 0x36e   : > { %10025 = vst [vmem:[#allocation49_spill] sm:$0xff] %v8713_v3  ;;  %v4502_v26 = vsel %vm4437_vm9, %v8713_v3, 0.0  ;;  %v8725_v36 = vpop.f32.mrb[26].mxu0  ;;  %v8733_v61 = vadd.f32 %v4588_v45, %v4499_v48  ;;  %v4504_v48 = vsel %vm4439_vm14, %v8681_v59, 0.0 }
 0x36f   : > { %10026 = vst [vmem:[#allocation50_spill] sm:$0xff] %v8725_v36  ;;  %v4593_v58 = vadd.f32 %v4502_v26, %v4501_v55  ;;  %v4506_v2 = vsel %vm4436_vm10, %v8725_v36, 0.0  ;;  %5074 = vrot.lane.b32.xlu0 %v6155_v63, %s6712_s13  ;;  %v8731_v27 = vpop.f32.mrb[27].mxu0  ;;  %v6157_v55 = vpack.c.bf16 %v8652_v53, %v8652_v53  ;;  %v6159_v42 = vpack.c.bf16 %v8725_v36, %v8725_v36 }
 0x370   : > { %10027 = vst [vmem:[#allocation51_spill] sm:$0xff] %v8731_v27  ;;  %10028 = vst [vmem:[#allocation52_spill] sm:$0xff] %v8733_v61  ;;  %v4507_v4 = vsel %vm4437_vm9, %v8731_v27, 0.0 }
 0x371   : > { %5072 = vrot.lane.b32.xlu1 %v6154_v37, %s6712_s13  ;;  %v4599_v63 = vadd.f32 %v4507_v4, %v4506_v2  ;;  %v8746_v33 = vpop.f32.mrb[28].mxu1  ;;  %v4594_v45 = vadd.f32 %v4593_v58, %v4503_v9  ;;  %v10032_v2 = vpack.c.bf16 %v8591_v17, %v8585_v6  ;;  %v10035_v4 = vpack.c.bf16 %v8573_v49, %v8566_v0 }
 0x372   : > { %10029 = vst [vmem:[#allocation53_spill] sm:$0xff] %v8746_v33  ;;  %v8751_v61 = vpop.f32.mrb[29].mxu1 }
 0x373   : > { %10030 = vst [vmem:[#allocation54_spill] sm:$0xff] %v8751_v61  ;;  %v8758_v26 = vpop.f32.mrb[30].mxu1  ;;  %5187 = vrot.lane.b32.xlu0 %v10032_v2, %s6734_s10  ;;  %v8764_v58 = vadd.f32 %v4594_v45, %v4504_v48  ;;  %v4600_v51 = vadd.f32 %v4599_v63, %v4508_v40  ;;  %v4509_v2 = vsel %vm4439_vm14, %v8696_v56, 0.0  ;;  %v4513_v63 = vsel %vm4438_vm15, %v8746_v33, 0.0 }
 0x374   : > { %10031 = vst [vmem:[#allocation55_spill] sm:$0xff] %v8758_v26  ;;  %v8766_v37 = vpop.f32.mrb[31].mxu1  ;;  %v8772_v9 = vpop.f32.mrb[28].mxu0  ;;  %v4514_v24 = vsel %vm4439_vm14, %v8751_v61, 0.0  ;;  %v4518_v32 = vsel %vm4438_vm15, %v8758_v26, 0.0 }
 0x375   : > { %10033 = vst [vmem:[#allocation56_spill] sm:$0xff] %v8764_v58  ;;  %10034 = vst [vmem:[#allocation57_spill] sm:$0xff] %v8766_v37  ;;  %5185 = vrot.lane.b32.xlu1 %v10035_v4, %s6734_s10  ;;  %v4511_v45 = vsel %vm4436_vm10, %v8772_v9, 0.0  ;;  %v8781_v48 = vpop.f32.mrb[29].mxu0  ;;  %v8801_v60 = vadd.f32 %v4600_v51, %v4509_v2 }
 0x376   : > { %10036 = vst [vmem:[#allocation58_spill] sm:$0xff] %v8772_v9  ;;  %10037 = vst [vmem:[#allocation59_spill] sm:$0xff] %v8781_v48  ;;  %v4512_v40 = vsel %vm4437_vm9, %v8781_v48, 0.0  ;;  %v8793_v10 = vpop.f32.mrb[30].mxu0 }
 0x377   : > { %10038 = vst [vmem:[#allocation60_spill] sm:$0xff] %v8793_v10  ;;  %v4605_v6 = vadd.f32 %v4512_v40, %v4511_v45  ;;  %v4516_v0 = vsel %vm4436_vm10, %v8793_v10, 0.0  ;;  %5078 = vrot.lane.b32.xlu0 %v6157_v55, %s6712_s13  ;;  %v8799_v58 = vpop.f32.mrb[31].mxu0  ;;  %10040 = vst [vmem:[#allocation62_spill] sm:$0xff] %v8801_v60  ;;  %v10041_v55 = vpack.c.bf16 %v8546_v47, %v8573_v49 }
 0x378   : > { %10039 = vst [vmem:[#allocation61_spill] sm:$0xff] %v8799_v58  ;;  %v4517_v4 = vsel %vm4437_vm9, %v8799_v58, 0.0  ;;  %v6177_v45 = vpack.c.bf16 %v8799_v58, %v8793_v10  ;;  %v6156_v60 = vpack.c.bf16 %v8633_v25, %v8633_v25  ;;  %v10042_v49 = vpack.c.bf16 %v8658_v18, %v8652_v53 }
 0x379   : > { %5331 = vrot.lane.b32.xlu1 %v10041_v55, %s6735_s22  ;;  %v4611_v51 = vadd.f32 %v4517_v4, %v4516_v0  ;;  %v6306_v2 = vpop.f32.mrb[32].mxu1  ;;  %v4606_v34 = vadd.f32 %v4605_v6, %v4513_v63  ;;  %v4519_v55 = vsel %vm4439_vm14, %v8766_v37, 0.0 }
 0x37a   : > { %v6307_v40 = vpop.f32.mrb[33].mxu1 }
 0x37b   : > { %5191 = vrot.lane.b32.xlu0 %v10042_v49, %s6734_s10  ;;  %v6308_v0 = vadd.f32 %v6307_v40, %v6306_v2  ;;  %v6309_v4 = vpop.f32.mrb[34].mxu1  ;;  %v8829_v6 = vadd.f32 %v4606_v34, %v4514_v24  ;;  %v4612_v63 = vadd.f32 %v4611_v51, %v4518_v32  ;;  %v10043_v24 = vpack.c.bf16 %v8640_v57, %v8633_v25 }
 0x37c   : > { %v6310_v54 = vpop.f32.mrb[35].mxu1  ;;  %v6242_v19 = vpop.f32.mrb[32].mxu0 }
 0x37d   : > { %5076 = vrot.lane.b32.xlu1 %v6156_v60, %s6712_s13  ;;  %v6311_v5 = vadd.f32 %v6310_v54, %v6309_v4  ;;  %v6243_v61 = vpop.f32.mrb[33].mxu0  ;;  %v8837_v53 = vadd.f32 %v4612_v63, %v4519_v55  ;;  %v6158_v54 = vpack.c.bf16 %v8702_v21, %v8702_v21 }
 0x37e   : > { %v6244_v49 = vadd.f32 %v6243_v61, %v6242_v19  ;;  %v6245_v40 = vpop.f32.mrb[34].mxu0  ;;  %v10044_v19 = vpack.c.bf16 %v8731_v27, %v8725_v36 }
 0x37f   : > { %5082 = vrot.lane.b32.xlu0 %v6159_v42, %s6712_s13  ;;  %v6246_v34 = vpop.f32.mrb[35].mxu0 }
 0x380   : > { %v6247_v60 = vadd.f32 %v6246_v34, %v6245_v40  ;;  %v8844_v32 = vadd.f32 %v6308_v0, %v6244_v49  ;;  %v6161_v0 = vpack.c.bf16 %v8793_v10, %v8793_v10 }
 0x381   : > { %5189 = vrot.lane.b32.xlu1 %v10043_v24, %s6734_s10  ;;  %v6312_v51 = vpop.f32.mrb[36].mxu1 }
 0x382   : > { %v6313_v2 = vpop.f32.mrb[37].mxu1  ;;  %v8848_v4 = vadd.f32 %v6311_v5, %v6247_v60  ;;  %v10045_v60 = vpack.c.bf16 %v8713_v3, %v8702_v21  ;;  %v10064_v21 = vpack.c.bf16 %v8630_v20, %v8625_v41 }
 0x383   : > { %5195 = vrot.lane.b32.xlu0 %v10044_v19, %s6734_s10  ;;  %v6314_v61 = vadd.f32 %v6313_v2, %v6312_v51  ;;  %v6315_v42 = vpop.f32.mrb[38].mxu1  ;;  %v6160_v19 = vpack.c.bf16 %v8772_v9, %v8772_v9 }
 0x384   : > { %v6316_v63 = vpop.f32.mrb[39].mxu1  ;;  %v6248_v55 = vpop.f32.mrb[36].mxu0 }
 0x385   : > { %5080 = vrot.lane.b32.xlu1 %v6158_v54, %s6712_s13  ;;  %v6317_v49 = vadd.f32 %v6316_v63, %v6315_v42  ;;  %v6249_v40 = vpop.f32.mrb[37].mxu0 }
 0x386   : > { %v6250_v34 = vadd.f32 %v6249_v40, %v6248_v55  ;;  %v6251_v24 = vpop.f32.mrb[38].mxu0 }
 0x387   : > { %5086 = vrot.lane.b32.xlu0 %v6161_v0, %s6712_s13  ;;  %v6252_v5 = vpop.f32.mrb[39].mxu0 }
 0x388   : > { %v6253_v51 = vadd.f32 %v6252_v5, %v6251_v24  ;;  %v8862_v2 = vadd.f32 %v6314_v61, %v6250_v34  ;;  %v10046_v34 = vpack.c.bf16 %v8558_v43, %v8591_v17 }
 0x389   : > { %5193 = vrot.lane.b32.xlu1 %v10045_v60, %s6734_s10  ;;  %v6318_v54 = vpop.f32.mrb[40].mxu1 }
 0x38a   : > { %v6319_v10 = vpop.f32.mrb[41].mxu1  ;;  %v8866_v42 = vadd.f32 %v6317_v49, %v6253_v51 }
 0x38b   : > { %5199 = vrot.lane.b32.xlu0 %v6177_v45, %s6734_s10  ;;  %v6320_v63 = vadd.f32 %v6319_v10, %v6318_v54  ;;  %v6321_v55 = vpop.f32.mrb[42].mxu1  ;;  %v10047_v45 = vpack.c.bf16 %v8781_v48, %v8772_v9 }
 0x38c   : > { %v6322_v0 = vpop.f32.mrb[43].mxu1  ;;  %v6254_v40 = vpop.f32.mrb[40].mxu0 }
 0x38d   : > { %5084 = vrot.lane.b32.xlu1 %v6160_v19, %s6712_s13  ;;  %v6323_v36 = vadd.f32 %v6322_v0, %v6321_v55  ;;  %v6255_v60 = vpop.f32.mrb[41].mxu0  ;;  %v10048_v55 = vpack.c.bf16 %v8625_v41, %v8658_v18  ;;  %s6502_s13 = smul.u32 192, %s10154_s16 }
 0x38e   : > { %v6256_v24 = vadd.f32 %v6255_v60, %v6254_v40  ;;  %v6257_v61 = vpop.f32.mrb[42].mxu0  ;;  %v10049_v60 = vpack.c.bf16 %v8611_v11, %v8640_v57 }
 0x38f   : > { %5333 = vrot.lane.b32.xlu0 %v10046_v34, %s6735_s22  ;;  %v6258_v5 = vpop.f32.mrb[43].mxu0  ;;  %s8960_s9 = scalar_lea.vmem %s9798_s3, %s6502_s13 }
 0x390   : > { %v6259_v10 = vadd.f32 %v6258_v5, %v6257_v61  ;;  %v8878_v49 = vadd.f32 %v6320_v63, %v6256_v24 }
 0x391   : > { %5197 = vrot.lane.b32.xlu1 %v10047_v45, %s6734_s10  ;;  %v6324_v51 = vpop.f32.mrb[44].mxu1 }
 0x392   : > { %v6325_v54 = vpop.f32.mrb[45].mxu1  ;;  %v8880_v19 = vadd.f32 %v6323_v36, %v6259_v10  ;;  %v10050_v36 = vpack.c.bf16 %v8688_v35, %v8731_v27 }
 0x393   : > { %5337 = vrot.lane.b32.xlu0 %v10048_v55, %s6735_s22  ;;  %v6326_v0 = vadd.f32 %v6325_v54, %v6324_v51  ;;  %v6327_v40 = vpop.f32.mrb[46].mxu1  ;;  %v10051_v51 = vpack.c.bf16 %v8676_v38, %v8713_v3 }
 0x394   : > { %v6328_v34 = vpop.f32.mrb[47].mxu1  ;;  %v6260_v61 = vpop.f32.mrb[44].mxu0 }
 0x395   : > { %5335 = vrot.lane.b32.xlu1 %v10049_v60, %s6735_s22  ;;  %v6329_v63 = vadd.f32 %v6328_v34, %v6327_v40  ;;  %v6261_v24 = vpop.f32.mrb[45].mxu0  ;;  %v10052_v34 = vpack.c.bf16 %v8758_v26, %v8799_v58 }
 0x396   : > { %v6262_v5 = vadd.f32 %v6261_v24, %v6260_v61  ;;  %v6263_v45 = vpop.f32.mrb[46].mxu0 }
 0x397   : > { %5341 = vrot.lane.b32.xlu0 %v10050_v36, %s6735_s22  ;;  %v6264_v10 = vpop.f32.mrb[47].mxu0  ;;  %v10053_v36 = vpack.c.bf16 %v8746_v33, %v8781_v48 }
 0x398   : > { %v6265_v54 = vadd.f32 %v6264_v10, %v6263_v45  ;;  %v8898_v55 = vadd.f32 %v6326_v0, %v6262_v5 }
 0x399   : > { %5339 = vrot.lane.b32.xlu1 %v10051_v51, %s6735_s22  ;;  %v6330_v60 = vpop.f32.mrb[48].mxu1 }
 0x39a   : > { %v6331_v9 = vpop.f32.mrb[49].mxu1  ;;  %v8900_v40 = vadd.f32 %v6329_v63, %v6265_v54  ;;  %v10054_v63 = vpack.c.bf16 %v8317_v8, %v8313_v50 }
 0x39b   : > { %5345 = vrot.lane.b32.xlu0 %v10052_v34, %s6735_s22  ;;  %v6332_v61 = vadd.f32 %v6331_v9, %v6330_v60  ;;  %v6333_v24 = vpop.f32.mrb[50].mxu1  ;;  %v10055_v9 = vpack.c.bf16 %v8305_v15, %v8302_v30 }
 0x39c   : > { %v6334_v51 = vpop.f32.mrb[51].mxu1  ;;  %v6266_v45 = vpop.f32.mrb[48].mxu0 }
 0x39d   : > { %5343 = vrot.lane.b32.xlu1 %v10053_v36, %s6735_s22  ;;  %v6335_v0 = vadd.f32 %v6334_v51, %v6333_v24  ;;  %v6267_v5 = vpop.f32.mrb[49].mxu0  ;;  %v10056_v51 = vpack.c.bf16 %v8373_v29, %v8368_v28 }
 0x39e   : > { %v6268_v10 = vadd.f32 %v6267_v5, %v6266_v45  ;;  %v6269_v27 = vpop.f32.mrb[50].mxu0 }
 0x39f   : > { %5462 = vrot.lane.b32.xlu0 %v10054_v63, %s6698_s28  ;;  %v6270_v54 = vpop.f32.mrb[51].mxu0  ;;  %v10057_v63 = vpack.c.bf16 %v8361_v12, %v8356_v16 }
 0x3a0   : > { %v6271_v60 = vadd.f32 %v6270_v54, %v6269_v27  ;;  %v8918_v34 = vadd.f32 %v6332_v61, %v6268_v10 }
 0x3a1   : > { %5460 = vrot.lane.b32.xlu1 %v10055_v9, %s6698_s28  ;;  %v6336_v36 = vpop.f32.mrb[52].mxu1 }
 0x3a2   : > { %v6337_v58 = vpop.f32.mrb[53].mxu1  ;;  %v8920_v24 = vadd.f32 %v6335_v0, %v6271_v60  ;;  %v10058_v60 = vpack.c.bf16 %v8439_v23, %v8434_v62 }
 0x3a3   : > { %5466 = vrot.lane.b32.xlu0 %v10056_v51, %s6698_s28  ;;  %v6338_v45 = vadd.f32 %v6337_v58, %v6336_v36  ;;  %v6339_v5 = vpop.f32.mrb[54].mxu1  ;;  %v10059_v58 = vpack.c.bf16 %v8427_v44, %v8420_v13 }
 0x3a4   : > { %v6340_v9 = vpop.f32.mrb[55].mxu1  ;;  %v6272_v27 = vpop.f32.mrb[52].mxu0 }
 0x3a5   : > { %5464 = vrot.lane.b32.xlu1 %v10057_v63, %s6698_s28  ;;  %v6341_v61 = vadd.f32 %v6340_v9, %v6339_v5  ;;  %v6273_v10 = vpop.f32.mrb[53].mxu0  ;;  %v10060_v9 = vpack.c.bf16 %v8499_v52, %v8494_v31 }
 0x3a6   : > { %v6274_v54 = vadd.f32 %v6273_v10, %v6272_v27  ;;  %v6275_v0 = vpop.f32.mrb[54].mxu0  ;;  %v8946_v27 = vpop.xlane.xlu0 %4394 }
 0x3a7   : > { %5470 = vrot.lane.b32.xlu0 %v10058_v60, %s6698_s28  ;;  %v6276_v51 = vpop.f32.mrb[55].mxu0 }
 0x3a8   : > { %v6277_v36 = vadd.f32 %v6276_v51, %v6275_v0  ;;  %v8938_v63 = vadd.f32 %v6338_v45, %v6274_v54  ;;  %v10061_v0 = vpack.c.bf16 %v8487_v46, %v8482_v39 }
 0x3a9   : > { %5468 = vrot.lane.b32.xlu1 %v10059_v58, %s6698_s28  ;;  %v6342_v48 = vpop.f32.mrb[56].mxu1 }
 0x3aa   : > { %v6343_v3 = vpop.f32.mrb[57].mxu1  ;;  %v8940_v5 = vadd.f32 %v6341_v61, %v6277_v36 }
 0x3ab   : > { %5474 = vrot.lane.b32.xlu0 %v10060_v9, %s6698_s28  ;;  %v6344_v10 = vadd.f32 %v6343_v3, %v6342_v48  ;;  %v6345_v60 = vpop.f32.mrb[58].mxu1  ;;  %v10062_v9 = vpack.c.bf16 %v8563_v1, %v8558_v43  ;;  %v10063_v48 = vpack.c.bf16 %v8551_v7, %v8546_v47 }
 0x3ac   : > { %v6346_v45 = vpop.f32.mrb[59].mxu1  ;;  %v6278_v54 = vpop.f32.mrb[56].mxu0 }
 0x3ad   : > { %5472 = vrot.lane.b32.xlu1 %v10061_v0, %s6698_s28  ;;  %v6347_v51 = vadd.f32 %v6346_v45, %v6345_v60  ;;  %v6279_v61 = vpop.f32.mrb[57].mxu0 }
 0x3ae   : > { %v6280_v58 = vadd.f32 %v6279_v61, %v6278_v54  ;;  %v6281_v36 = vpop.f32.mrb[58].mxu0 }
 0x3af   : > { %5478 = vrot.lane.b32.xlu0 %v10062_v9, %s6698_s28  ;;  %v6282_v3 = vpop.f32.mrb[59].mxu0 }
 0x3b0   : > { %v6283_v60 = vadd.f32 %v6282_v3, %v6281_v36  ;;  %v8966_v0 = vadd.f32 %v6344_v10, %v6280_v58  ;;  %v10065_v58 = vpack.c.bf16 %v8618_v22, %v8611_v11 }
 0x3b1   : > { %5476 = vrot.lane.b32.xlu1 %v10063_v48, %s6698_s28  ;;  %v5057_v45 = vpop.permute.xlu0 %5056  ;;  %v6348_v54 = vpop.f32.mrb[60].mxu1 }
 0x3b2   : > { %5105 = vst.msk [vmem:[%s8960_s9] sm:$0xf] %vm5104_vm13, %v5057_v45  ;;  %v5170_v61 = vpop.permute.xlu1 %5169  ;;  %v6349_v9 = vpop.f32.mrb[61].mxu1  ;;  %v8970_v31 = vadd.f32 %v6347_v51, %v6283_v60 }
 0x3b3   : > { %v5201_v39 = vrot.slane %v5170_v61, 4  ;;  %5482 = vrot.lane.b32.xlu0 %v10064_v21, %s6698_s28  ;;  %v6350_v36 = vadd.f32 %v6349_v9, %v6348_v54  ;;  %v6351_v10 = vpop.f32.mrb[62].mxu1 }
 0x3b4   : > { %v6352_v3 = vpop.f32.mrb[63].mxu1  ;;  %v6284_v48 = vpop.f32.mrb[60].mxu0 }
 0x3b5   : > { %5480 = vrot.lane.b32.xlu1 %v10065_v58, %s6698_s28  ;;  %v5218_v45 = vsel %vm5217_vm11, %v5170_v61, %v5201_v39  ;;  %v5172_v51 = vpop.permute.xlu0 %5171  ;;  %v6353_v60 = vadd.f32 %v6352_v3, %v6351_v10  ;;  %v6285_v62 = vpop.f32.mrb[61].mxu0  ;;  %v10066_v58 = vpack.c.bf16 %v8696_v56, %v8688_v35  ;;  %v10067_v39 = vpack.c.bf16 %v8681_v59, %v8676_v38 }
 0x3b6   : > { %5251 = vst.msk [vmem:[%s8960_s9] sm:$0xf] %vm5250_vm1, %v5218_v45  ;;  %v5316_v13 = vpop.permute.xlu1 %5315  ;;  %v6286_v21 = vadd.f32 %v6285_v62, %v6284_v48  ;;  %v6287_v54 = vpop.f32.mrb[62].mxu0  ;;  %v5202_v9 = vrot.slane %v5172_v51, 4 }
 0x3b7   : > { %v5347_v41 = vrot.slane %v5316_v13, 4  ;;  %5486 = vrot.lane.b32.xlu0 %v10066_v58, %s6698_s28  ;;  %v6288_v18 = vpop.f32.mrb[63].mxu0 }
 0x3b8   : > { %v6289_v61 = vadd.f32 %v6288_v18, %v6287_v54  ;;  %v8991_v10 = vadd.f32 %v6350_v36, %v6286_v21  ;;  %v5219_v18 = vsel %vm5217_vm11, %v5172_v51, %v5202_v9  ;;  %v6211_v21 = vpack.c.bf16 %v8317_v8, %v8317_v8 }
 0x3b9   : > { %5484 = vrot.lane.b32.xlu1 %v10067_v39, %s6698_s28  ;;  %v5364_v62 = vsel %vm5363_vm8, %v5316_v13, %v5347_v41  ;;  %v4325_v3 = vpop.f32.mrb[64].mxu1  ;;  %v5318_v48 = vpop.permute.xlu0 %5317  ;;  %v10068_v13 = vpack.c.bf16 %v8766_v37, %v8758_v26 }
 0x3ba   : > { %5396 = vst.msk [vmem:[%s8960_s9 + $0x4] sm:$0xf] %vm5104_vm13, %v5364_v62  ;;  %v8997_v45 = vadd.f32 %v4325_v3, %v8918_v34  ;;  %v5348_v58 = vrot.slane %v5318_v48, 4  ;;  %v4327_v35 = vpop.f32.mrb[65].mxu1  ;;  %v5059_v11 = vpop.permute.xlu1 %5058  ;;  %v8999_v57 = vadd.f32 %v6353_v60, %v6289_v61  ;;  %v10069_v34 = vld [vmem:[#allocation54_spill] sm:$0xff] }
 0x3bb   : > { %5106 = vst.msk [vmem:[%s8960_s9 + $0xc] sm:$0xf] %vm5104_vm13, %v5059_v11  ;;  %v4328_v36 = vpop.f32.mrb[66].mxu1  ;;  %5490 = vrot.lane.b32.xlu0 %v10068_v13, %s6698_s28  ;;  %v10070_v51 = vpack.c.bf16 %v10069_v34, %v8746_v33 }
 0x3bc   : > { %v5365_v41 = vsel %vm5363_vm8, %v5318_v48, %v5348_v58  ;;  %5252 = vst.msk [vmem:[%s8960_s9 + $0xc] sm:$0xf] %vm5250_vm1, %v5219_v18  ;;  %v9012_v35 = vadd.f32 %v4328_v36, %v8920_v24  ;;  %v4293_v11 = vpop.f32.mrb[64].mxu0  ;;  %v4330_v60 = vpop.f32.mrb[67].mxu1  ;;  %v6210_v24 = vpack.c.bf16 %v8305_v15, %v8305_v15  ;;  %v6212_v36 = vpack.c.bf16 %v8361_v12, %v8361_v12 }
 0x3bd   : > { %5488 = vrot.lane.b32.xlu1 %v10070_v51, %s6698_s28  ;;  %5397 = vst.msk [vmem:[%s8960_s9 + $0x10] sm:$0xf] %vm5104_vm13, %v5365_v41  ;;  %v9023_v54 = vadd.f32 %v4293_v11, %v8844_v32  ;;  %v5063_v9 = vpop.permute.xlu0 %5062  ;;  %v4295_v39 = vpop.f32.mrb[65].mxu0  ;;  %s6736_s28 = smov 81   ;;  %v6213_v32 = vpack.c.bf16 %v8373_v29, %v8373_v29 }
 0x3be   : > { %5108 = vst.msk [vmem:[%s8960_s9 + $0x24] sm:$0xf] %vm5104_vm13, %v5063_v9  ;;  %v5061_v61 = vpop.permute.xlu1 %5060  ;;  %v4296_v62 = vpop.f32.mrb[66].mxu0 }
 0x3bf   : > { %5107 = vst.msk [vmem:[%s8960_s9 + $0x18] sm:$0xf] %vm5104_vm13, %v5061_v61  ;;  %v9032_v3 = vadd.f32 %v4296_v62, %v8848_v4  ;;  %5574 = vrot.lane.b32.xlu0 %v6211_v21, %s6736_s28  ;;  %v4298_v48 = vpop.f32.mrb[67].mxu0 }
 0x3c1   : > { %5572 = vrot.lane.b32.xlu1 %v6210_v24, %s6736_s28  ;;  %v4333_v58 = vpop.f32.mrb[68].mxu1  ;;  %v5176_v18 = vpop.permute.xlu0 %5175 }
 0x3c2   : > { %v9041_v13 = vadd.f32 %v4333_v58, %v8938_v63  ;;  %v5204_v4 = vrot.slane %v5176_v18, 4  ;;  %v4335_v41 = vpop.f32.mrb[69].mxu1  ;;  %v5174_v51 = vpop.permute.xlu1 %5173  ;;  %v6215_v63 = vpack.c.bf16 %v8439_v23, %v8439_v23 }
 0x3c3   : > { %v5203_v11 = vrot.slane %v5174_v51, 4  ;;  %v4336_v60 = vpop.f32.mrb[70].mxu1  ;;  %5578 = vrot.lane.b32.xlu0 %v6213_v32, %s6736_s28 }
 0x3c4   : > { %v5221_v21 = vsel %vm5217_vm11, %v5176_v18, %v5204_v4  ;;  %v9046_v9 = vadd.f32 %v4336_v60, %v8940_v5  ;;  %v4301_v39 = vpop.f32.mrb[68].mxu0  ;;  %v4338_v24 = vpop.f32.mrb[71].mxu1  ;;  %v6214_v5 = vpack.c.bf16 %v8427_v44, %v8427_v44 }
 0x3c5   : > { %5576 = vrot.lane.b32.xlu1 %v6212_v36, %s6736_s28  ;;  %5254 = vst.msk [vmem:[%s8960_s9 + $0x24] sm:$0xf] %vm5250_vm1, %v5221_v21  ;;  %v5220_v61 = vsel %vm5217_vm11, %v5174_v51, %v5203_v11  ;;  %v9055_v62 = vadd.f32 %v4301_v39, %v8862_v2  ;;  %v5322_v48 = vpop.permute.xlu0 %5321  ;;  %v4303_v32 = vpop.f32.mrb[69].mxu0  ;;  %v6217_v11 = vpack.c.bf16 %v8499_v52, %v8499_v52 }
 0x3c6   : > { %5253 = vst.msk [vmem:[%s8960_s9 + $0x18] sm:$0xf] %vm5250_vm1, %v5220_v61  ;;  %v5350_v58 = vrot.slane %v5322_v48, 4  ;;  %v5320_v18 = vpop.permute.xlu1 %5319  ;;  %v4304_v36 = vpop.f32.mrb[70].mxu0 }
 0x3c7   : > { %v5349_v4 = vrot.slane %v5320_v18, 4  ;;  %v9062_v41 = vadd.f32 %v4304_v36, %v8866_v42  ;;  %5582 = vrot.lane.b32.xlu0 %v6215_v63, %s6736_s28  ;;  %v4306_v2 = vpop.f32.mrb[71].mxu0  ;;  %v6216_v42 = vpack.c.bf16 %v8487_v46, %v8487_v46 }
 0x3c8   : > { %v5367_v51 = vsel %vm5363_vm8, %v5322_v48, %v5350_v58 }
 0x3c9   : > { %5580 = vrot.lane.b32.xlu1 %v6214_v5, %s6736_s28  ;;  %5399 = vst.msk [vmem:[%s8960_s9 + $0x28] sm:$0xf] %vm5104_vm13, %v5367_v51  ;;  %v5366_v60 = vsel %vm5363_vm8, %v5320_v18, %v5349_v4  ;;  %v4341_v21 = vpop.f32.mrb[72].mxu1  ;;  %v5067_v39 = vpop.permute.xlu0 %5066  ;;  %v6218_v4 = vpack.c.bf16 %v8551_v7, %v8551_v7 }
 0x3ca   : > { %5398 = vst.msk [vmem:[%s8960_s9 + $0x1c] sm:$0xf] %vm5104_vm13, %v5366_v60  ;;  %v9077_v24 = vadd.f32 %v4341_v21, %v8966_v0  ;;  %5110 = vst.msk [vmem:[%s8960_s9 + $0x3c] sm:$0xf] %vm5104_vm13, %v5067_v39  ;;  %v4343_v63 = vpop.f32.mrb[73].mxu1  ;;  %v5065_v61 = vpop.permute.xlu1 %5064 }
 0x3cb   : > { %5109 = vst.msk [vmem:[%s8960_s9 + $0x30] sm:$0xf] %vm5104_vm13, %v5065_v61  ;;  %v4344_v48 = vpop.f32.mrb[74].mxu1  ;;  %5586 = vrot.lane.b32.xlu0 %v6217_v11, %s6736_s28 }
 0x3cc   : > { %v9085_v32 = vadd.f32 %v4344_v48, %v8970_v31  ;;  %v4309_v5 = vpop.f32.mrb[72].mxu0  ;;  %v4346_v58 = vpop.f32.mrb[75].mxu1 }
 0x3cd   : > { %5584 = vrot.lane.b32.xlu1 %v6216_v42, %s6736_s28  ;;  %v9089_v0 = vadd.f32 %v4309_v5, %v8878_v49  ;;  %v5180_v18 = vpop.permute.xlu0 %5179  ;;  %v4311_v36 = vpop.f32.mrb[73].mxu0 }
 0x3ce   : > { %v5206_v2 = vrot.slane %v5180_v18, 4  ;;  %v5178_v51 = vpop.permute.xlu1 %5177  ;;  %v4312_v11 = vpop.f32.mrb[74].mxu0 }
 0x3cf   : > { %v5205_v60 = vrot.slane %v5178_v51, 4  ;;  %v9094_v31 = vadd.f32 %v4312_v11, %v8880_v19  ;;  %v4314_v21 = vpop.f32.mrb[75].mxu0 }
 0x3d0   : > { %v5223_v39 = vsel %vm5217_vm11, %v5180_v18, %v5206_v2 }
 0x3d1   : > { %5588 = vrot.lane.b32.xlu1 %v6218_v4, %s6736_s28  ;;  %5256 = vst.msk [vmem:[%s8960_s9 + $0x3c] sm:$0xf] %vm5250_vm1, %v5223_v39  ;;  %v5222_v49 = vsel %vm5217_vm11, %v5178_v51, %v5205_v60  ;;  %v4349_v42 = vpop.f32.mrb[76].mxu1  ;;  %v5326_v63 = vpop.permute.xlu0 %5325 }
 0x3d2   : > { %5255 = vst.msk [vmem:[%s8960_s9 + $0x30] sm:$0xf] %vm5250_vm1, %v5222_v49  ;;  %v9104_v61 = vadd.f32 %v4349_v42, %v8991_v10  ;;  %v5352_v19 = vrot.slane %v5326_v63, 4  ;;  %v4351_v48 = vpop.f32.mrb[77].mxu1  ;;  %v5324_v5 = vpop.permute.xlu1 %5323 }
 0x3d3   : > { %v5351_v58 = vrot.slane %v5324_v5, 4  ;;  %v4352_v18 = vpop.f32.mrb[78].mxu1 }
 0x3d4   : > { %10071 = vst [vmem:[#allocation63_spill] sm:$0xff] %v9104_v61  ;;  %v5369_v36 = vsel %vm5363_vm8, %v5326_v63, %v5352_v19  ;;  %v9108_v4 = vadd.f32 %v4352_v18, %v8999_v57  ;;  %v4317_v2 = vpop.f32.mrb[76].mxu0  ;;  %v4354_v51 = vpop.f32.mrb[79].mxu1  ;;  %v10074_v19 = vld [vmem:[#allocation5_spill] sm:$0xff] }
 0x3d5   : > { %5401 = vst.msk [vmem:[%s8960_s9 + $0x40] sm:$0xf] %vm5104_vm13, %v5369_v36  ;;  %v5368_v11 = vsel %vm5363_vm8, %v5324_v5, %v5351_v58  ;;  %v9114_v10 = vadd.f32 %v4317_v2, %v8898_v55  ;;  %v5071_v60 = vpop.permute.xlu0 %5070  ;;  %v4319_v21 = vpop.f32.mrb[77].mxu0  ;;  %v10073_v55 = vld [vmem:[#allocation12_spill] sm:$0xff] }
 0x3d6   : > { %10072 = vst [vmem:[#allocation64_spill] sm:$0xff] %v9108_v4  ;;  %5400 = vst.msk [vmem:[%s8960_s9 + $0x34] sm:$0xf] %vm5104_vm13, %v5368_v11  ;;  %v5069_v39 = vpop.permute.xlu1 %5068  ;;  %v4320_v57 = vpop.f32.mrb[78].mxu0  ;;  %v4415_v48 = vrot.slane %v10074_v19, %v10073_v55 }
 0x3d7   : > { %5112 = vst.msk [vmem:[%s8960_s9 + $0x54] sm:$0xf] %vm5104_vm13, %v5071_v60  ;;  %5111 = vst.msk [vmem:[%s8960_s9 + $0x48] sm:$0xf] %vm5104_vm13, %v5069_v39  ;;  %v9123_v49 = vadd.f32 %v4320_v57, %v8900_v40  ;;  %v4322_v42 = vpop.f32.mrb[79].mxu0 }
 0x3d8   : > { %v9132_v51 = vrot.slane %v4415_v48, %v10073_v55 }
 0x3d9   : > { %v5184_v63 = vpop.permute.xlu0 %5183 }
 0x3da   : > { %v5208_v5 = vrot.slane %v5184_v63, 4  ;;  %vm4440_vm0 = vcmp.eq.s32.totalorder %v9132_v51, 1 }
 0x3db   : > { %v5182_v58 = vpop.permute.xlu1 %5181  ;;  %v4485_v19 = vsel %vm4440_vm0, %v8997_v45, 0.0 }
 0x3dc   : > { %v5207_v18 = vrot.slane %v5182_v58, 4  ;;  %v5225_v36 = vsel %vm5217_vm11, %v5184_v63, %v5208_v5 }
 0x3dd   : > { %5258 = vst.msk [vmem:[%s8960_s9 + $0x54] sm:$0xf] %vm5250_vm1, %v5225_v36  ;;  %v5330_v40 = vpop.permute.xlu0 %5329  ;;  %v10075_v36 = vld [vmem:[#allocation41_spill] sm:$0xff] }
 0x3de   : > { %v5224_v2 = vsel %vm5217_vm11, %v5182_v58, %v5207_v18  ;;  %v5354_v11 = vrot.slane %v5330_v40, 4 }
 0x3df   : > { %5257 = vst.msk [vmem:[%s8960_s9 + $0x48] sm:$0xf] %vm5250_vm1, %v5224_v2  ;;  %v5328_v60 = vpop.permute.xlu1 %5327  ;;  %v4572_v2 = vadd.f32 %v10075_v36, %v4485_v19  ;;  %v4455_v19 = vsel %vm4440_vm0, %v9055_v62, 0.0  ;;  %v4445_v36 = vsel %vm4440_vm0, %v9023_v54, 0.0 }
 0x3e0   : > { %v5353_v21 = vrot.slane %v5328_v60, 4  ;;  %v5371_v39 = vsel %vm5363_vm8, %v5330_v40, %v5354_v11  ;;  %v4450_v11 = vsel %vm4440_vm0, %v9032_v3, 0.0 }
 0x3e1   : > { %5403 = vst.msk [vmem:[%s8960_s9 + $0x58] sm:$0xf] %vm5104_vm13, %v5371_v39  ;;  %v5075_v42 = vpop.permute.xlu0 %5074 }
 0x3e2   : > { %v5370_v57 = vsel %vm5363_vm8, %v5328_v60, %v5353_v21  ;;  %5114 = vst.msk [vmem:[%s8960_s9 + $0x6c] sm:$0xf] %vm5104_vm13, %v5075_v42  ;;  %v10076_v42 = vld [vmem:[#allocation17_spill] sm:$0xff] }
 0x3e3   : > { %5402 = vst.msk [vmem:[%s8960_s9 + $0x4c] sm:$0xf] %vm5104_vm13, %v5370_v57  ;;  %v5073_v63 = vpop.permute.xlu1 %5072 }
 0x3e4   : > { %5113 = vst.msk [vmem:[%s8960_s9 + $0x60] sm:$0xf] %vm5104_vm13, %v5073_v63  ;;  %v4530_v63 = vadd.f32 %v10076_v42, %v4450_v11 }
 0x3e5   : > { %v5188_v48 = vpop.permute.xlu0 %5187 }
 0x3e6   : > { %v5210_v5 = vrot.slane %v5188_v48, 4 }
 0x3e7   : > { %v5186_v58 = vpop.permute.xlu1 %5185 }
 0x3e8   : > { %v5209_v18 = vrot.slane %v5186_v58, 4  ;;  %v5227_v40 = vsel %vm5217_vm11, %v5188_v48, %v5210_v5 }
 0x3e9   : > { %5260 = vst.msk [vmem:[%s8960_s9 + $0x6c] sm:$0xf] %vm5250_vm1, %v5227_v40  ;;  %v5079_v21 = vpop.permute.xlu0 %5078 }
 0x3ea   : > { %v5226_v60 = vsel %vm5217_vm11, %v5186_v58, %v5209_v18  ;;  %5116 = vst.msk [vmem:[%s8960_s9 + $0x84] sm:$0xf] %vm5104_vm13, %v5079_v21  ;;  %4573 = vadd.xlane.f32.xlu0 %v4572_v2  ;;  %v10077_v2 = vld [vmem:[#allocation20_spill] sm:$0xff] }
 0x3eb   : > { %5259 = vst.msk [vmem:[%s8960_s9 + $0x60] sm:$0xf] %vm5250_vm1, %v5226_v60  ;;  %v5332_v39 = vpop.permute.xlu1 %5331  ;;  %v4536_v40 = vadd.f32 %v10077_v2, %v4455_v19  ;;  %v4495_v60 = vsel %vm4440_vm0, %v9041_v13, 0.0  ;;  %v10080_v2 = vld [vmem:[#allocation45_spill] sm:$0xff] }
 0x3ec   : > { %v5355_v57 = vrot.slane %v5332_v39, 4 }
 0x3ed   : > { %v5192_v5 = vpop.permute.xlu0 %5191 }
 0x3ee   : > { %v5372_v48 = vsel %vm5363_vm8, %v5332_v39, %v5355_v57  ;;  %v5212_v58 = vrot.slane %v5192_v5, 4  ;;  %4531 = vadd.xlane.f32.xlu0 %v4530_v63  ;;  %v10078_v39 = vld [vmem:[#allocation3_spill] sm:$0xff]  ;;  %v4490_v63 = vsel %vm4440_vm0, %v9012_v35, 0.0 }
 0x3ef   : > { %5404 = vst.msk [vmem:[%s8960_s9 + $0x64] sm:$0xf] %vm5104_vm13, %v5372_v48  ;;  %v5077_v18 = vpop.permute.xlu1 %5076  ;;  %v4524_v57 = vadd.f32 %v10078_v39, %v4445_v36  ;;  %v10079_v48 = vld [vmem:[#allocation47_spill] sm:$0xff]  ;;  %v10081_v39 = vld [vmem:[#allocation28_spill] sm:$0xff] }
 0x3f0   : > { %5115 = vst.msk [vmem:[%s8960_s9 + $0x78] sm:$0xf] %vm5104_vm13, %v5077_v18  ;;  %v5229_v11 = vsel %vm5217_vm11, %v5192_v5, %v5212_v58  ;;  %v4584_v5 = vadd.f32 %v10079_v48, %v4495_v60  ;;  %v4465_v58 = vsel %vm4440_vm0, %v9089_v0, 0.0  ;;  %v4460_v60 = vsel %vm4440_vm0, %v9062_v41, 0.0 }
 0x3f1   : > { %5262 = vst.msk [vmem:[%s8960_s9 + $0x84] sm:$0xf] %vm5250_vm1, %v5229_v11  ;;  %v5083_v21 = vpop.permute.xlu0 %5082  ;;  %v4578_v11 = vadd.f32 %v10080_v2, %v4490_v63  ;;  %v10083_v2 = vld [vmem:[#allocation56_spill] sm:$0xff] }
 0x3f2   : > { %5118 = vst.msk [vmem:[%s8960_s9 + $0x9c] sm:$0xf] %vm5104_vm13, %v5083_v21  ;;  %4537 = vadd.xlane.f32.xlu0 %v4536_v40 }
 0x3f3   : > { %v5190_v42 = vpop.permute.xlu1 %5189 }
 0x3f4   : > { %v5211_v19 = vrot.slane %v5190_v42, 4 }
 0x3f5   : > { %4525 = vadd.xlane.f32.xlu1 %v4524_v57  ;;  %v5196_v36 = vpop.permute.xlu0 %5195  ;;  %v4548_v57 = vadd.f32 %v10081_v39, %v4465_v58  ;;  %v4500_v58 = vsel %vm4440_vm0, %v9046_v9, 0.0  ;;  %v10084_v39 = vld [vmem:[#allocation52_spill] sm:$0xff] }
 0x3f6   : > { %v5228_v18 = vsel %vm5217_vm11, %v5190_v42, %v5211_v19  ;;  %v5214_v40 = vrot.slane %v5196_v36, 4  ;;  %4585 = vadd.xlane.f32.xlu0 %v4584_v5  ;;  %v4505_v42 = vsel %vm4440_vm0, %v9077_v24, 0.0  ;;  %v10082_v19 = vld [vmem:[#allocation25_spill] sm:$0xff] }
 0x3f7   : > { %5261 = vst.msk [vmem:[%s8960_s9 + $0x78] sm:$0xf] %vm5250_vm1, %v5228_v18  ;;  %v5081_v21 = vpop.permute.xlu1 %5080  ;;  %v4542_v5 = vadd.f32 %v10082_v19, %v4460_v60  ;;  %v10085_v19 = vld [vmem:[#allocation34_spill] sm:$0xff] }
 0x3f8   : > { %5117 = vst.msk [vmem:[%s8960_s9 + $0x90] sm:$0xf] %vm5104_vm13, %v5081_v21  ;;  %v5231_v48 = vsel %vm5217_vm11, %v5196_v36, %v5214_v40  ;;  %v4475_v40 = vsel %vm4440_vm0, %v9114_v10, 0.0 }
 0x3f9   : > { %4579 = vadd.xlane.f32.xlu1 %v4578_v11  ;;  %5264 = vst.msk [vmem:[%s8960_s9 + $0x9c] sm:$0xf] %vm5250_vm1, %v5231_v48  ;;  %v5087_v63 = vpop.permute.xlu0 %5086  ;;  %v4596_v11 = vadd.f32 %v10083_v2, %v4505_v42  ;;  %v4590_v48 = vadd.f32 %v10084_v39, %v4500_v58  ;;  %v4470_v42 = vsel %vm4440_vm0, %v9094_v31, 0.0 }
 0x3fa   : > { %5120 = vst.msk [vmem:[%s8960_s9 + $0xb4] sm:$0xf] %vm5104_vm13, %v5087_v63  ;;  %4549 = vadd.xlane.f32.xlu0 %v4548_v57 }
 0x3fb   : > { %v5194_v18 = vpop.permute.xlu1 %5193 }
 0x3fc   : > { %v5213_v36 = vrot.slane %v5194_v18, 4 }
 0x3fd   : > { %4543 = vadd.xlane.f32.xlu1 %v4542_v5  ;;  %v5200_v60 = vpop.permute.xlu0 %5199  ;;  %v4560_v5 = vadd.f32 %v10085_v19, %v4475_v40  ;;  %v4510_v40 = vsel %vm4440_vm0, %v9085_v32, 0.0  ;;  %v10087_v19 = vld [vmem:[#allocation62_spill] sm:$0xff] }
 0x3fe   : > { %v5230_v21 = vsel %vm5217_vm11, %v5194_v18, %v5213_v36  ;;  %v5216_v57 = vrot.slane %v5200_v60, 4  ;;  %4597 = vadd.xlane.f32.xlu0 %v4596_v11  ;;  %v4515_v18 = vsel %vm4440_vm0, %v9104_v61, 0.0  ;;  %v10086_v36 = vld [vmem:[#allocation33_spill] sm:$0xff] }
 0x3ff   : > { %5263 = vst.msk [vmem:[%s8960_s9 + $0x90] sm:$0xf] %vm5250_vm1, %v5230_v21  ;;  %v5085_v63 = vpop.permute.xlu1 %5084  ;;  %v4554_v11 = vadd.f32 %v10086_v36, %v4470_v42  ;;  %v10100_v61 = vld [vmem:[#allocation13_spill] sm:$0xff] }
 0x400   : > { %5119 = vst.msk [vmem:[%s8960_s9 + $0xa8] sm:$0xf] %vm5104_vm13, %v5085_v63  ;;  %v5233_v2 = vsel %vm5217_vm11, %v5200_v60, %v5216_v57  ;;  %v4608_v60 = vadd.f32 %v8829_v6, %v4515_v18  ;;  %v4480_v6 = vsel %vm4440_vm0, %v9123_v49, 0.0 }
 0x401   : > { %4591 = vadd.xlane.f32.xlu1 %v4590_v48  ;;  %5266 = vst.msk [vmem:[%s8960_s9 + $0xb4] sm:$0xf] %vm5250_vm1, %v5233_v2  ;;  %v5334_v58 = vpop.permute.xlu0 %5333  ;;  %v4602_v2 = vadd.f32 %v10087_v19, %v4510_v40 }
 0x402   : > { %v5356_v21 = vrot.slane %v5334_v58, 4  ;;  %4561 = vadd.xlane.f32.xlu0 %v4560_v5 }
 0x403   : > { %v5198_v39 = vpop.permute.xlu1 %5197 }
 0x404   : > { %v5215_v63 = vrot.slane %v5198_v39, 4  ;;  %v5373_v48 = vsel %vm5363_vm8, %v5334_v58, %v5356_v21 }
 0x405   : > { %4555 = vadd.xlane.f32.xlu1 %v4554_v11  ;;  %5405 = vst.msk [vmem:[%s8960_s9 + $0x70] sm:$0xf] %vm5104_vm13, %v5373_v48  ;;  %v5338_v42 = vpop.permute.xlu0 %5337  ;;  %v4520_v48 = vsel %vm4440_vm0, %v9108_v4, 0.0 }
 0x406   : > { %v5232_v57 = vsel %vm5217_vm11, %v5198_v39, %v5215_v63  ;;  %v5358_v5 = vrot.slane %v5338_v42, 4  ;;  %4609 = vadd.xlane.f32.xlu0 %v4608_v60  ;;  %v10088_v39 = vld [vmem:[#allocation38_spill] sm:$0xff] }
 0x407   : > { %5265 = vst.msk [vmem:[%s8960_s9 + $0xa8] sm:$0xf] %vm5250_vm1, %v5232_v57  ;;  %v5336_v36 = vpop.permute.xlu1 %5335  ;;  %v4566_v40 = vadd.f32 %v10088_v39, %v4480_v6 }
 0x408   : > { %v5357_v18 = vrot.slane %v5336_v36, 4  ;;  %v5375_v58 = vsel %vm5363_vm8, %v5338_v42, %v5358_v5  ;;  %v4614_v5 = vadd.f32 %v8837_v53, %v4520_v48 }
 0x409   : > { %4603 = vadd.xlane.f32.xlu1 %v4602_v2  ;;  %5407 = vst.msk [vmem:[%s8960_s9 + $0x88] sm:$0xf] %vm5104_vm13, %v5375_v58  ;;  %v5342_v21 = vpop.permute.xlu0 %5341 }
 0x40a   : > { %v5374_v11 = vsel %vm5363_vm8, %v5336_v36, %v5357_v18  ;;  %v5360_v63 = vrot.slane %v5342_v21, 4 }
 0x40b   : > { %5406 = vst.msk [vmem:[%s8960_s9 + $0x7c] sm:$0xf] %vm5104_vm13, %v5374_v11  ;;  %v5340_v60 = vpop.permute.xlu1 %5339 }
 0x40c   : > { %v5359_v57 = vrot.slane %v5340_v60, 4  ;;  %v5377_v42 = vsel %vm5363_vm8, %v5342_v21, %v5360_v63 }
 0x40d   : > { %4567 = vadd.xlane.f32.xlu1 %v4566_v40  ;;  %5409 = vst.msk [vmem:[%s8960_s9 + $0xa0] sm:$0xf] %vm5104_vm13, %v5377_v42  ;;  %v5346_v2 = vpop.permute.xlu0 %5345 }
 0x40e   : > { %v5376_v19 = vsel %vm5363_vm8, %v5340_v60, %v5359_v57  ;;  %v5362_v36 = vrot.slane %v5346_v2, 4 }
 0x40f   : > { %5408 = vst.msk [vmem:[%s8960_s9 + $0x94] sm:$0xf] %vm5104_vm13, %v5376_v19  ;;  %v5344_v6 = vpop.permute.xlu1 %5343 }
 0x410   : > { %v5361_v18 = vrot.slane %v5344_v6, 4  ;;  %v5379_v58 = vsel %vm5363_vm8, %v5346_v2, %v5362_v36 }
 0x411   : > { %4615 = vadd.xlane.f32.xlu1 %v4614_v5  ;;  %5411 = vst.msk [vmem:[%s8960_s9 + $0xb8] sm:$0xf] %vm5104_vm13, %v5379_v58  ;;  %v5463_v21 = vpop.permute.xlu0 %5462 }
 0x412   : > { %v5378_v11 = vsel %vm5363_vm8, %v5344_v6, %v5361_v18  ;;  %v5493_v39 = vrot.slane %v5463_v21, 4  ;;  %v6219_v6 = vpack.c.bf16 %v8563_v1, %v8563_v1 }
 0x413   : > { %5410 = vst.msk [vmem:[%s8960_s9 + $0xac] sm:$0xf] %vm5104_vm13, %v5378_v11  ;;  %v5461_v53 = vpop.permute.xlu1 %5460 }
 0x414   : > { %v5492_v40 = vrot.slane %v5461_v53, 4  ;;  %v5509_v63 = vsel %vm719_vm3, %v5463_v21, %v5493_v39 }
 0x415   : > { %5541 = vst.msk [vmem:[%s8960_s9 + $0x10] sm:$0xf] %vm5250_vm1, %v5509_v63  ;;  %v5467_v48 = vpop.permute.xlu0 %5466 }
 0x416   : > { %v5508_v60 = vsel %vm719_vm3, %v5461_v53, %v5492_v40  ;;  %v5495_v57 = vrot.slane %v5467_v48, 4  ;;  %v6221_v40 = vpack.c.bf16 %v8630_v20, %v8630_v20 }
 0x417   : > { %5540 = vst.msk [vmem:[%s8960_s9 + $0x4] sm:$0xf] %vm5250_vm1, %v5508_v60  ;;  %v5465_v42 = vpop.permute.xlu1 %5464 }
 0x418   : > { %v5494_v19 = vrot.slane %v5465_v42, 4  ;;  %v5511_v2 = vsel %vm719_vm3, %v5467_v48, %v5495_v57  ;;  %v6220_v48 = vpack.c.bf16 %v8618_v22, %v8618_v22 }
 0x419   : > { %5543 = vst.msk [vmem:[%s8960_s9 + $0x28] sm:$0xf] %vm5250_vm1, %v5511_v2  ;;  %v5471_v36 = vpop.permute.xlu0 %5470 }
 0x41a   : > { %v5510_v5 = vsel %vm719_vm3, %v5465_v42, %v5494_v19  ;;  %v5497_v18 = vrot.slane %v5471_v36, 4 }
 0x41b   : > { %5542 = vst.msk [vmem:[%s8960_s9 + $0x1c] sm:$0xf] %vm5250_vm1, %v5510_v5  ;;  %v5469_v58 = vpop.permute.xlu1 %5468  ;;  %v6223_v5 = vpack.c.bf16 %v8696_v56, %v8696_v56 }
 0x41c   : > { %v5496_v11 = vrot.slane %v5469_v58, 4  ;;  %v5513_v21 = vsel %vm719_vm3, %v5471_v36, %v5497_v18  ;;  %5590 = vrot.lane.b32.xlu0 %v6219_v6, %s6736_s28  ;;  %v6222_v18 = vpack.c.bf16 %v8681_v59, %v8681_v59 }
 0x41d   : > { %5545 = vst.msk [vmem:[%s8960_s9 + $0x40] sm:$0xf] %vm5250_vm1, %v5513_v21  ;;  %v5475_v53 = vpop.permute.xlu0 %5474 }
 0x41e   : > { %v5512_v39 = vsel %vm719_vm3, %v5469_v58, %v5496_v11  ;;  %v5499_v63 = vrot.slane %v5475_v53, 4 }
 0x41f   : > { %5544 = vst.msk [vmem:[%s8960_s9 + $0x34] sm:$0xf] %vm5250_vm1, %v5512_v39  ;;  %v5473_v60 = vpop.permute.xlu1 %5472 }
 0x420   : > { %v5498_v57 = vrot.slane %v5473_v60, 4  ;;  %v5515_v42 = vsel %vm719_vm3, %v5475_v53, %v5499_v63  ;;  %5594 = vrot.lane.b32.xlu0 %v6221_v40, %s6736_s28 }
 0x421   : > { %5547 = vst.msk [vmem:[%s8960_s9 + $0x58] sm:$0xf] %vm5250_vm1, %v5515_v42  ;;  %v5479_v2 = vpop.permute.xlu0 %5478 }
 0x422   : > { %v5514_v19 = vsel %vm719_vm3, %v5473_v60, %v5498_v57  ;;  %5592 = vrot.lane.b32.xlu1 %v6220_v48, %s6736_s28  ;;  %v5501_v36 = vrot.slane %v5479_v2, 4 }
 0x423   : > { %5546 = vst.msk [vmem:[%s8960_s9 + $0x4c] sm:$0xf] %vm5250_vm1, %v5514_v19  ;;  %v5477_v6 = vpop.permute.xlu1 %5476 }
 0x424   : > { %v5500_v58 = vrot.slane %v5477_v6, 4  ;;  %v5517_v11 = vsel %vm719_vm3, %v5479_v2, %v5501_v36  ;;  %5598 = vrot.lane.b32.xlu0 %v6223_v5, %s6736_s28 }
 0x425   : > { %5549 = vst.msk [vmem:[%s8960_s9 + $0x70] sm:$0xf] %vm5250_vm1, %v5517_v11  ;;  %v5483_v39 = vpop.permute.xlu0 %5482 }
 0x426   : > { %v5516_v21 = vsel %vm719_vm3, %v5477_v6, %v5500_v58  ;;  %5596 = vrot.lane.b32.xlu1 %v6222_v18, %s6736_s28  ;;  %v5503_v53 = vrot.slane %v5483_v39, 4 }
 0x427   : > { %5548 = vst.msk [vmem:[%s8960_s9 + $0x64] sm:$0xf] %vm5250_vm1, %v5516_v21  ;;  %v5481_v40 = vpop.permute.xlu1 %5480 }
 0x428   : > { %v5502_v63 = vrot.slane %v5481_v40, 4  ;;  %v5519_v60 = vsel %vm719_vm3, %v5483_v39, %v5503_v53 }
 0x429   : > { %5551 = vst.msk [vmem:[%s8960_s9 + $0x88] sm:$0xf] %vm5250_vm1, %v5519_v60  ;;  %v5487_v57 = vpop.permute.xlu0 %5486 }
 0x42a   : > { %v5518_v48 = vsel %vm719_vm3, %v5481_v40, %v5502_v63  ;;  %v5505_v42 = vrot.slane %v5487_v57, 4 }
 0x42b   : > { %5550 = vst.msk [vmem:[%s8960_s9 + $0x7c] sm:$0xf] %vm5250_vm1, %v5518_v48  ;;  %v5485_v19 = vpop.permute.xlu1 %5484 }
 0x42c   : > { %v5504_v2 = vrot.slane %v5485_v19, 4  ;;  %v5521_v5 = vsel %vm719_vm3, %v5487_v57, %v5505_v42 }
 0x42d   : > { %5553 = vst.msk [vmem:[%s8960_s9 + $0xa0] sm:$0xf] %vm5250_vm1, %v5521_v5  ;;  %v5491_v6 = vpop.permute.xlu0 %5490  ;;  %v4620_v5 = vrot.slane %v8946_v27, %v10073_v55 }
 0x42e   : > { %v5520_v36 = vsel %vm719_vm3, %v5485_v19, %v5504_v2  ;;  %v5507_v18 = vrot.slane %v5491_v6, 4 }
 0x42f   : > { %5552 = vst.msk [vmem:[%s8960_s9 + $0x94] sm:$0xf] %vm5250_vm1, %v5520_v36  ;;  %v5489_v58 = vpop.permute.xlu1 %5488  ;;  %6655 = vrcp.f32 %v4620_v5  ;;  %v10096_v5 = vld [vmem:[#allocation11_spill] sm:$0xff] }
 0x430   : > { %v5506_v11 = vrot.slane %v5489_v58, 4  ;;  %v5523_v21 = vsel %vm719_vm3, %v5491_v6, %v5507_v18 }
 0x431   : > { %5555 = vst.msk [vmem:[%s8960_s9 + $0xb8] sm:$0xf] %vm5250_vm1, %v5523_v21  ;;  %v5575_v53 = vpop.permute.xlu0 %5574  ;;  %v10091_v21 = vld [vmem:[#allocation36_spill] sm:$0xff] }
 0x432   : > { %v5522_v39 = vsel %vm719_vm3, %v5489_v58, %v5506_v11  ;;  %5621 = vst.msk [vmem:[%s8960_s9 + $0x14] sm:$0xf] %vm5104_vm13, %v5575_v53  ;;  %vm10089_vm3 = vcmask 7168   ;;  %v10090_v58 = vld [vmem:[#allocation35_spill] sm:$0xff] }
 0x433   : > { %5554 = vst.msk [vmem:[%s8960_s9 + $0xac] sm:$0xf] %vm5250_vm1, %v5522_v39  ;;  %v5573_v40 = vpop.permute.xlu1 %5572  ;;  %vm10092_vm4 = vmmov %vm10089_vm3 }
 0x434   : > { %5620 = vst.msk [vmem:[%s8960_s9 + $0x8] sm:$0xf] %vm5104_vm13, %v5573_v40  ;;  %vm10098_vm12 = vmmov %vm10089_vm3 }
 0x435   : > { %v5579_v63 = vpop.permute.xlu0 %5578  ;;  %vm10099_vm7 = vmmov %vm10089_vm3 }
 0x436   : > { %5623 = vst.msk [vmem:[%s8960_s9 + $0x2c] sm:$0xf] %vm5104_vm13, %v5579_v63  ;;  %vm10101_vm2 = vmmov %vm10089_vm3 }
 0x437   : > { %v5577_v60 = vpop.permute.xlu1 %5576  ;;  %vm10105_vm5 = vmmov %vm10101_vm2 }
 0x438   : > { %5622 = vst.msk [vmem:[%s8960_s9 + $0x20] sm:$0xf] %vm5104_vm13, %v5577_v60  ;;  %vm10106_vm6 = vmmov %vm10101_vm2 }
 0x439   : > { %v5583_v48 = vpop.permute.xlu0 %5582  ;;  %v9360_v36 = vpop.eup %6655  ;;  %vm10108_vm11 = vmmov %vm10101_vm2 }
 0x43a   : > { %5625 = vst.msk [vmem:[%s8960_s9 + $0x44] sm:$0xf] %vm5104_vm13, %v5583_v48  ;;  %vm10109_vm1 = vmmov %vm10101_vm2 }
 0x43b   : > { %v5581_v57 = vpop.permute.xlu1 %5580  ;;  %vm10110_vm8 = vmmov %vm10109_vm1 }
 0x43c   : > { %5624 = vst.msk [vmem:[%s8960_s9 + $0x38] sm:$0xf] %vm5104_vm13, %v5581_v57 }
 0x43d   : > { %v5587_v42 = vpop.permute.xlu0 %5586 }
 0x43e   : > { %5627 = vst.msk [vmem:[%s8960_s9 + $0x5c] sm:$0xf] %vm5104_vm13, %v5587_v42 }
 0x43f   : > { %v5585_v19 = vpop.permute.xlu1 %5584 }
 0x440   : > { %5626 = vst.msk [vmem:[%s8960_s9 + $0x50] sm:$0xf] %vm5104_vm13, %v5585_v19 }
 0x443   : > { %v5589_v2 = vpop.permute.xlu1 %5588 }
 0x444   : > { %5628 = vst.msk [vmem:[%s8960_s9 + $0x68] sm:$0xf] %vm5104_vm13, %v5589_v2 }
 0x477   : > { %v4574_v6 = vpop.xlane.xlu0 %4573 }
 0x478   : > { %v4630_v18 = vmul.f32 %v9360_v36, %v4574_v6  ;;  %4807 = vst.msk [vmem:[%s9358_s20 + $0x40] sm:$0xff] %vm10089_vm3, %v4574_v6  ;;  %vm10111_vm3 = vmmov %vm10109_vm1 }
 0x47a   : > { %v4678_v11 = vsub.f32 %v10090_v58, %v4630_v18  ;;  %v4679_v27 = vsub.f32 %v10091_v21, %v4630_v18  ;;  %v4680_v55 = vsub.f32 %v8546_v47, %v4630_v18  ;;  %v4681_v39 = vsub.f32 %v8551_v7, %v4630_v18 }
 0x47b   : > { %v4532_v53 = vpop.xlane.xlu0 %4531  ;;  %v4682_v40 = vsub.f32 %v8997_v45, %v4630_v18  ;;  %v10097_v18 = vld [vmem:[#allocation4_spill] sm:$0xff] }
 0x47c   : > { %v4623_v63 = vmul.f32 %v9360_v36, %v4532_v53  ;;  %4800 = vst.msk [vmem:[%s9358_s20 + $0x8] sm:$0xff] %vm10092_vm4, %v4532_v53  ;;  %v4758_v48 = vsel %vm4436_vm10, %v4678_v11, 0.0  ;;  %v4759_v42 = vsel %vm4437_vm9, %v4679_v27, 0.0  ;;  %v4760_v2 = vsel %vm4438_vm15, %v4680_v55, 0.0  ;;  %vm10114_vm4 = vmmov %vm10109_vm1 }
 0x47d   : > { %v4761_v7 = vsel %vm4439_vm14, %v4681_v39, 0.0  ;;  %v4762_v47 = vsel %vm4440_vm0, %v4682_v40, 0.0  ;;  %v4855_v45 = vmul.f32 %v4758_v48, %v4758_v48  ;;  %v4856_v55 = vmul.f32 %v4759_v42, %v4759_v42 }
 0x47e   : > { %v4643_v6 = vsub.f32 %v10096_v5, %v4623_v63  ;;  %v4644_v58 = vsub.f32 %v10097_v18, %v4623_v63  ;;  %v4645_v11 = vsub.f32 %v8313_v50, %v4623_v63  ;;  %v4646_v21 = vsub.f32 %v8317_v8, %v4623_v63 }
 0x47f   : > { %v4538_v53 = vpop.xlane.xlu0 %4537  ;;  %v4647_v27 = vsub.f32 %v9032_v3, %v4623_v63  ;;  %v4857_v4 = vmul.f32 %v4760_v2, %v4760_v2  ;;  %v4858_v37 = vmul.f32 %v4761_v7, %v4761_v7  ;;  %v4859_v18 = vmul.f32 %v4762_v47, %v4762_v47 }
 0x480   : > { %v9389_v39 = vmul.f32 %v9360_v36, %v4538_v53  ;;  %4801 = vst.msk [vmem:[%s9358_s20 + $0x10] sm:$0xff] %vm10098_vm12, %v4538_v53  ;;  %v4723_v40 = vsel %vm4436_vm10, %v4643_v6, 0.0  ;;  %v4724_v50 = vsel %vm4437_vm9, %v4644_v58, 0.0  ;;  %v4725_v8 = vsel %vm4438_vm15, %v4645_v11, 0.0  ;;  %vm10115_vm12 = vmmov %vm10109_vm1 }
 0x481   : > { %v4726_v3 = vsel %vm4439_vm14, %v4646_v21, 0.0  ;;  %v4727_v63 = vsel %vm4440_vm0, %v4647_v27, 0.0  ;;  %v4820_v42 = vmul.f32 %v4723_v40, %v4723_v40  ;;  %v4821_v2 = vmul.f32 %v4724_v50, %v4724_v50  ;;  %v10102_v27 = vld [vmem:[#allocation9_spill] sm:$0xff]  ;;  %v10103_v50 = vld [vmem:[#allocation10_spill] sm:$0xff] }
 0x482   : > { %v4526_v48 = vpop.xlane.xlu1 %4525  ;;  %v4822_v5 = vmul.f32 %v4725_v8, %v4725_v8  ;;  %v4823_v6 = vmul.f32 %v4726_v3, %v4726_v3  ;;  %v4824_v11 = vmul.f32 %v4727_v63, %v4727_v63  ;;  %v4943_v26 = vadd.f32 %v4856_v55, %v4855_v45  ;;  %v10104_v8 = vld [vmem:[#allocation14_spill] sm:$0xff] }
 0x483   : > { %v4622_v7 = vmul.f32 %v9360_v36, %v4526_v48  ;;  %4799 = vst.msk [vmem:[%s9358_s20] sm:$0xff] %vm10099_vm7, %v4526_v48  ;;  %v4586_v58 = vpop.xlane.xlu0 %4585  ;;  %v4901_v53 = vadd.f32 %v4821_v2, %v4820_v42  ;;  %vm10118_vm7 = vmmov %vm10109_vm1 }
 0x484   : > { %4809 = vst.msk [vmem:[%s9358_s20 + $0x50] sm:$0xff] %vm10101_vm2, %v4586_v58  ;;  %v4944_v55 = vadd.f32 %v4943_v26, %v4857_v4  ;;  %v9431_v4 = vmul.f32 %v9360_v36, %v4586_v58  ;;  %vm10121_vm2 = vmmov %vm10109_vm1 }
 0x485   : > { %v4638_v40 = vsub.f32 %v10102_v27, %v4622_v7  ;;  %v4639_v34 = vsub.f32 %v10103_v50, %v4622_v7  ;;  %v4640_v33 = vsub.f32 %v8302_v30, %v4622_v7  ;;  %v4902_v3 = vadd.f32 %v4901_v53, %v4822_v5 }
 0x486   : > { %v4580_v47 = vpop.xlane.xlu1 %4579  ;;  %v4641_v63 = vsub.f32 %v8305_v15, %v4622_v7  ;;  %v4642_v45 = vsub.f32 %v9023_v54, %v4622_v7 }
 0x487   : > { %v4631_v42 = vmul.f32 %v9360_v36, %v4580_v47  ;;  %4808 = vst.msk [vmem:[%s9358_s20 + $0x48] sm:$0xff] %vm10105_vm5, %v4580_v47  ;;  %v4718_v2 = vsel %vm4436_vm10, %v4638_v40, 0.0  ;;  %v4719_v30 = vsel %vm4437_vm9, %v4639_v34, 0.0  ;;  %v4720_v27 = vsel %vm4438_vm15, %v4640_v33, 0.0  ;;  %v4550_v5 = vpop.xlane.xlu0 %4549  ;;  %vm10124_vm5 = vmmov %vm10109_vm1 }
 0x488   : > { %v4903_v53 = vadd.f32 %v4902_v3, %v4823_v6  ;;  %v4721_v15 = vsel %vm4439_vm14, %v4641_v63, 0.0  ;;  %v4722_v26 = vsel %vm4440_vm0, %v4642_v45, 0.0  ;;  %v4815_v54 = vmul.f32 %v4718_v2, %v4718_v2  ;;  %4803 = vst.msk [vmem:[%s9358_s20 + $0x20] sm:$0xff] %vm10106_vm6, %v4550_v5  ;;  %v10107_v3 = vld [vmem:[#allocation37_spill] sm:$0xff] }
 0x489   : > { %v9434_v7 = vmul.f32 %v9360_v36, %v4550_v5  ;;  %v4816_v34 = vmul.f32 %v4719_v30, %v4719_v30  ;;  %v4817_v33 = vmul.f32 %v4720_v27, %v4720_v27  ;;  %v4818_v50 = vmul.f32 %v4721_v15, %v4721_v15 }
 0x48a   : > { %v4544_v40 = vpop.xlane.xlu1 %4543  ;;  %v4904_v6 = vadd.f32 %v4903_v53, %v4824_v11  ;;  %v4945_v47 = vadd.f32 %v4944_v55, %v4858_v37  ;;  %v4683_v63 = vsub.f32 %v10107_v3, %v4631_v42  ;;  %v4819_v45 = vmul.f32 %v4722_v26, %v4722_v26 }
 0x48b   : > { %4802 = vst.msk [vmem:[%s9358_s20 + $0x18] sm:$0xff] %vm10108_vm11, %v4544_v40  ;;  %v4895_v2 = vadd.f32 %v4816_v34, %v4815_v54  ;;  %v4684_v58 = vsub.f32 %v8591_v17, %v4631_v42  ;;  %v4685_v48 = vsub.f32 %v8558_v43, %v4631_v42  ;;  %v9444_v21 = vmul.f32 %v9360_v36, %v4544_v40  ;;  %v4598_v30 = vpop.xlane.xlu0 %4597 }
 0x48c   : > { %4905 = vadd.xlane.f32.xlu1 %v4904_v6  ;;  %v4686_v11 = vsub.f32 %v8563_v1, %v4631_v42  ;;  %v4687_v37 = vsub.f32 %v9012_v35, %v4631_v42  ;;  %v4763_v55 = vsel %vm4436_vm10, %v4683_v63, 0.0  ;;  %4811 = vst.msk [vmem:[%s9358_s20 + $0x60] sm:$0xff] %vm10109_vm1, %v4598_v30  ;;  %v4946_v5 = vadd.f32 %v4945_v47, %v4859_v18 }
 0x48d   : > { %v4896_v27 = vadd.f32 %v4895_v2, %v4817_v33  ;;  %v4764_v43 = vsel %vm4437_vm9, %v4684_v58, 0.0  ;;  %v4765_v17 = vsel %vm4438_vm15, %v4685_v48, 0.0  ;;  %v4860_v42 = vmul.f32 %v4763_v55, %v4763_v55 }
 0x48e   : > { %v4592_v53 = vpop.xlane.xlu1 %4591  ;;  %v4766_v1 = vsel %vm4439_vm14, %v4686_v11, 0.0  ;;  %v4767_v35 = vsel %vm4440_vm0, %v4687_v37, 0.0  ;;  %v4861_v15 = vmul.f32 %v4764_v43, %v4764_v43  ;;  %v9461_v26 = vmul.f32 %v9360_v36, %v4598_v30 }
 0x48f   : > { %v9464_v18 = vmul.f32 %v9360_v36, %v4592_v53  ;;  %4810 = vst.msk [vmem:[%s9358_s20 + $0x58] sm:$0xff] %vm10110_vm8, %v4592_v53  ;;  %v4897_v54 = vadd.f32 %v4896_v27, %v4818_v50  ;;  %v4862_v48 = vmul.f32 %v4765_v17, %v4765_v17  ;;  %v4562_v34 = vpop.xlane.xlu0 %4561  ;;  %v4863_v33 = vmul.f32 %v4766_v1, %v4766_v1 }
 0x490   : > { %v4949_v40 = vadd.f32 %v4861_v15, %v4860_v42  ;;  %v4650_v6 = vsub.f32 %v8356_v16, %v9389_v39  ;;  %v4651_v47 = vsub.f32 %v8361_v12, %v9389_v39  ;;  %4805 = vst.msk [vmem:[%s9358_s20 + $0x30] sm:$0xff] %vm10111_vm3, %v4562_v34  ;;  %v4864_v63 = vmul.f32 %v4767_v35, %v4767_v35  ;;  %v10116_v42 = vld [vmem:[#allocation15_spill] sm:$0xff] }
 0x491   : > { %v4898_v3 = vadd.f32 %v4897_v54, %v4819_v45  ;;  %v4652_v2 = vsub.f32 %v9055_v62, %v9389_v39  ;;  %v10112_v50 = vsub.f32 %v10100_v61, %v9389_v39  ;;  %v10113_v16 = vsub.f32 %v10104_v8, %v9389_v39  ;;  %v10117_v54 = vld [vmem:[#allocation16_spill] sm:$0xff] }
 0x492   : > { %v4556_v30 = vpop.xlane.xlu1 %4555  ;;  %v4950_v11 = vadd.f32 %v4949_v40, %v4862_v48  ;;  %v4730_v45 = vsel %vm4438_vm15, %v4650_v6, 0.0  ;;  %v4731_v62 = vsel %vm4439_vm14, %v4651_v47, 0.0  ;;  %v9491_v61 = vmul.f32 %v9360_v36, %v4562_v34 }
 0x493   : > { %v4728_v58 = vsel %vm4436_vm10, %v10112_v50, 0.0  ;;  %v4729_v12 = vsel %vm4437_vm9, %v10113_v16, 0.0  ;;  %4899 = vadd.xlane.f32.xlu0 %v4898_v3  ;;  %4804 = vst.msk [vmem:[%s9358_s20 + $0x28] sm:$0xff] %vm10114_vm4, %v4556_v30  ;;  %v4732_v37 = vsel %vm4440_vm0, %v4652_v2, 0.0  ;;  %v9498_v8 = vmul.f32 %v9360_v36, %v4556_v30  ;;  %v4610_v27 = vpop.xlane.xlu0 %4609 }
 0x494   : > { %v4825_v55 = vmul.f32 %v4728_v58, %v4728_v58  ;;  %v4826_v39 = vmul.f32 %v4729_v12, %v4729_v12  ;;  %v4951_v43 = vadd.f32 %v4950_v11, %v4863_v33  ;;  %v4827_v17 = vmul.f32 %v4730_v45, %v4730_v45  ;;  %4813 = vst.msk [vmem:[%s9358_s20 + $0x70] sm:$0xff] %vm10115_vm12, %v4610_v27 }
 0x495   : > { %v4828_v53 = vmul.f32 %v4731_v62, %v4731_v62  ;;  %v4829_v1 = vmul.f32 %v4732_v37, %v4732_v37  ;;  %v4653_v15 = vsub.f32 %v10116_v42, %v9444_v21  ;;  %v4654_v48 = vsub.f32 %v10117_v54, %v9444_v21  ;;  %v10119_v37 = vld [vmem:[#allocation42_spill] sm:$0xff] }
 0x496   : > { %v4907_v35 = vadd.f32 %v4826_v39, %v4825_v55  ;;  %v4952_v34 = vadd.f32 %v4951_v43, %v4864_v63  ;;  %v4604_v40 = vpop.xlane.xlu1 %4603  ;;  %v4655_v6 = vsub.f32 %v8368_v28, %v9444_v21  ;;  %v4656_v33 = vsub.f32 %v8373_v29, %v9444_v21  ;;  %v10120_v39 = vld [vmem:[#allocation39_spill] sm:$0xff] }
 0x497   : > { %v4657_v47 = vsub.f32 %v9062_v41, %v9444_v21  ;;  %v9513_v3 = vmul.f32 %v9360_v36, %v4610_v27  ;;  %4947 = vadd.xlane.f32.xlu0 %v4946_v5  ;;  %4812 = vst.msk [vmem:[%s9358_s20 + $0x68] sm:$0xff] %vm10118_vm7, %v4604_v40  ;;  %v4733_v63 = vsel %vm4436_vm10, %v4653_v15, 0.0  ;;  %v4734_v28 = vsel %vm4437_vm9, %v4654_v48, 0.0  ;;  %v5591_v50 = vpop.permute.xlu0 %5590 }
 0x498   : > { %v4908_v2 = vadd.f32 %v4907_v35, %v4827_v17  ;;  %4953 = vadd.xlane.f32.xlu1 %v4952_v34  ;;  %v4735_v29 = vsel %vm4438_vm15, %v4655_v6, 0.0  ;;  %v4736_v41 = vsel %vm4439_vm14, %v4656_v33, 0.0  ;;  %v4830_v5 = vmul.f32 %v4733_v63, %v4733_v63  ;;  %5629 = vst.msk [vmem:[%s8960_s9 + $0x74] sm:$0xf] %vm5104_vm13, %v5591_v50  ;;  %v10122_v33 = vld [vmem:[#allocation43_spill] sm:$0xff] }
 0x499   : > { %v4737_v21 = vsel %vm4440_vm0, %v4657_v47, 0.0  ;;  %v9528_v58 = vmul.f32 %v9360_v36, %v4604_v40  ;;  %v4831_v11 = vmul.f32 %v4734_v28, %v4734_v28  ;;  %v4832_v16 = vmul.f32 %v4735_v29, %v4735_v29  ;;  %v10123_v29 = vld [vmem:[#allocation44_spill] sm:$0xff] }
 0x49a   : > { %v4909_v30 = vadd.f32 %v4908_v2, %v4828_v53  ;;  %v4833_v12 = vmul.f32 %v4736_v41, %v4736_v41  ;;  %v4568_v45 = vpop.xlane.xlu1 %4567  ;;  %v4688_v62 = vsub.f32 %v8633_v25, %v9431_v4  ;;  %v4689_v55 = vsub.f32 %v10119_v37, %v9431_v4 }
 0x49b   : > { %v4690_v27 = vsub.f32 %v10120_v39, %v9431_v4  ;;  %v4834_v17 = vmul.f32 %v4737_v21, %v4737_v21  ;;  %v4913_v35 = vadd.f32 %v4831_v11, %v4830_v5  ;;  %4806 = vst.msk [vmem:[%s9358_s20 + $0x38] sm:$0xff] %vm10121_vm2, %v4568_v45  ;;  %v4691_v53 = vsub.f32 %v8618_v22, %v9431_v4  ;;  %v5595_v42 = vpop.permute.xlu0 %5594  ;;  %v10125_v21 = vld [vmem:[#allocation40_spill] sm:$0xff] }
 0x49c   : > { %v4910_v43 = vadd.f32 %v4909_v30, %v4829_v1  ;;  %v4692_v15 = vsub.f32 %v9041_v13, %v9431_v4  ;;  %v4768_v25 = vsel %vm4436_vm10, %v4688_v62, 0.0  ;;  %v4769_v54 = vsel %vm4437_vm9, %v4689_v55, 0.0  ;;  %5631 = vst.msk [vmem:[%s8960_s9 + $0x8c] sm:$0xf] %vm5104_vm13, %v5595_v42 }
 0x49d   : > { %v4770_v1 = vsel %vm4438_vm15, %v4690_v27, 0.0  ;;  %v4914_v48 = vadd.f32 %v4913_v35, %v4832_v16  ;;  %v4771_v22 = vsel %vm4439_vm14, %v4691_v53, 0.0  ;;  %v4865_v34 = vmul.f32 %v4768_v25, %v4768_v25  ;;  %v10126_v25 = vld [vmem:[#allocation21_spill] sm:$0xff] }
 0x49e   : > { %4911 = vadd.xlane.f32.xlu0 %v4910_v43  ;;  %v4866_v40 = vmul.f32 %v4769_v54, %v4769_v54  ;;  %v9555_v13 = vmul.f32 %v9360_v36, %v4568_v45  ;;  %v4772_v4 = vsel %vm4440_vm0, %v4692_v15, 0.0  ;;  %v4867_v6 = vmul.f32 %v4770_v1, %v4770_v1  ;;  %v4616_v2 = vpop.xlane.xlu1 %4615  ;;  %v10127_v1 = vld [vmem:[#allocation22_spill] sm:$0xff] }
 0x49f   : > { %v4693_v47 = vsub.f32 %v10122_v33, %v9464_v18  ;;  %v4915_v63 = vadd.f32 %v4914_v48, %v4833_v12  ;;  %v4868_v28 = vmul.f32 %v4771_v22, %v4771_v22  ;;  %v4694_v41 = vsub.f32 %v10123_v29, %v9464_v18  ;;  %4814 = vst.msk [vmem:[%s9358_s20 + $0x78] sm:$0xff] %vm10124_vm5, %v4616_v2  ;;  %v5599_v12 = vpop.permute.xlu0 %5598 }
 0x4a0   : > { %v4955_v50 = vadd.f32 %v4866_v40, %v4865_v34  ;;  %v4695_v5 = vsub.f32 %v10125_v21, %v9464_v18  ;;  %v4696_v30 = vsub.f32 %v8630_v20, %v9464_v18  ;;  %v4697_v11 = vsub.f32 %v9046_v9, %v9464_v18  ;;  %5633 = vst.msk [vmem:[%s8960_s9 + $0xa4] sm:$0xf] %vm5104_vm13, %v5599_v12  ;;  %v10128_v34 = vld [vmem:[#allocation18_spill] sm:$0xff]  ;;  %v10130_v12 = vld [vmem:[#allocation24_spill] sm:$0xff] }
 0x4a1   : > { %v4773_v16 = vsel %vm4436_vm10, %v4693_v47, 0.0  ;;  %v4916_v45 = vadd.f32 %v4915_v63, %v4834_v17  ;;  %v4774_v37 = vsel %vm4437_vm9, %v4694_v41, 0.0  ;;  %v4869_v43 = vmul.f32 %v4772_v4, %v4772_v4 }
 0x4a2   : > { %v4956_v62 = vadd.f32 %v4955_v50, %v4867_v6  ;;  %v4870_v55 = vmul.f32 %v4773_v16, %v4773_v16  ;;  %v4775_v39 = vsel %vm4438_vm15, %v4695_v5, 0.0  ;;  %v4776_v20 = vsel %vm4439_vm14, %v4696_v30, 0.0  ;;  %v5593_v27 = vpop.permute.xlu1 %5592 }
 0x4a3   : > { %v4777_v9 = vsel %vm4440_vm0, %v4697_v11, 0.0  ;;  %v4871_v18 = vmul.f32 %v4774_v37, %v4774_v37  ;;  %4917 = vadd.xlane.f32.xlu1 %v4916_v45  ;;  %v4872_v35 = vmul.f32 %v4775_v39, %v4775_v39  ;;  %v4873_v53 = vmul.f32 %v4776_v20, %v4776_v20  ;;  %5630 = vst.msk [vmem:[%s8960_s9 + $0x80] sm:$0xf] %vm5104_vm13, %v5593_v27 }
 0x4a4   : > { %v4957_v17 = vadd.f32 %v4956_v62, %v4868_v28  ;;  %v4874_v42 = vmul.f32 %v4777_v9, %v4777_v9  ;;  %v4658_v54 = vsub.f32 %v10126_v25, %v9434_v7  ;;  %v4659_v48 = vsub.f32 %v10127_v1, %v9434_v7  ;;  %v10129_v28 = vld [vmem:[#allocation23_spill] sm:$0xff]  ;;  %v10133_v25 = vld [vmem:[#allocation49_spill] sm:$0xff] }
 0x4a5   : > { %v4961_v15 = vadd.f32 %v4871_v18, %v4870_v55  ;;  %v4660_v40 = vsub.f32 %v10128_v34, %v9434_v7  ;;  %v4661_v4 = vsub.f32 %v8427_v44, %v9434_v7  ;;  %v4662_v6 = vsub.f32 %v9089_v0, %v9434_v7 }
 0x4a6   : > { %v4958_v22 = vadd.f32 %v4957_v17, %v4869_v43  ;;  %v4738_v47 = vsel %vm4436_vm10, %v4658_v54, 0.0  ;;  %v4739_v63 = vsel %vm4437_vm9, %v4659_v48, 0.0  ;;  %v4663_v50 = vsub.f32 %v10129_v28, %v9498_v8  ;;  %v5597_v29 = vpop.permute.xlu1 %5596 }
 0x4a7   : > { %v4962_v33 = vadd.f32 %v4961_v15, %v4872_v35  ;;  %v9602_v41 = vmul.f32 %v9360_v36, %v4616_v2  ;;  %v4740_v44 = vsel %vm4438_vm15, %v4660_v40, 0.0  ;;  %v4741_v0 = vsel %vm4439_vm14, %v4661_v4, 0.0  ;;  %5632 = vst.msk [vmem:[%s8960_s9 + $0x98] sm:$0xf] %vm5104_vm13, %v5597_v29  ;;  %v10131_v2 = vld [vmem:[#allocation19_spill] sm:$0xff] }
 0x4a8   : > { %4959 = vadd.xlane.f32.xlu0 %v4958_v22  ;;  %v4835_v7 = vmul.f32 %v4738_v47, %v4738_v47  ;;  %v4742_v5 = vsel %vm4440_vm0, %v4662_v6, 0.0  ;;  %v4836_v30 = vmul.f32 %v4739_v63, %v4739_v63  ;;  %v4837_v11 = vmul.f32 %v4740_v44, %v4740_v44 }
 0x4a9   : > { %v4963_v21 = vadd.f32 %v4962_v33, %v4873_v53  ;;  %v4838_v16 = vmul.f32 %v4741_v0, %v4741_v0  ;;  %v4664_v36 = vsub.f32 %v10130_v12, %v9498_v8  ;;  %v4665_v45 = vsub.f32 %v10131_v2, %v9498_v8  ;;  %v10134_v33 = vld [vmem:[#allocation50_spill] sm:$0xff] }
 0x4aa   : > { %v4666_v62 = vsub.f32 %v8439_v23, %v9498_v8  ;;  %v4919_v55 = vadd.f32 %v4836_v30, %v4835_v7  ;;  %v4667_v39 = vsub.f32 %v9094_v31, %v9498_v8  ;;  %v4743_v20 = vsel %vm4436_vm10, %v4663_v50, 0.0 }
 0x4ab   : > { %v4964_v37 = vadd.f32 %v4963_v21, %v4874_v42  ;;  %v4744_v9 = vsel %vm4437_vm9, %v4664_v36, 0.0  ;;  %v4745_v18 = vsel %vm4438_vm15, %v4665_v45, 0.0  ;;  %v4840_v43 = vmul.f32 %v4743_v20, %v4743_v20  ;;  %v10132_v42 = vld [vmem:[#allocation48_spill] sm:$0xff]  ;;  %v10135_v21 = vld [vmem:[#allocation51_spill] sm:$0xff] }
 0x4ac   : > { %v4746_v27 = vsel %vm4439_vm14, %v4666_v62, 0.0  ;;  %v4839_v23 = vmul.f32 %v4742_v5, %v4742_v5  ;;  %v4920_v17 = vadd.f32 %v4919_v55, %v4837_v11  ;;  %v4747_v35 = vsel %vm4440_vm0, %v4667_v39, 0.0  ;;  %v10136_v11 = vld [vmem:[#allocation46_spill] sm:$0xff] }
 0x4ad   : > { %4965 = vadd.xlane.f32.xlu1 %v4964_v37  ;;  %v4841_v31 = vmul.f32 %v4744_v9, %v4744_v9  ;;  %v4842_v8 = vmul.f32 %v4745_v18, %v4745_v18  ;;  %v4843_v53 = vmul.f32 %v4746_v27, %v4746_v27  ;;  %v4698_v15 = vsub.f32 %v10132_v42, %v9461_v26  ;;  %v10137_v37 = vld [vmem:[#allocation29_spill] sm:$0xff] }
 0x4ae   : > { %v4699_v54 = vsub.f32 %v10133_v25, %v9461_v26  ;;  %v4921_v1 = vadd.f32 %v4920_v17, %v4838_v16  ;;  %v4700_v22 = vsub.f32 %v8676_v38, %v9461_v26  ;;  %v4701_v34 = vsub.f32 %v8681_v59, %v9461_v26  ;;  %v10138_v17 = vld [vmem:[#allocation30_spill] sm:$0xff] }
 0x4af   : > { %v4925_v48 = vadd.f32 %v4841_v31, %v4840_v43  ;;  %v4702_v40 = vsub.f32 %v9077_v24, %v9461_v26  ;;  %v4778_v4 = vsel %vm4436_vm10, %v4698_v15, 0.0  ;;  %v4703_v47 = vsub.f32 %v10134_v33, %v9528_v58  ;;  %v10139_v31 = vld [vmem:[#allocation26_spill] sm:$0xff]  ;;  %v10140_v33 = vld [vmem:[#allocation31_spill] sm:$0xff] }
 0x4b0   : > { %v4779_v6 = vsel %vm4437_vm9, %v4699_v54, 0.0  ;;  %v4922_v63 = vadd.f32 %v4921_v1, %v4839_v23  ;;  %v4780_v38 = vsel %vm4438_vm15, %v4700_v22, 0.0  ;;  %v4781_v59 = vsel %vm4439_vm14, %v4701_v34, 0.0 }
 0x4b1   : > { %v4926_v28 = vadd.f32 %v4925_v48, %v4842_v8  ;;  %v4844_v50 = vmul.f32 %v4747_v35, %v4747_v35  ;;  %v4782_v24 = vsel %vm4440_vm0, %v4702_v40, 0.0  ;;  %v4875_v26 = vmul.f32 %v4778_v4, %v4778_v4 }
 0x4b2   : > { %v4876_v29 = vmul.f32 %v4779_v6, %v4779_v6  ;;  %4923 = vadd.xlane.f32.xlu0 %v4922_v63  ;;  %v4877_v0 = vmul.f32 %v4780_v38, %v4780_v38  ;;  %v4878_v7 = vmul.f32 %v4781_v59, %v4781_v59  ;;  %v4704_v5 = vsub.f32 %v10135_v21, %v9528_v58  ;;  %v10141_v38 = vld [vmem:[#allocation32_spill] sm:$0xff] }
 0x4b3   : > { %v4927_v44 = vadd.f32 %v4926_v28, %v4843_v53  ;;  %v4705_v16 = vsub.f32 %v10136_v11, %v9528_v58  ;;  %v4706_v12 = vsub.f32 %v8696_v56, %v9528_v58  ;;  %v4707_v36 = vsub.f32 %v9085_v32, %v9528_v58 }
 0x4b4   : > { %v4967_v30 = vadd.f32 %v4876_v29, %v4875_v26  ;;  %v4783_v45 = vsel %vm4436_vm10, %v4703_v47, 0.0  ;;  %v4784_v62 = vsel %vm4437_vm9, %v4704_v5, 0.0  ;;  %v4668_v55 = vsub.f32 %v10137_v37, %v9491_v61 }
 0x4b5   : > { %v4928_v2 = vadd.f32 %v4927_v44, %v4844_v50  ;;  %v4879_v39 = vmul.f32 %v4782_v24, %v4782_v24  ;;  %v4785_v9 = vsel %vm4438_vm15, %v4705_v16, 0.0  ;;  %v4786_v56 = vsel %vm4439_vm14, %v4706_v12, 0.0  ;;  %v10142_v50 = vld [vmem:[#allocation27_spill] sm:$0xff] }
 0x4b6   : > { %v4968_v20 = vadd.f32 %v4967_v30, %v4877_v0  ;;  %v4787_v32 = vsel %vm4440_vm0, %v4707_v36, 0.0  ;;  %v4880_v58 = vmul.f32 %v4783_v45, %v4783_v45  ;;  %v4881_v18 = vmul.f32 %v4784_v62, %v4784_v62  ;;  %v10143_v0 = vld [vmem:[#allocation58_spill] sm:$0xff]  ;;  %v10144_v62 = vld [vmem:[#allocation59_spill] sm:$0xff] }
 0x4b7   : > { %4929 = vadd.xlane.f32.xlu1 %v4928_v2  ;;  %v4882_v27 = vmul.f32 %v4785_v9, %v4785_v9  ;;  %v4883_v23 = vmul.f32 %v4786_v56, %v4786_v56  ;;  %v4669_v35 = vsub.f32 %v10138_v17, %v9491_v61  ;;  %v4670_v8 = vsub.f32 %v10139_v31, %v9491_v61 }
 0x4b8   : > { %v4969_v43 = vadd.f32 %v4968_v20, %v4878_v7  ;;  %v4973_v53 = vadd.f32 %v4881_v18, %v4880_v58  ;;  %v4671_v42 = vsub.f32 %v8487_v46, %v9491_v61  ;;  %v4672_v15 = vsub.f32 %v9114_v10, %v9491_v61  ;;  %v10146_v20 = vld [vmem:[#allocation54_spill] sm:$0xff]  ;;  %v10147_v18 = vld [vmem:[#allocation60_spill] sm:$0xff] }
 0x4b9   : > { %v4748_v25 = vsel %vm4436_vm10, %v4668_v55, 0.0  ;;  %v4749_v1 = vsel %vm4437_vm9, %v4669_v35, 0.0  ;;  %v4750_v48 = vsel %vm4438_vm15, %v4670_v8, 0.0  ;;  %v4884_v34 = vmul.f32 %v4787_v32, %v4787_v32  ;;  %v10145_v55 = vld [vmem:[#allocation53_spill] sm:$0xff] }
 0x4ba   : > { %v4970_v54 = vadd.f32 %v4969_v43, %v4879_v39  ;;  %v4845_v22 = vmul.f32 %v4748_v25, %v4748_v25  ;;  %v4974_v40 = vadd.f32 %v4973_v53, %v4882_v27  ;;  %v4751_v4 = vsel %vm4439_vm14, %v4671_v42, 0.0 }
 0x4bb   : > { %v4846_v46 = vmul.f32 %v4749_v1, %v4749_v1  ;;  %v4752_v10 = vsel %vm4440_vm0, %v4672_v15, 0.0  ;;  %v4847_v61 = vmul.f32 %v4750_v48, %v4750_v48  ;;  %v4848_v6 = vmul.f32 %v4751_v4, %v4751_v4 }
 0x4bc   : > { %4971 = vadd.xlane.f32.xlu0 %v4970_v54  ;;  %v4673_v47 = vsub.f32 %v10140_v33, %v9555_v13  ;;  %v4975_v63 = vadd.f32 %v4974_v40, %v4883_v23  ;;  %v4674_v59 = vsub.f32 %v10141_v38, %v9555_v13  ;;  %v4675_v24 = vsub.f32 %v10142_v50, %v9555_v13  ;;  %v10148_v23 = vld [vmem:[#allocation63_spill] sm:$0xff]  ;;  %v10149_v54 = vld [vmem:[#allocation61_spill] sm:$0xff] }
 0x4bd   : > { %v4931_v28 = vadd.f32 %v4846_v46, %v4845_v22  ;;  %v4676_v26 = vsub.f32 %v8499_v52, %v9555_v13  ;;  %v4677_v29 = vsub.f32 %v9123_v49, %v9555_v13  ;;  %v4708_v7 = vsub.f32 %v10143_v0, %v9513_v3  ;;  %v10151_v40 = vld [vmem:[#allocation57_spill] sm:$0xff] }
 0x4be   : > { %v4753_v44 = vsel %vm4436_vm10, %v4673_v47, 0.0  ;;  %v4976_v21 = vadd.f32 %v4975_v63, %v4884_v34  ;;  %v4754_v30 = vsel %vm4437_vm9, %v4674_v59, 0.0  ;;  %v4755_v11 = vsel %vm4438_vm15, %v4675_v24, 0.0  ;;  %v10152_v63 = vld [vmem:[#allocation64_spill] sm:$0xff] }
 0x4bf   : > { %v4932_v5 = vadd.f32 %v4931_v28, %v4847_v61  ;;  %v4756_v52 = vsel %vm4439_vm14, %v4676_v26, 0.0  ;;  %v4850_v16 = vmul.f32 %v4753_v44, %v4753_v44  ;;  %v4851_v12 = vmul.f32 %v4754_v30, %v4754_v30 }
 0x4c0   : > { %4977 = vadd.xlane.f32.xlu1 %v4976_v21  ;;  %v4849_v49 = vmul.f32 %v4752_v10, %v4752_v10  ;;  %v4757_v36 = vsel %vm4440_vm0, %v4677_v29, 0.0  ;;  %v4852_v2 = vmul.f32 %v4755_v11, %v4755_v11  ;;  %v4709_v37 = vsub.f32 %v10144_v62, %v9513_v3 }
 0x4c1   : > { %v4933_v13 = vadd.f32 %v4932_v5, %v4848_v6  ;;  %v4937_v45 = vadd.f32 %v4851_v12, %v4850_v16  ;;  %v4710_v39 = vsub.f32 %v10145_v55, %v9513_v3  ;;  %v4711_v9 = vsub.f32 %v10146_v20, %v9513_v3 }
 0x4c2   : > { %v4853_v32 = vmul.f32 %v4756_v52, %v4756_v52  ;;  %v4788_v58 = vsel %vm4436_vm10, %v4708_v7, 0.0  ;;  %v4713_v27 = vsub.f32 %v10147_v18, %v9602_v41  ;;  %v4712_v17 = vsub.f32 %v10148_v23, %v9513_v3  ;;  %v10150_v3 = vld [vmem:[#allocation55_spill] sm:$0xff] }
 0x4c3   : > { %v4934_v56 = vadd.f32 %v4933_v13, %v4849_v49  ;;  %v4938_v43 = vadd.f32 %v4937_v45, %v4852_v2  ;;  %v4789_v35 = vsel %vm4437_vm9, %v4709_v37, 0.0  ;;  %v4790_v31 = vsel %vm4438_vm15, %v4710_v39, 0.0 }
 0x4c4   : > { %v4885_v8 = vmul.f32 %v4788_v58, %v4788_v58  ;;  %v4886_v53 = vmul.f32 %v4789_v35, %v4789_v35  ;;  %v4854_v42 = vmul.f32 %v4757_v36, %v4757_v36  ;;  %v4791_v25 = vsel %vm4439_vm14, %v4711_v9, 0.0 }
 0x4c5   : > { %4935 = vadd.xlane.f32.xlu0 %v4934_v56  ;;  %v4939_v15 = vadd.f32 %v4938_v43, %v4853_v32  ;;  %v4714_v1 = vsub.f32 %v10149_v54, %v9602_v41  ;;  %v4887_v48 = vmul.f32 %v4790_v31, %v4790_v31  ;;  %v4715_v34 = vsub.f32 %v10150_v3, %v9602_v41 }
 0x4c6   : > { %v4979_v22 = vadd.f32 %v4886_v53, %v4885_v8  ;;  %v4716_v4 = vsub.f32 %v10151_v40, %v9602_v41  ;;  %v4792_v10 = vsel %vm4440_vm0, %v4712_v17, 0.0  ;;  %v4793_v61 = vsel %vm4436_vm10, %v4713_v27, 0.0 }
 0x4c7   : > { %v4940_v46 = vadd.f32 %v4939_v15, %v4854_v42  ;;  %v4794_v6 = vsel %vm4437_vm9, %v4714_v1, 0.0  ;;  %v4888_v33 = vmul.f32 %v4791_v25, %v4791_v25  ;;  %v4717_v28 = vsub.f32 %v10152_v63, %v9602_v41 }
 0x4c8   : > { %v4980_v47 = vadd.f32 %v4979_v22, %v4887_v48  ;;  %v4795_v38 = vsel %vm4438_vm15, %v4715_v34, 0.0  ;;  %v4890_v59 = vmul.f32 %v4793_v61, %v4793_v61  ;;  %v4891_v50 = vmul.f32 %v4794_v6, %v4794_v6 }
 0x4c9   : > { %4941 = vadd.xlane.f32.xlu1 %v4940_v46  ;;  %v4889_v24 = vmul.f32 %v4792_v10, %v4792_v10  ;;  %v4796_v60 = vsel %vm4439_vm14, %v4716_v4, 0.0  ;;  %v4892_v29 = vmul.f32 %v4795_v38, %v4795_v38  ;;  %v4797_v0 = vsel %vm4440_vm0, %v4717_v28, 0.0 }
 0x4ca   : > { %v4981_v26 = vadd.f32 %v4980_v47, %v4888_v33  ;;  %v4985_v44 = vadd.f32 %v4891_v50, %v4890_v59  ;;  %v4893_v41 = vmul.f32 %v4796_v60, %v4796_v60  ;;  %v4894_v19 = vmul.f32 %v4797_v0, %v4797_v0 }
 0x4cb   : > { %v6224_v14 = vpack.c.bf16 %v10146_v20, %v10146_v20  ;;  %v6225_v30 = vpack.c.bf16 %v10151_v40, %v10151_v40  ;;  %vm4991_vm10 = vcmask 15368  }
 0x4cc   : > { %v4982_v57 = vadd.f32 %v4981_v26, %v4889_v24  ;;  %v4986_v7 = vadd.f32 %v4985_v44, %v4892_v29 }
 0x4ce   : > { %4983 = vadd.xlane.f32.xlu0 %v4982_v57  ;;  %v4987_v21 = vadd.f32 %v4986_v7, %v4893_v41 }
 0x4d0   : > { %v4988_v5 = vadd.f32 %v4987_v21, %v4894_v19 }
 0x4d2   : > { %4989 = vadd.xlane.f32.xlu1 %v4988_v5 }
 0x4e3   : > { %5600 = vrot.lane.b32.xlu1 %v6224_v14, %s6736_s28 }
 0x4e4   : > { %5602 = vrot.lane.b32.xlu0 %v6225_v30, %s6736_s28 }
 0x519   : > { %v4906_v51 = vpop.xlane.xlu1 %4905 }
 0x51a   : > { %4993 = vst.msk [vmem:[%s9358_s20 + $0x8] sm:$0xff] %vm4991_vm10, %v4906_v51 }
 0x520   : > { %v4900_v11 = vpop.xlane.xlu0 %4899 }
 0x521   : > { %4992 = vst.msk [vmem:[%s9358_s20] sm:$0xff] %vm4991_vm10, %v4900_v11 }
 0x524   : > { %v4948_v52 = vpop.xlane.xlu0 %4947 }
 0x525   : > { %5000 = vst.msk [vmem:[%s9358_s20 + $0x40] sm:$0xff] %vm4991_vm10, %v4948_v52  ;;  %v4954_v16 = vpop.xlane.xlu1 %4953 }
 0x526   : > { %5001 = vst.msk [vmem:[%s9358_s20 + $0x48] sm:$0xff] %vm4991_vm10, %v4954_v16 }
 0x52b   : > { %v4912_v12 = vpop.xlane.xlu0 %4911 }
 0x52c   : > { %4994 = vst.msk [vmem:[%s9358_s20 + $0x10] sm:$0xff] %vm4991_vm10, %v4912_v12 }
 0x530   : > { %v4918_v49 = vpop.xlane.xlu1 %4917 }
 0x531   : > { %4995 = vst.msk [vmem:[%s9358_s20 + $0x18] sm:$0xff] %vm4991_vm10, %v4918_v49 }
 0x535   : > { %v4960_v13 = vpop.xlane.xlu0 %4959 }
 0x536   : > { %5002 = vst.msk [vmem:[%s9358_s20 + $0x50] sm:$0xff] %vm4991_vm10, %v4960_v13 }
 0x53a   : > { %v4966_v36 = vpop.xlane.xlu1 %4965 }
 0x53b   : > { %5003 = vst.msk [vmem:[%s9358_s20 + $0x58] sm:$0xff] %vm4991_vm10, %v4966_v36 }
 0x53f   : > { %v4924_v2 = vpop.xlane.xlu0 %4923 }
 0x540   : > { %4996 = vst.msk [vmem:[%s9358_s20 + $0x20] sm:$0xff] %vm4991_vm10, %v4924_v2 }
 0x544   : > { %v4930_v45 = vpop.xlane.xlu1 %4929 }
 0x545   : > { %4997 = vst.msk [vmem:[%s9358_s20 + $0x28] sm:$0xff] %vm4991_vm10, %v4930_v45 }
 0x549   : > { %v4972_v62 = vpop.xlane.xlu0 %4971 }
 0x54a   : > { %5004 = vst.msk [vmem:[%s9358_s20 + $0x60] sm:$0xff] %vm4991_vm10, %v4972_v62 }
 0x54d   : > { %v4978_v37 = vpop.xlane.xlu1 %4977 }
 0x54e   : > { %5005 = vst.msk [vmem:[%s9358_s20 + $0x68] sm:$0xff] %vm4991_vm10, %v4978_v37 }
 0x552   : > { %v4936_v55 = vpop.xlane.xlu0 %4935 }
 0x553   : > { %4998 = vst.msk [vmem:[%s9358_s20 + $0x30] sm:$0xff] %vm4991_vm10, %v4936_v55 }
 0x556   : > { %v4942_v39 = vpop.xlane.xlu1 %4941 }
 0x557   : > { %4999 = vst.msk [vmem:[%s9358_s20 + $0x38] sm:$0xff] %vm4991_vm10, %v4942_v39 }
 0x55b   : > { %v4984_v20 = vpop.xlane.xlu0 %4983 }
 0x55c   : > { %5006 = vst.msk [vmem:[%s9358_s20 + $0x70] sm:$0xff] %vm4991_vm10, %v4984_v20 }
 0x55f   : > { %v5603_v9 = vpop.permute.xlu0 %5602  ;;  %v4990_v56 = vpop.xlane.xlu1 %4989 }
 0x560   : > { %5635 = vst.msk [vmem:[%s8960_s9 + $0xbc] sm:$0xf] %vm5104_vm13, %v5603_v9 }
 0x561   : > { %5007 = vst.msk [vmem:[%s9358_s20 + $0x78] sm:$0xff] %vm4991_vm10, %v4990_v56 }
 0x563   : > { %v5601_v32 = vpop.permute.xlu1 %5600 }
 0x564   : > { %5634 = vst.msk [vmem:[%s8960_s9 + $0xb0] sm:$0xf] %vm5104_vm13, %v5601_v32 }
 0x565 PF: > { %s15_s15 = sadd.s32 1, %s6689_s15  }
 0x566   : > { %p12_p4 = scmp.ge.s32.totalorder %s15_s15, 4  }
 0x568   :  { %14 = sbr.rel (!%p12_p4) target bundleno = 1 (0x1), region = 77 }

</bundles_post_ra>
